<compile_context>
chip_gen: v7x
topology: tpu7x:2x2x1
jax: 0.10.0
libtpu: 0.0.40
codegen_flags: <defaults>
</compile_context>

<pallas_src>
import numpy as np
import jax
import jax.numpy as jnp
from jax import lax
from jax.experimental import pallas as pl
from jax.experimental.pallas import tpu as pltpu

# ----------------------- hyperparameters (small demo sizes) -----------------------
BATCH = 2
LATENT_DIM = 2
LIN_NUM_NEURONS = (32, 128)
CONV_INPUT_SHAPE = (4, 4, 4)             # (C, H, W) fed to the deconv stack
LIN_OUTPUT_NEURONS = 4 * 4 * 4           # = prod(CONV_INPUT_SHAPE)
DECONV_FILTERS = (8, 16)
DECONV_KERNEL = 3
DECONV_STRIDE = 2
OUTPUT_SHAPE = (16, 16)                  # AdaptiveAvgPool2d target (OH, OW)
DECONV_STRIDES = (1, DECONV_STRIDE, DECONV_STRIDE)   # first ConvTranspose2d: stride 1
DECONV_RELUS = (True, True, False)       # last ConvTranspose2d has no activation
PADDED_MID = 2816                        # 16*13*13 = 2704 -> 22*128 (lane multiple)


# ------------------------------ fused decoder kernel -------------------------------
def _decoder_kernel(x_ref,
                    lw0_ref, lb0_ref, lw1_ref, lb1_ref, lw2_ref, lb2_ref,
                    dw0_ref, db0_ref, dw1_ref, db1_ref, dwp_ref, dbp_ref,
                    o_ref):
    """Entire Decoder forward as a single chain of MXU matmuls (f32 accumulation)."""

    def dense(h, w_ref, b_ref, relu):
        w = w_ref[...]
        # The two large operators are stored in bf16: feed the MXU bf16 x bf16
        # with f32 accumulation.  Bias add / ReLU stay in f32.
        if w.dtype == jnp.bfloat16:
            h = h.astype(jnp.bfloat16)
        y = jnp.dot(h, w, preferred_element_type=jnp.float32) + b_ref[...]
        return jnp.maximum(y, 0.0) if relu else y

    h = dense(x_ref[...], lw0_ref, lb0_ref, True)      # (B, 32)
    h = dense(h, lw1_ref, lb1_ref, True)               # (B, 128)
    h = dense(h, lw2_ref, lb2_ref, True)               # (B, 64)  == NCHW-flat deconv input
    h = dense(h, dw0_ref, db0_ref, DECONV_RELUS[0])    # ConvT1 -> (B,  8*6*6  = 288)
    h = dense(h, dw1_ref, db1_ref, DECONV_RELUS[1])    # ConvT2 -> (B, 2816)  (2704 + pad)
    # ConvT3 (no activation) fused with AdaptiveAvgPool2d -> lane-dense (B, 256).
    o_ref[...] = dense(h, dwp_ref, dbp_ref, False)


# ----------------------- weight preprocessing (one-time, host-side) ----------------
def _deconv_as_matrix(weight, H, W, stride):
    """Dense operator matrix of ConvTranspose2d (padding=0, output_padding=0).

    weight : (Cin, Cout, k, k) numpy -- PyTorch ConvTranspose2d weight layout.
    Rows are indexed by the NCHW-flat input (ci, ih, iw); columns by the
    NCHW-flat output (co, oh, ow):
        A[(ci,ih,iw), (co,oh,ow)] = w[ci, co, oh - s*ih, ow - s*iw]   (0 if out of range)
    """
    Cin, Cout, k, _ = weight.shape
    Hout = (H - 1) * stride + k
    Wout = (W - 1) * stride + k

    kh = np.arange(Hout)[None, :] - stride * np.arange(H)[:, None]    # (H, Hout)
    kw = np.arange(Wout)[None, :] - stride * np.arange(W)[:, None]    # (W, Wout)
    mh = (kh >= 0) & (kh < k)
    mw = (kw >= 0) & (kw < k)
    khc = np.clip(kh, 0, k - 1)
    kwc = np.clip(kw, 0, k - 1)

    g = weight[:, :, khc[:, :, None, None], kwc[None, None, :, :]]    # (Cin,Cout,H,Hout,W,Wout)
    mask = (mh[:, :, None, None] & mw[None, None, :, :]).astype(weight.dtype)
    A = (g * mask).transpose(0, 2, 4, 1, 3, 5).reshape(Cin * H * W, Cout * Hout * Wout)
    return A, Hout, Wout


def _adaptive_avg_matrix(in_size, out_size):
    A = np.zeros((out_size, in_size), np.float32)
    for i in range(out_size):
        start = (i * in_size) // out_size
        end = -((-(i + 1) * in_size) // out_size)     # ceil((i+1)*in/out)
        A[i, start:end] = 1.0 / (end - start)
    return A


def _pool_matrix(H, W, OH, OW):
    """Dense (H*W, OH*OW) operator of AdaptiveAvgPool2d."""
    Ah = _adaptive_avg_matrix(H, OH)    # (OH, H)
    Aw = _adaptive_avg_matrix(W, OW)    # (OW, W)
    return np.einsum("ph,qw->hwpq", Ah, Aw).reshape(H * W, OH * OW)


def prepare_decoder(params):
    """One-time weight preprocessing -- compute once per parameter set and cache.

    Builds the dense ConvTranspose2d operators, fuses ConvT#3 with the adaptive
    pool, zero-pads the 2704 inner width to 2816 lanes, and casts the two large
    operators to bf16.  Pure function of the parameters, never on the per-call
    critical path.
    """
    assert not DECONV_RELUS[2], "ConvT#3 / pool fusion requires no activation in between"
    _, Hc, Wc = CONV_INPUT_SHAPE
    p = {k: np.asarray(v, np.float32) for k, v in params.items()}

    # ConvT #1: small (64x288), kept f32 (exact).
    A0, H1, W1 = _deconv_as_matrix(p["dc_w0"], Hc, Wc, DECONV_STRIDES[0])
    b0 = np.repeat(p["dc_b0"], H1 * W1)[None, :]                          # (1, 288)

    # ConvT #2: (288, 2704) -> columns zero-padded to 2816, streamed as bf16.
    A1, H2, W2 = _deconv_as_matrix(p["dc_w1"], H1, W1, DECONV_STRIDES[1])
    n_mid = A1.shape[1]                                                    # 2704
    A1p = np.zeros((A1.shape[0], PADDED_MID), np.float32)
    A1p[:, :n_mid] = A1
    b1p = np.zeros((1, PADDED_MID), np.float32)
    b1p[0, :n_mid] = np.repeat(p["dc_b1"], H2 * W2)
    # padded columns: weight 0, bias 0 -> ReLU(0) = 0 -> no contribution downstream.

    # ConvT #3 (no activation) fused with AdaptiveAvgPool2d into one operator.
    A2, H3, W3 = _deconv_as_matrix(p["dc_w2"], H2, W2, DECONV_STRIDES[2])  # (2704, 729)
    P = _pool_matrix(H3, W3, *OUTPUT_SHAPE)                                # (729, 256)
    A2P = A2 @ P                                                           # (2704, 256)
    A2Pp = np.zeros((PADDED_MID, A2P.shape[1]), np.float32)
    A2Pp[:n_mid, :] = A2P
    # Each pool column sums to 1, so the ConvT#3 bias passes straight through the pool.
    b2p = np.full((1, A2P.shape[1]), float(p["dc_b2"][0]), np.float32)

    return {
        "lw0": jnp.asarray(p["lin_w0"]), "lb0": jnp.asarray(p["lin_b0"]),
        "lw1": jnp.asarray(p["lin_w1"]), "lb1": jnp.asarray(p["lin_b1"]),
        "lw2": jnp.asarray(p["lin_w2"]), "lb2": jnp.asarray(p["lin_b2"]),
        "dw0": jnp.asarray(A0),                         "db0": jnp.asarray(b0),
        "dw1": jnp.asarray(A1p, dtype=jnp.bfloat16),    "db1": jnp.asarray(b1p),
        "dwp": jnp.asarray(A2Pp, dtype=jnp.bfloat16),   "dbp": jnp.asarray(b2p),
    }


# ------------------------------------ parameters -----------------------------------
def init_params(key):
    dims = [LATENT_DIM, LIN_NUM_NEURONS[0], LIN_NUM_NEURONS[1], LIN_OUTPUT_NEURONS]
    keys = jax.random.split(key, 12)
    p = {}
    for i in range(3):
        fan_in = dims[i]
        p[f"lin_w{i}"] = (jax.random.normal(keys[2 * i], (dims[i], dims[i + 1]),
                                            jnp.float32) / np.sqrt(fan_in))
        p[f"lin_b{i}"] = 0.01 * jax.random.normal(keys[2 * i + 1], (1, dims[i + 1]),
                                                  jnp.float32)
    conv_chans = [CONV_INPUT_SHAPE[0], DECONV_FILTERS[0], DECONV_FILTERS[1], 1]
    k = DECONV_KERNEL
    for i in range(3):
        cin, cout = conv_chans[i], conv_chans[i + 1]
        p[f"dc_w{i}"] = (jax.random.normal(keys[6 + 2 * i], (cin, cout, k, k),
                                           jnp.float32) / np.sqrt(cin * k * k))
        p[f"dc_b{i}"] = 0.01 * jax.random.normal(keys[7 + 2 * i], (cout,), jnp.float32)
    return p


# ------------------------------------- forward -------------------------------------
@jax.jit
def decoder_forward(x, prepared):
    """Thin per-call wrapper: a single grid-less pallas_call, no weight rebuilding."""
    B = x.shape[0]
    out = pl.pallas_call(
        _decoder_kernel,
        out_shape=jax.ShapeDtypeStruct((B, OUTPUT_SHAPE[0] * OUTPUT_SHAPE[1]),
                                       jnp.float32),
    )(x,
      prepared["lw0"], prepared["lb0"],
      prepared["lw1"], prepared["lb1"],
      prepared["lw2"], prepared["lb2"],
      prepared["dw0"], prepared["db0"],
      prepared["dw1"], prepared["db1"],
      prepared["dwp"], prepared["dbp"])
    return out.reshape(B, 1, *OUTPUT_SHAPE)       # NCHW, matches AdaptiveAvgPool2d output


# -------------------------------- references ---------------------------------------
def matched_reference(x, prepared):
    """Same math as the kernel (same prepared operators, same bf16 casts) in plain JAX."""
    def dense(h, w, b, relu):
        if w.dtype == jnp.bfloat16:
            h = h.astype(jnp.bfloat16)
        y = jnp.dot(h, w, preferred_element_type=jnp.float32) + b
        return jnp.maximum(y, 0.0) if relu else y

    h = dense(x, prepared["lw0"], prepared["lb0"], True)
    h = dense(h, prepared["lw1"], prepared["lb1"], True)
    h = dense(h, prepared["lw2"], prepared["lb2"], True)
    h = dense(h, prepared["dw0"], prepared["db0"], DECONV_RELUS[0])
    h = dense(h, prepared["dw1"], prepared["db1"], DECONV_RELUS[1])
    y = dense(h, prepared["dwp"], prepared["dbp"], False)
    return y.reshape(x.shape[0], 1, *OUTPUT_SHAPE)


def reference_forward(x, params):
    """Pure-f32 reference with PyTorch ConvTranspose2d / AdaptiveAvgPool2d semantics."""
    prec = lax.Precision.HIGHEST
    h = jax.nn.relu(jnp.dot(x, params["lin_w0"], precision=prec) + params["lin_b0"])
    h = jax.nn.relu(jnp.dot(h, params["lin_w1"], precision=prec) + params["lin_b1"])
    h = jax.nn.relu(jnp.dot(h, params["lin_w2"], precision=prec) + params["lin_b2"])
    B = x.shape[0]
    C, Hc, Wc = CONV_INPUT_SHAPE
    h = h.reshape(B, C, Hc, Wc).transpose(0, 2, 3, 1)            # NCHW -> NHWC
    for i in range(3):
        w = params[f"dc_w{i}"]
        b = params[f"dc_b{i}"]
        k = w.shape[-1]
        s = DECONV_STRIDES[i]
        wf = jnp.transpose(w[:, :, ::-1, ::-1], (2, 3, 0, 1))    # -> HWIO (flipped)
        h = lax.conv_general_dilated(
            h, wf, window_strides=(1, 1),
            padding=[(k - 1, k - 1), (k - 1, k - 1)],
            lhs_dilation=(s, s),
            dimension_numbers=("NHWC", "HWIO", "NHWC"),
            precision=prec)
        h = h + b
        if DECONV_RELUS[i]:
            h = jax.nn.relu(h)
    y = h[..., 0]
    H, W = y.shape[1], y.shape[2]
    Ah = jnp.asarray(_adaptive_avg_matrix(H, OUTPUT_SHAPE[0]))
    Aw = jnp.asarray(_adaptive_avg_matrix(W, OUTPUT_SHAPE[1]))
    y = jnp.einsum("oh,nhw,pw->nop", Ah, y, Aw, precision=prec)
    return y.reshape(B, 1, *OUTPUT_SHAPE)


if __name__ == "__main__":
    key = jax.random.PRNGKey(0)
    k_x, k_p = jax.random.split(key)
    x = jax.random.normal(k_x, (BATCH, LATENT_DIM), jnp.float32)
    params = init_params(k_p)

    prepared = prepare_decoder(params)           # one-time prep per parameter set
    out = decoder_forward(x, prepared)
    out = jax.block_until_ready(out)
    assert out.shape == (BATCH, 1, *OUTPUT_SHAPE), out.shape
    out_np = np.asarray(out, np.float64)

    # (a) check against the identical math (same bf16-cast operators) in plain JAX
    matched = np.asarray(matched_reference(x, prepared), np.float64)
    if not np.allclose(out_np, matched, rtol=5e-3, atol=5e-3):
        raise SystemExit("Pallas decoder mismatch vs matched (bf16-operator) reference")

    # (b) check against the pure-f32 PyTorch-semantics reference
    #     (tolerance reflects the bf16 storage of the two large operators)
    ref = np.asarray(reference_forward(x, params), np.float64)
    if not np.allclose(out_np, ref, rtol=2e-2, atol=2e-2):
        raise SystemExit("Pallas decoder output mismatch vs f32 JAX reference")

    print("KERNEL_OK")
</pallas_src>

<mosaic_0001>
module attributes {stable_mosaic.version = 11 : i64} {
  func.func @_decoder_kernel(%arg0: memref<2x2xf32, #tpu.memory_space<vmem>>, %arg1: memref<2x32xf32, #tpu.memory_space<vmem>>, %arg2: memref<1x32xf32, #tpu.memory_space<vmem>>, %arg3: memref<32x128xf32, #tpu.memory_space<vmem>>, %arg4: memref<1x128xf32, #tpu.memory_space<vmem>>, %arg5: memref<128x64xf32, #tpu.memory_space<vmem>>, %arg6: memref<1x64xf32, #tpu.memory_space<vmem>>, %arg7: memref<64x288xf32, #tpu.memory_space<vmem>>, %arg8: memref<1x288xf32, #tpu.memory_space<vmem>>, %arg9: memref<288x2816xbf16, #tpu.memory_space<vmem>>, %arg10: memref<1x2816xf32, #tpu.memory_space<vmem>>, %arg11: memref<2816x256xbf16, #tpu.memory_space<vmem>>, %arg12: memref<1x256xf32, #tpu.memory_space<vmem>>, %arg13: memref<2x256xf32, #tpu.memory_space<vmem>>) attributes {dimension_semantics = [], scalar_prefetch = 0 : i64, scratch_operands = 0 : i64, tpu.core_type = #tpu.core_type<tc>} {
    %c0 = arith.constant 0 : index
    %c0_0 = arith.constant 0 : index
    %0 = vector.load %arg0[%c0, %c0_0] : memref<2x2xf32, #tpu.memory_space<vmem>>, vector<2x2xf32>
    %c0_1 = arith.constant 0 : index
    %c0_2 = arith.constant 0 : index
    %1 = vector.load %arg1[%c0_1, %c0_2] : memref<2x32xf32, #tpu.memory_space<vmem>>, vector<2x32xf32>
    %cst = arith.constant dense<0.000000e+00> : vector<2x32xf32>
    %2 = tpu.matmul %0, %1, %cst {dimension_numbers = #tpu.dot_dimension_numbers<[1], [0], [0], [1], [0, 0, 1, 1], [], []>} : vector<2x2xf32>, vector<2x32xf32>, vector<2x32xf32> -> vector<2x32xf32>
    %c0_3 = arith.constant 0 : index
    %c0_4 = arith.constant 0 : index
    %3 = vector.load %arg2[%c0_3, %c0_4] : memref<1x32xf32, #tpu.memory_space<vmem>>, vector<1x32xf32>
    %4 = vector.broadcast %3 : vector<1x32xf32> to vector<2x32xf32>
    %5 = arith.addf %2, %4 : vector<2x32xf32>
    %cst_5 = arith.constant 0.000000e+00 : f32
    %6 = vector.broadcast %cst_5 : f32 to vector<2x32xf32>
    %7 = arith.maximumf %5, %6 : vector<2x32xf32>
    %c0_6 = arith.constant 0 : index
    %c0_7 = arith.constant 0 : index
    %8 = vector.load %arg3[%c0_6, %c0_7] : memref<32x128xf32, #tpu.memory_space<vmem>>, vector<32x128xf32>
    %cst_8 = arith.constant dense<0.000000e+00> : vector<2x128xf32>
    %9 = tpu.matmul %7, %8, %cst_8 {dimension_numbers = #tpu.dot_dimension_numbers<[1], [0], [0], [1], [0, 0, 1, 1], [], []>} : vector<2x32xf32>, vector<32x128xf32>, vector<2x128xf32> -> vector<2x128xf32>
    %c0_9 = arith.constant 0 : index
    %c0_10 = arith.constant 0 : index
    %10 = vector.load %arg4[%c0_9, %c0_10] : memref<1x128xf32, #tpu.memory_space<vmem>>, vector<1x128xf32>
    %11 = vector.broadcast %10 : vector<1x128xf32> to vector<2x128xf32>
    %12 = arith.addf %9, %11 : vector<2x128xf32>
    %cst_11 = arith.constant 0.000000e+00 : f32
    %13 = vector.broadcast %cst_11 : f32 to vector<2x128xf32>
    %14 = arith.maximumf %12, %13 : vector<2x128xf32>
    %c0_12 = arith.constant 0 : index
    %c0_13 = arith.constant 0 : index
    %15 = vector.load %arg5[%c0_12, %c0_13] : memref<128x64xf32, #tpu.memory_space<vmem>>, vector<128x64xf32>
    %cst_14 = arith.constant dense<0.000000e+00> : vector<2x64xf32>
    %16 = tpu.matmul %14, %15, %cst_14 {dimension_numbers = #tpu.dot_dimension_numbers<[1], [0], [0], [1], [0, 0, 1, 1], [], []>} : vector<2x128xf32>, vector<128x64xf32>, vector<2x64xf32> -> vector<2x64xf32>
    %c0_15 = arith.constant 0 : index
    %c0_16 = arith.constant 0 : index
    %17 = vector.load %arg6[%c0_15, %c0_16] : memref<1x64xf32, #tpu.memory_space<vmem>>, vector<1x64xf32>
    %18 = vector.broadcast %17 : vector<1x64xf32> to vector<2x64xf32>
    %19 = arith.addf %16, %18 : vector<2x64xf32>
    %cst_17 = arith.constant 0.000000e+00 : f32
    %20 = vector.broadcast %cst_17 : f32 to vector<2x64xf32>
    %21 = arith.maximumf %19, %20 : vector<2x64xf32>
    %c0_18 = arith.constant 0 : index
    %c0_19 = arith.constant 0 : index
    %22 = vector.load %arg7[%c0_18, %c0_19] : memref<64x288xf32, #tpu.memory_space<vmem>>, vector<64x288xf32>
    %cst_20 = arith.constant dense<0.000000e+00> : vector<2x288xf32>
    %23 = tpu.matmul %21, %22, %cst_20 {dimension_numbers = #tpu.dot_dimension_numbers<[1], [0], [0], [1], [0, 0, 1, 1], [], []>} : vector<2x64xf32>, vector<64x288xf32>, vector<2x288xf32> -> vector<2x288xf32>
    %c0_21 = arith.constant 0 : index
    %c0_22 = arith.constant 0 : index
    %24 = vector.load %arg8[%c0_21, %c0_22] : memref<1x288xf32, #tpu.memory_space<vmem>>, vector<1x288xf32>
    %25 = vector.broadcast %24 : vector<1x288xf32> to vector<2x288xf32>
    %26 = arith.addf %23, %25 : vector<2x288xf32>
    %cst_23 = arith.constant 0.000000e+00 : f32
    %27 = vector.broadcast %cst_23 : f32 to vector<2x288xf32>
    %28 = arith.maximumf %26, %27 : vector<2x288xf32>
    %c0_24 = arith.constant 0 : index
    %c0_25 = arith.constant 0 : index
    %29 = vector.load %arg9[%c0_24, %c0_25] : memref<288x2816xbf16, #tpu.memory_space<vmem>>, vector<288x2816xbf16>
    %30 = arith.truncf %28 : vector<2x288xf32> to vector<2x288xbf16>
    %cst_26 = arith.constant dense<0.000000e+00> : vector<2x2816xf32>
    %31 = tpu.matmul %30, %29, %cst_26 {dimension_numbers = #tpu.dot_dimension_numbers<[1], [0], [0], [1], [0, 0, 1, 1], [], []>} : vector<2x288xbf16>, vector<288x2816xbf16>, vector<2x2816xf32> -> vector<2x2816xf32>
    %c0_27 = arith.constant 0 : index
    %c0_28 = arith.constant 0 : index
    %32 = vector.load %arg10[%c0_27, %c0_28] : memref<1x2816xf32, #tpu.memory_space<vmem>>, vector<1x2816xf32>
    %33 = vector.broadcast %32 : vector<1x2816xf32> to vector<2x2816xf32>
    %34 = arith.addf %31, %33 : vector<2x2816xf32>
    %cst_29 = arith.constant 0.000000e+00 : f32
    %35 = vector.broadcast %cst_29 : f32 to vector<2x2816xf32>
    %36 = arith.maximumf %34, %35 : vector<2x2816xf32>
    %c0_30 = arith.constant 0 : index
    %c0_31 = arith.constant 0 : index
    %37 = vector.load %arg11[%c0_30, %c0_31] : memref<2816x256xbf16, #tpu.memory_space<vmem>>, vector<2816x256xbf16>
    %38 = arith.truncf %36 : vector<2x2816xf32> to vector<2x2816xbf16>
    %cst_32 = arith.constant dense<0.000000e+00> : vector<2x256xf32>
    %39 = tpu.matmul %38, %37, %cst_32 {dimension_numbers = #tpu.dot_dimension_numbers<[1], [0], [0], [1], [0, 0, 1, 1], [], []>} : vector<2x2816xbf16>, vector<2816x256xbf16>, vector<2x256xf32> -> vector<2x256xf32>
    %c0_33 = arith.constant 0 : index
    %c0_34 = arith.constant 0 : index
    %40 = vector.load %arg12[%c0_33, %c0_34] : memref<1x256xf32, #tpu.memory_space<vmem>>, vector<1x256xf32>
    %41 = vector.broadcast %40 : vector<1x256xf32> to vector<2x256xf32>
    %42 = arith.addf %39, %41 : vector<2x256xf32>
    %c0_35 = arith.constant 0 : index
    %c0_36 = arith.constant 0 : index
    %43 = vector.load %arg13[%c0_35, %c0_36] : memref<2x256xf32, #tpu.memory_space<vmem>>, vector<2x256xf32>
    tpu.vector_store %arg13[%c0_35, %c0_36], %42 {strides = array<i32>} : memref<2x256xf32, #tpu.memory_space<vmem>>, vector<2x256xf32>,
    return
  }
}

</mosaic_0001>

<bundles_post_ra>
// kernel: decoder_forward.1
= control target key start
LH: loop header
LB: loop body
LE: loop exit
PB: predicated region body
PF: predicated region fallthrough
CT: control target
= control target key end

     0   :  { %18 = vsyncpa [#allocation3], 0  ;;  %s9639_s0 = inlined_call_operand.hbm [shape: f32[2,2], index: 0, kind: input, shape index: {}]   ;;  %s9640_s1 = inlined_call_operand.hbm [shape: f32[2,32], index: 1, kind: input, shape index: {}]   ;;  %s9641_s2 = inlined_call_operand.hbm [shape: f32[1,32], index: 2, kind: input, shape index: {}]   ;;  %s9642_s3 = inlined_call_operand.hbm [shape: f32[32,128], index: 3, kind: input, shape index: {}]   ;;  %s9643_s4 = inlined_call_operand.hbm [shape: f32[1,128], index: 4, kind: input, shape index: {}]   ;;  %s9644_s5 = inlined_call_operand.vmem [shape: f32[128,64], index: 5, kind: input, shape index: {}]   ;;  %s9645_s6 = inlined_call_operand.hbm [shape: f32[1,64], index: 6, kind: input, shape index: {}]   ;;  %s9646_s7 = inlined_call_operand.hbm [shape: f32[64,288], index: 7, kind: input, shape index: {}]   ;;  %s9647_s8 = inlined_call_operand.hbm [shape: f32[1,288], index: 8, kind: input, shape index: {}]   ;;  %s9648_s9 = inlined_call_operand.hbm [shape: bf16[288,2816], index: 9, kind: input, shape index: {}]   ;;  %s9649_s10 = inlined_call_operand.hbm [shape: f32[1,2816], index: 10, kind: input, shape index: {}]   ;;  %s9650_s11 = inlined_call_operand.hbm [shape: bf16[2816,256], index: 11, kind: input, shape index: {}]   ;;  %s9651_s12 = inlined_call_operand.hbm [shape: f32[1,256], index: 12, kind: input, shape index: {}]   ;;  %s9652_s13 = inlined_call_operand.vmem [shape: f32[2,256], index: 13, kind: output, shape index: {}]  }
   0x1   :  { %19 = vsyncpa [#allocation5], 0 }
   0x2   :  { %20 = vsyncpa [#allocation8], 0 }
   0x3   :  { %21 = vsyncpa [#allocation11], 0 }
   0x4   :  { %22 = vsyncpa [#allocation14], 0 }
   0x5   :  { %23 = vsyncpa [#allocation17], 0 }
   0x6   :  { %24 = vsyncpa [#allocation20], 0  ;;  %s9140_s25 = smov [#allocation4]   ;;  %s9141_s27 = smov [#allocation7]  }
   0x7   :  { %s41_s26 = sshll.u32 %s9140_s25, 4  ;;  %s60_s28 = sshll.u32 %s9141_s27, 4  ;;  %s42_s26 = int_to_ptr.vmem [resolvable:$true] %s41_s26  ;;  %s9232_s28 = int_to_ptr.vmem [resolvable:$true] %s60_s28 }
   0x8   :  { %s8862_s14 = scalar_lea.hbm %s9640_s1, 32 }
   0x9   :  { %p8863_p0 = scmp.ne.s32.totalorder %s9640_s1, %s8862_s14  ;;  %p8866_p1 = scmp.lt.u32.totalorder %s8862_s14, %s9640_s1 }
   0xb   :  { %p8868_p2 = pnand %p8866_p1, %p8863_p0 }
   0xd   :  { %8871 = shalt.err (!%p8868_p2)
}
   0xe   :  { %s8872_s19 = scalar_lea.vmem %s42_s26, 32  ;;  %p8877_p4 = scmp.lt.s32.totalorder %s42_s26, %s42_s26 }
   0xf   :  { %p8873_p3 = scmp.ne.s32.totalorder %s42_s26, %s8872_s19  ;;  %p8878_p5 = scmp.lt.s32.totalorder %s8872_s19, %s8872_s19 }
  0x11   :  { %p8879_p6 = por %p8878_p5, %p8877_p4 }
  0x13   :  { %p8880_p7 = pnand %p8879_p6, %p8873_p3 }
  0x15   :  { %8883 = shalt.err (!%p8880_p7)
}
  0x16   :  { %44 = dma.hbm_to_vmem [thread:$0]  %s9640_s1, 32, %s42_s26, [#allocation5]  }
  0x17   :  { %s8884_s24 = scalar_lea.hbm %s9642_s3, 512 }
  0x18   :  { %p8885_p8 = scmp.ne.s32.totalorder %s9642_s3, %s8884_s24  ;;  %p8888_p9 = scmp.lt.u32.totalorder %s8884_s24, %s9642_s3 }
  0x1a   :  { %p8890_p10 = pnand %p8888_p9, %p8885_p8 }
  0x1c   :  { %8893 = shalt.err (!%p8890_p10)
}
  0x1d   :  { %s8894_s14 = scalar_lea.vmem %s9232_s28, 512  ;;  %p8899_p12 = scmp.lt.s32.totalorder %s9232_s28, %s9232_s28 }
  0x1e   :  { %p8895_p11 = scmp.ne.s32.totalorder %s9232_s28, %s8894_s14  ;;  %p8900_p13 = scmp.lt.s32.totalorder %s8894_s14, %s8894_s14 }
  0x20   :  { %p8901_p0 = por %p8900_p13, %p8899_p12 }
  0x22   :  { %p8902_p1 = pnand %p8901_p0, %p8895_p11 }
  0x24   :  { %8905 = shalt.err (!%p8902_p1)
}
  0x25   :  { %s9142_s1 = smov 128   ;;  %s9143_s26 = smov 8  }
  0x26   :  { %66 = dma.hbm_to_vmem [thread:$0]  %s9642_s3, 512, %s9232_s28, [#allocation8], %s9142_s1, %s9142_s1, %s9143_s26  }
  0x27   :  { %s9144_s17 = smov [#allocation10]   ;;  %s9145_s19 = smov [#allocation13]  }
  0x28   :  { %s85_s18 = sshll.u32 %s9144_s17, 4  ;;  %s107_s20 = sshll.u32 %s9145_s19, 4  ;;  %s86_s18 = int_to_ptr.vmem [resolvable:$true] %s85_s18  ;;  %s108_s20 = int_to_ptr.vmem [resolvable:$true] %s107_s20 }
  0x29   :  { %s8906_s23 = scalar_lea.hbm %s9645_s6, 16 }
  0x2a   :  { %p8907_p2 = scmp.ne.s32.totalorder %s9645_s6, %s8906_s23  ;;  %p8910_p3 = scmp.lt.u32.totalorder %s8906_s23, %s9645_s6 }
  0x2c   :  { %p8912_p4 = pnand %p8910_p3, %p8907_p2 }
  0x2e   :  { %8915 = shalt.err (!%p8912_p4)
}
  0x2f   :  { %s8916_s3 = scalar_lea.vmem %s86_s18, 16  ;;  %s8920_s28 = scalar_lea.vmem %s86_s18, 32 }
  0x30   :  { %p8917_p5 = scmp.ne.s32.totalorder %s86_s18, %s8916_s3  ;;  %p8921_p6 = scmp.lt.s32.totalorder %s86_s18, %s86_s18 }
  0x31   :  { %p8922_p7 = scmp.lt.s32.totalorder %s8920_s28, %s8916_s3 }
  0x33   :  { %p8923_p8 = por %p8922_p7, %p8921_p6 }
  0x35   :  { %p8924_p9 = pnand %p8923_p8, %p8917_p5 }
  0x37   :  { %8927 = shalt.err (!%p8924_p9)
}
  0x38   :  { %88 = dma.hbm_to_vmem [thread:$0]  %s9645_s6, 16, %s86_s18, [#allocation11]  }
  0x39   :  { %s8928_s17 = scalar_lea.hbm %s9647_s8, 48 }
  0x3a   :  { %p8929_p10 = scmp.ne.s32.totalorder %s9647_s8, %s8928_s17  ;;  %p8932_p11 = scmp.lt.u32.totalorder %s8928_s17, %s9647_s8 }
  0x3c   :  { %p8934_p12 = pnand %p8932_p11, %p8929_p10 }
  0x3e   :  { %8937 = shalt.err (!%p8934_p12)
}
  0x3f   :  { %s8938_s24 = scalar_lea.vmem %s108_s20, 48  ;;  %s8942_s25 = scalar_lea.vmem %s108_s20, 64 }
  0x40   :  { %p8939_p13 = scmp.ne.s32.totalorder %s108_s20, %s8938_s24  ;;  %p8943_p0 = scmp.lt.s32.totalorder %s108_s20, %s108_s20 }
  0x41   :  { %p8944_p1 = scmp.lt.s32.totalorder %s8942_s25, %s8938_s24 }
  0x43   :  { %p8945_p2 = por %p8944_p1, %p8943_p0 }
  0x45   :  { %p8946_p3 = pnand %p8945_p2, %p8939_p13 }
  0x47   :  { %8949 = shalt.err (!%p8946_p3)
}
  0x48   :  { %110 = dma.hbm_to_vmem [thread:$0]  %s9647_s8, 48, %s108_s20, [#allocation14]  }
  0x49   :  { %s9146_s27 = smov [#allocation16]   ;;  %s9147_s3 = smov [#allocation2]  }
  0x4a   :  { %s129_s29 = sshll.u32 %s9146_s27, 4  ;;  %s31_s28 = sshll.u32 %s9147_s3, 4  ;;  %s130_s29 = int_to_ptr.vmem [resolvable:$true] %s129_s29  ;;  %s32_s28 = int_to_ptr.vmem [resolvable:$true] %s31_s28 }
  0x4b   :  { %s8950_s15 = scalar_lea.hbm %s9649_s10, 352 }
  0x4c   :  { %p8951_p4 = scmp.ne.s32.totalorder %s9649_s10, %s8950_s15  ;;  %p8954_p5 = scmp.lt.u32.totalorder %s8950_s15, %s9649_s10 }
  0x4e   :  { %p8956_p6 = pnand %p8954_p5, %p8951_p4 }
  0x50   :  { %8959 = shalt.err (!%p8956_p6)
}
  0x51   :  { %s8960_s8 = scalar_lea.vmem %s130_s29, 352  ;;  %p8965_p8 = scmp.lt.s32.totalorder %s130_s29, %s130_s29 }
  0x52   :  { %p8961_p7 = scmp.ne.s32.totalorder %s130_s29, %s8960_s8  ;;  %p8966_p9 = scmp.lt.s32.totalorder %s8960_s8, %s8960_s8 }
  0x54   :  { %p8967_p10 = por %p8966_p9, %p8965_p8 }
  0x56   :  { %p8968_p11 = pnand %p8967_p10, %p8961_p7 }
  0x58   :  { %8971 = shalt.err (!%p8968_p11)
}
  0x59   :  { %132 = dma.hbm_to_vmem [thread:$0]  %s9649_s10, 352, %s130_s29, [#allocation17]  }
  0x5a   :  { %s8972_s25 = scalar_lea.hbm %s9639_s0, 32 }
  0x5b   :  { %p8973_p12 = scmp.ne.s32.totalorder %s9639_s0, %s8972_s25  ;;  %p8976_p13 = scmp.lt.u32.totalorder %s8972_s25, %s9639_s0 }
  0x5d   :  { %p8978_p0 = pnand %p8976_p13, %p8973_p12 }
  0x5f   :  { %8981 = shalt.err (!%p8978_p0)
}
  0x60   :  { %s8982_s30 = scalar_lea.vmem %s32_s28, 32  ;;  %p8987_p2 = scmp.lt.s32.totalorder %s32_s28, %s32_s28 }
  0x61   :  { %p8983_p1 = scmp.ne.s32.totalorder %s32_s28, %s8982_s30  ;;  %p8988_p3 = scmp.lt.s32.totalorder %s8982_s30, %s8982_s30 }
  0x63   :  { %p8989_p4 = por %p8988_p3, %p8987_p2 }
  0x65   :  { %p8990_p5 = pnand %p8989_p4, %p8983_p1 }
  0x67   :  { %8993 = shalt.err (!%p8990_p5)
}
  0x68   :  { %34 = dma.hbm_to_vmem [thread:$0]  %s9639_s0, 32, %s32_s28, [#allocation3]  }
  0x69   :  { %s9148_s14 = smov [#allocation6]   ;;  %s9149_s16 = smov [#allocation9]  }
  0x6a   :  { %s51_s15 = sshll.u32 %s9148_s14, 4  ;;  %s73_s17 = sshll.u32 %s9149_s16, 4  ;;  %s52_s15 = int_to_ptr.vmem [resolvable:$true] %s51_s15  ;;  %s74_s17 = int_to_ptr.vmem [resolvable:$true] %s73_s17 }
  0x6b   :  { %s8994_s8 = scalar_lea.hbm %s9641_s2, 16 }
  0x6c   :  { %p8995_p6 = scmp.ne.s32.totalorder %s9641_s2, %s8994_s8  ;;  %p8998_p7 = scmp.lt.u32.totalorder %s8994_s8, %s9641_s2 }
  0x6e   :  { %p9000_p8 = pnand %p8998_p7, %p8995_p6 }
  0x70   :  { %9003 = shalt.err (!%p9000_p8)
}
  0x71   :  { %s9004_s0 = scalar_lea.vmem %s52_s15, 16  ;;  %s9008_s28 = scalar_lea.vmem %s52_s15, 32 }
  0x72   :  { %p9005_p9 = scmp.ne.s32.totalorder %s52_s15, %s9004_s0  ;;  %p9009_p10 = scmp.lt.s32.totalorder %s52_s15, %s52_s15 }
  0x73   :  { %p9010_p11 = scmp.lt.s32.totalorder %s9008_s28, %s9004_s0 }
  0x75   :  { %p9011_p12 = por %p9010_p11, %p9009_p10 }
  0x77   :  { %p9012_p13 = pnand %p9011_p12, %p9005_p9 }
  0x79   :  { %9015 = shalt.err (!%p9012_p13)
}
  0x7a   :  { %54 = dma.hbm_to_vmem [thread:$0]  %s9641_s2, 16, %s52_s15, [#allocation5]  }
  0x7b   :  { %s9016_s3 = scalar_lea.hbm %s9643_s4, 16 }
  0x7c   :  { %p9017_p0 = scmp.ne.s32.totalorder %s9643_s4, %s9016_s3  ;;  %p9020_p1 = scmp.lt.u32.totalorder %s9016_s3, %s9643_s4 }
  0x7e   :  { %p9022_p2 = pnand %p9020_p1, %p9017_p0 }
  0x80   :  { %9025 = shalt.err (!%p9022_p2)
}
  0x81   :  { %s9026_s16 = scalar_lea.vmem %s74_s17, 16  ;;  %s9030_s19 = scalar_lea.vmem %s74_s17, 32 }
  0x82   :  { %p9027_p3 = scmp.ne.s32.totalorder %s74_s17, %s9026_s16  ;;  %p9031_p4 = scmp.lt.s32.totalorder %s74_s17, %s74_s17 }
  0x83   :  { %p9032_p5 = scmp.lt.s32.totalorder %s9030_s19, %s9026_s16 }
  0x85   :  { %p9033_p6 = por %p9032_p5, %p9031_p4 }
  0x87   :  { %p9034_p7 = pnand %p9033_p6, %p9027_p3 }
  0x89   :  { %9037 = shalt.err (!%p9034_p7)
}
  0x8a   :  { %76 = dma.hbm_to_vmem [thread:$0]  %s9643_s4, 16, %s74_s17, [#allocation8]  }
  0x8b   :  { %s9150_s21 = smov [#allocation12]   ;;  %s9038_s23 = scalar_lea.hbm %s9646_s7, 3072 }
  0x8c   :  { %s94_s8 = sshll.u32 %s9150_s21, 4  ;;  %p9039_p8 = scmp.ne.s32.totalorder %s9646_s7, %s9038_s23  ;;  %s95_s8 = int_to_ptr.vmem [resolvable:$true] %s94_s8 }
  0x8d   :  { %p9042_p9 = scmp.lt.u32.totalorder %s9038_s23, %s9646_s7 }
  0x8f   :  { %p9044_p10 = pnand %p9042_p9, %p9039_p8 }
  0x91   :  { %9047 = shalt.err (!%p9044_p10)
}
  0x92   :  { %s9048_s6 = scalar_lea.vmem %s95_s8, 3072  ;;  %p9053_p12 = scmp.lt.s32.totalorder %s95_s8, %s95_s8 }
  0x93   :  { %p9049_p11 = scmp.ne.s32.totalorder %s95_s8, %s9048_s6  ;;  %p9054_p13 = scmp.lt.s32.totalorder %s9048_s6, %s9048_s6 }
  0x95   :  { %p9055_p0 = por %p9054_p13, %p9053_p12 }
  0x97   :  { %p9056_p1 = pnand %p9055_p0, %p9049_p11 }
  0x99   :  { %9059 = shalt.err (!%p9056_p1)
}
  0x9a   :  { %s9151_s4 = smov 384   ;;  %s9152_s17 = smov 24  }
  0x9b   :  { %100 = dma.hbm_to_vmem [thread:$0]  %s9646_s7, 3072, %s95_s8, [#allocation11], %s9151_s4, %s9151_s4, %s9152_s17  }
  0x9c   :  { %s9153_s3 = smov [#allocation15]   ;;  %s9060_s14 = scalar_lea.hbm %s9648_s9, 50688 }
  0x9d   :  { %s116_s30 = sshll.u32 %s9153_s3, 4  ;;  %p9061_p2 = scmp.ne.s32.totalorder %s9648_s9, %s9060_s14  ;;  %s117_s30 = int_to_ptr.vmem [resolvable:$true] %s116_s30 }
  0x9e   :  { %p9064_p3 = scmp.lt.u32.totalorder %s9060_s14, %s9648_s9 }
  0xa0   :  { %p9066_p4 = pnand %p9064_p3, %p9061_p2 }
  0xa2   :  { %9069 = shalt.err (!%p9066_p4)
}
  0xa3   :  { %s9070_s21 = scalar_lea.vmem %s117_s30, 50688  ;;  %p9075_p6 = scmp.lt.s32.totalorder %s117_s30, %s117_s30 }
  0xa4   :  { %p9071_p5 = scmp.ne.s32.totalorder %s117_s30, %s9070_s21  ;;  %p9076_p7 = scmp.lt.s32.totalorder %s9070_s21, %s9070_s21 }
  0xa6   :  { %p9077_p8 = por %p9076_p7, %p9075_p6 }
  0xa8   :  { %p9078_p9 = pnand %p9077_p8, %p9071_p5 }
  0xaa   :  { %9081 = shalt.err (!%p9078_p9)
}
  0xab   :  { %s9154_s7 = smov 1408   ;;  %s9155_s8 = smov 88  }
  0xac   :  { %122 = dma.hbm_to_vmem [thread:$0]  %s9648_s9, 50688, %s117_s30, [#allocation14], %s9154_s7, %s9154_s7, %s9155_s8  }
  0xad   :  { %s9156_s23 = smov [#allocation18]   ;;  %s9157_s0 = smov [#allocation19]  }
  0xae   :  { %s138_s24 = sshll.u32 %s9156_s23, 4  ;;  %s151_s28 = sshll.u32 %s9157_s0, 4  ;;  %s139_s24 = int_to_ptr.vmem [resolvable:$true] %s138_s24  ;;  %s152_s28 = int_to_ptr.vmem [resolvable:$true] %s151_s28 }
  0xaf   :  { %s9082_s4 = scalar_lea.hbm %s9650_s11, 45056 }
  0xb0   :  { %p9083_p10 = scmp.ne.s32.totalorder %s9650_s11, %s9082_s4  ;;  %p9086_p11 = scmp.lt.u32.totalorder %s9082_s4, %s9650_s11 }
  0xb2   :  { %p9088_p12 = pnand %p9086_p11, %p9083_p10 }
  0xb4   :  { %9091 = shalt.err (!%p9088_p12)
}
  0xb5   :  { %s9092_s9 = scalar_lea.vmem %s139_s24, 45056  ;;  %p9097_p0 = scmp.lt.s32.totalorder %s139_s24, %s139_s24 }
  0xb6   :  { %p9093_p13 = scmp.ne.s32.totalorder %s139_s24, %s9092_s9  ;;  %p9098_p1 = scmp.lt.s32.totalorder %s9092_s9, %s9092_s9 }
  0xb8   :  { %p9099_p2 = por %p9098_p1, %p9097_p0 }
  0xba   :  { %p9100_p3 = pnand %p9099_p2, %p9093_p13 }
  0xbc   :  { %9103 = shalt.err (!%p9100_p3)
}
  0xbd   :  { %144 = dma.hbm_to_vmem [thread:$0]  %s9650_s11, 45056, %s139_s24, [#allocation17], %s9142_s1, %s9142_s1, %s9143_s26  }
  0xbe   :  { %s9104_s16 = scalar_lea.hbm %s9651_s12, 32 }
  0xbf   :  { %p9105_p4 = scmp.ne.s32.totalorder %s9651_s12, %s9104_s16  ;;  %p9108_p5 = scmp.lt.u32.totalorder %s9104_s16, %s9651_s12 }
  0xc1   :  { %p9110_p6 = pnand %p9108_p5, %p9105_p4 }
  0xc3   :  { %9113 = shalt.err (!%p9110_p6)
}
  0xc4   :  { %s9114_s7 = scalar_lea.vmem %s152_s28, 32  ;;  %p9119_p8 = scmp.lt.s32.totalorder %s152_s28, %s152_s28 }
  0xc5   :  { %p9115_p7 = scmp.ne.s32.totalorder %s152_s28, %s9114_s7  ;;  %p9120_p9 = scmp.lt.s32.totalorder %s9114_s7, %s9114_s7 }
  0xc7   :  { %p9121_p10 = por %p9120_p9, %p9119_p8 }
  0xc9   :  { %p9122_p11 = pnand %p9121_p10, %p9115_p7 }
  0xcb   :  { %9125 = shalt.err (!%p9122_p11)
}
  0xcc   :  { %154 = dma.hbm_to_vmem [thread:$0]  %s9651_s12, 32, %s152_s28, [#allocation20]  }
  0xcd   :  { %9126 = dma.done.wait [#allocation3], 32  }
  0xce   :  { %9127 = vsyncadd [#allocation3], 4294967264 }
  0xcf   :  { %9128 = dma.done.wait [#allocation5], 48  }
  0xd0   :  { %9129 = vsyncadd [#allocation5], 4294967248 }
  0xd1   :  { %9130 = dma.done.wait [#allocation8], 528  }
  0xd2   :  { %9131 = vsyncadd [#allocation8], 4294966768 }
  0xd3   :  { %9132 = dma.done.wait [#allocation11], 3088  }
  0xd4   :  { %9133 = vsyncadd [#allocation11], 4294964208 }
  0xd5   :  { %9134 = dma.done.wait [#allocation14], 50736  }
  0xd6   :  { %9135 = vsyncadd [#allocation14], 4294916560 }
  0xd7   :  { %9136 = dma.done.wait [#allocation17], 45408  }
  0xd8   :  { %9137 = vsyncadd [#allocation17], 4294921888 }
  0xd9   :  { %9138 = dma.done.wait [#allocation20], 32  }
  0xda   :  { %9139 = vsyncadd [#allocation20], 4294967264  ;;  %v9158_v0 = vmov 0.0   ;;  %vm9159_vm0 = vmmov 0   ;;  %v9160_v1 = vmov 0.0|0.0   ;;  %vm205_vm1 = vcmask 1041408  }
  0xdb   :  { %7492 = vmatprep.subr.mxu0 %v9158_v0  ;;  %7494 = vmatprep.mubr.msk.f32.mxu0 %vm9159_vm0, %v9158_v0  ;;  %vm201_vm2 = vcmask 15360   ;;  %v193_v2 = vld [vmem:[#allocation4] sm:$0x3]  ;;  %v192_v3 = vld [vmem:[#allocation2] sm:$0x3]  ;;  %v280_v4 = vld [vmem:[#allocation7] sm:$0xff] }
  0xdc   :  { %7562 = vmatprep.subr.bf16.mxu1 %v9160_v1  ;;  %7505 = vmatprep.mubr.msk.f32.mxu1 %vm9159_vm0, %v9158_v0  ;;  %v281_v5 = vld [vmem:[#allocation7 + $0x8] sm:$0xff]  ;;  %v282_v7 = vld [vmem:[#allocation7 + $0x10] sm:$0xff]  ;;  %v283_v8 = vld [vmem:[#allocation7 + $0x18] sm:$0xff]  ;;  %vm291_vm3 = vcmask 261120   ;;  %vm501_vm4 = vcmask 523264  }
  0xdd   :  { %7493 = vmatpush3.msk.msra.mxu0 %vm205_vm1, %v193_v2  ;;  %v7563_v6 = vpack.c.bf16 %v281_v5, %v280_v4  ;;  %v7566_v9 = vpack.c.bf16 %v283_v8, %v282_v7  ;;  %v366_v10 = vld [vmem:[%s9644_s5] sm:$0xff]  ;;  %v367_v11 = vld [vmem:[%s9644_s5 + $0x8] sm:$0xff]  ;;  %v368_v12 = vld [vmem:[%s9644_s5 + $0x10] sm:$0xff] }
  0xde   :  { %7495 = vmatmul.mubr.msk.f32.vlgmr.msra.gmra.mrb[0].mxu0 %vm201_vm2, %v192_v3  ;;  %7568 = vmatprep.subr.bf16.mxu0 %v9160_v1  ;;  %v7569_v13 = vpack.c.bf16 %v367_v11, %v366_v10  ;;  %v369_v14 = vld [vmem:[%s9644_s5 + $0x18] sm:$0xff]  ;;  %v370_v16 = vld [vmem:[%s9644_s5 + $0x20] sm:$0xff]  ;;  %v371_v17 = vld [vmem:[%s9644_s5 + $0x28] sm:$0xff] }
  0xdf   :  { %7540 = vmatprep.mubr.msk.f32.mxu0 %vm9159_vm0, %v9158_v0  ;;  %7564 = vmatpush3.bf16.msra.mxu1 %v7563_v6  ;;  %v7572_v15 = vpack.c.bf16 %v369_v14, %v368_v12  ;;  %v372_v18 = vld [vmem:[%s9644_s5 + $0x30] sm:$0xff]  ;;  %v373_v19 = vld [vmem:[%s9644_s5 + $0x38] sm:$0xff]  ;;  %v7575_v20 = vpack.c.bf16 %v371_v17, %v370_v16  ;;  %v374_v21 = vld [vmem:[%s9644_s5 + $0x40] sm:$0xff] }
  0xe0   :  { %7565 = vmatprep.subr.bf16.mxu1 %v9160_v1  ;;  %7570 = vmatpush3.bf16.msra.mxu0 %v7569_v13  ;;  %v375_v22 = vld [vmem:[%s9644_s5 + $0x48] sm:$0xff]  ;;  %v7578_v23 = vpack.c.bf16 %v373_v19, %v372_v18  ;;  %v376_v24 = vld [vmem:[%s9644_s5 + $0x50] sm:$0xff]  ;;  %v377_v25 = vld [vmem:[%s9644_s5 + $0x58] sm:$0xff] }
  0xe1   :  { %7571 = vmatprep.subr.bf16.mxu0 %v9160_v1  ;;  %v7581_v26 = vpack.c.bf16 %v375_v22, %v374_v21  ;;  %v378_v27 = vld [vmem:[%s9644_s5 + $0x60] sm:$0xff]  ;;  %v379_v28 = vld [vmem:[%s9644_s5 + $0x68] sm:$0xff]  ;;  %v7584_v29 = vpack.c.bf16 %v377_v25, %v376_v24  ;;  %v380_v36 = vld [vmem:[%s9644_s5 + $0x70] sm:$0xff] }
  0xe2   :  { %v7587_v30 = vpack.c.bf16 %v379_v28, %v378_v27  ;;  %v6691_v31 = vld [vmem:[#allocation6] ss:$0 sm:$0xff]  ;;  %v381_v37 = vld [vmem:[%s9644_s5 + $0x78] sm:$0xff]  ;;  %v464_v40 = vld [vmem:[#allocation12 + $0x20] sm:$0xff] }
  0xe3   :  { %7567 = vmatpush3.bf16.msra.mxu1 %v7566_v9  ;;  %v7590_v38 = vpack.c.bf16 %v381_v37, %v380_v36  ;;  %v461_v39 = vld [vmem:[#allocation12 + $0x8] sm:$0xff]  ;;  %v460_v41 = vld [vmem:[#allocation12] sm:$0xff]  ;;  %v463_v43 = vld [vmem:[#allocation12 + $0x18] sm:$0xff] }
  0xe4   :  { %7573 = vmatpush3.bf16.msra.mxu0 %v7572_v15  ;;  %v7592_v42 = vpack.c.bf16 %v464_v40, %v461_v39  ;;  %v467_v44 = vld [vmem:[#allocation12 + $0x38] sm:$0xff]  ;;  %v470_v45 = vld [vmem:[#allocation12 + $0x50] sm:$0xff]  ;;  %v7594_v46 = vpack.c.bf16 %v463_v43, %v460_v41  ;;  %v469_v49 = vld [vmem:[#allocation12 + $0x48] sm:$0xff] }
  0xe5   :  { %7574 = vmatprep.subr.bf16.mxu0 %v9160_v1  ;;  %v7596_v47 = vpack.c.bf16 %v470_v45, %v467_v44  ;;  %v466_v48 = vld [vmem:[#allocation12 + $0x30] sm:$0xff]  ;;  %v473_v50 = vld [vmem:[#allocation12 + $0x68] sm:$0xff]  ;;  %v476_v51 = vld [vmem:[#allocation12 + $0x80] sm:$0xff] }
  0xe6   :  { %7593 = vmatprep.subr.bf16.mxu1 %v7592_v42  ;;  %v7598_v52 = vpack.c.bf16 %v469_v49, %v466_v48  ;;  %v7600_v53 = vpack.c.bf16 %v476_v51, %v473_v50  ;;  %v472_v54 = vld [vmem:[#allocation12 + $0x60] sm:$0xff]  ;;  %v475_v55 = vld [vmem:[#allocation12 + $0x78] sm:$0xff]  ;;  %v482_v63 = vld [vmem:[#allocation12 + $0xb0] sm:$0xff] }
  0xe7   :  { %v7602_v56 = vpack.c.bf16 %v475_v55, %v472_v54  ;;  %v6694_v57 = vld [vmem:[#allocation9] ss:$0 sm:$0xff]  ;;  %v478_v3 = vld [vmem:[#allocation12 + $0x90] sm:$0xff]  ;;  %v481_v4 = vld [vmem:[#allocation12 + $0xa8] sm:$0xff] }
  0xe8   :  { %7576 = vmatpush3.bf16.msra.mxu0 %v7575_v20  ;;  %v479_v62 = vld [vmem:[#allocation12 + $0x98] sm:$0xff]  ;;  %v7606_v5 = vpack.c.bf16 %v481_v4, %v478_v3  ;;  %v7742_v7 = vld [vmem:[#allocation15 + $0x4] ss:$88 sps:$4 sm:$0xff]   ;;  %v7743_v9 = vld [vmem:[#allocation15 + $0xb0] ss:$88 sps:$4 sm:$0xff]  }
  0xe9   :  { %7577 = vmatprep.subr.bf16.mxu0 %v9160_v1  ;;  %v7604_v2 = vpack.c.bf16 %v482_v63, %v479_v62  ;;  %v7740_v6 = vld [vmem:[#allocation15] ss:$88 sps:$4 sm:$0xff]   ;;  %v7745_v8 = vld [vmem:[#allocation15 + $0xb4] ss:$88 sps:$4 sm:$0xff]   ;;  %v7748_v10 = vld [vmem:[#allocation15 + $0x164] ss:$88 sps:$4 sm:$0xff]  }
  0xea   :  { %v7746_v11 = vld [vmem:[#allocation15 + $0x160] ss:$88 sps:$4 sm:$0xff]   ;;  %v7751_v12 = vld [vmem:[#allocation15 + $0x214] ss:$88 sps:$4 sm:$0xff]   ;;  %v7749_v13 = vld [vmem:[#allocation15 + $0x210] ss:$88 sps:$4 sm:$0xff]  }
  0xeb   :  { %v7754_v14 = vld [vmem:[#allocation15 + $0x2c4] ss:$88 sps:$4 sm:$0xff]   ;;  %v7752_v15 = vld [vmem:[#allocation15 + $0x2c0] ss:$88 sps:$4 sm:$0xff]   ;;  %v7757_v16 = vld [vmem:[#allocation15 + $0x374] ss:$88 sps:$4 sm:$0xff]  }
  0xec   :  { %7579 = vmatpush3.bf16.msra.mxu0 %v7578_v23  ;;  %v7755_v17 = vld [vmem:[#allocation15 + $0x370] ss:$88 sps:$4 sm:$0xff]   ;;  %v7760_v18 = vld [vmem:[#allocation15 + $0x424] ss:$88 sps:$4 sm:$0xff]   ;;  %v7758_v19 = vld [vmem:[#allocation15 + $0x420] ss:$88 sps:$4 sm:$0xff]  }
  0xed   :  { %7580 = vmatprep.subr.bf16.mxu0 %v9160_v1  ;;  %v7763_v20 = vld [vmem:[#allocation15 + $0x4d4] ss:$88 sps:$4 sm:$0xff]   ;;  %v7761_v21 = vld [vmem:[#allocation15 + $0x4d0] ss:$88 sps:$4 sm:$0xff]   ;;  %v7766_v22 = vld [vmem:[#allocation15 + $0x584] ss:$88 sps:$4 sm:$0xff]  }
  0xee   :  { %v7764_v23 = vld [vmem:[#allocation15 + $0x580] ss:$88 sps:$4 sm:$0xff]   ;;  %v7769_v24 = vld [vmem:[#allocation15 + $0x634] ss:$88 sps:$4 sm:$0xff]   ;;  %v7767_v25 = vld [vmem:[#allocation15 + $0x630] ss:$88 sps:$4 sm:$0xff]  }
  0xef   :  { %v7770_v27 = vld [vmem:[#allocation15 + $0x6e0] ss:$88 sps:$4 sm:$0xff]   ;;  %v7775_v28 = vld [vmem:[#allocation15 + $0x794] ss:$88 sps:$4 sm:$0xff]   ;;  %v465_v36 = vld [vmem:[#allocation12 + $0x28] sm:$0xff] }
  0xf0   :  { %7582 = vmatpush3.bf16.msra.mxu0 %v7581_v26  ;;  %v7772_v26 = vld [vmem:[#allocation15 + $0x6e4] ss:$88 sps:$4 sm:$0xff]   ;;  %v471_v43 = vld [vmem:[#allocation12 + $0x58] sm:$0xff]  ;;  %v474_v45 = vld [vmem:[#allocation12 + $0x70] sm:$0xff] }
  0xf1   :  { %7583 = vmatprep.subr.bf16.mxu0 %v9160_v1  ;;  %v468_v42 = vld [vmem:[#allocation12 + $0x40] sm:$0xff]  ;;  %v483_v49 = vld [vmem:[#allocation12 + $0xb8] sm:$0xff] }
  0xf2   :  { %v7612_v44 = vpack.c.bf16 %v471_v43, %v468_v42  ;;  %v480_v48 = vld [vmem:[#allocation12 + $0xa0] sm:$0xff]  ;;  %v7835_v43 = vld [vmem:[#allocation15 + $0xbec] ss:$88 sps:$4 sm:$0xff]  }
  0xf3   :  { %v7618_v50 = vpack.c.bf16 %v483_v49, %v480_v48  ;;  %v7784_v51 = vld [vmem:[#allocation15 + $0x9a4] ss:$88 sps:$4 sm:$0xff]   ;;  %v7791_v55 = vld [vmem:[#allocation15 + $0xb08] ss:$88 sps:$4 sm:$0xff]  }
  0xf4   :  { %7585 = vmatpush3.bf16.msra.mxu0 %v7584_v29  ;;  %v7773_v29 = vld [vmem:[#allocation15 + $0x790] ss:$88 sps:$4 sm:$0xff]   ;;  %v7790_v54 = vld [vmem:[#allocation15 + $0xb04] ss:$88 sps:$4 sm:$0xff]  }
  0xf5   :  { %7586 = vmatprep.subr.bf16.mxu0 %v9160_v1  ;;  %v484_v63 = vld [vmem:[#allocation13] sm:$0x7]  ;;  %v7836_v48 = vld [vmem:[#allocation15 + $0x428] ss:$88 sps:$4 sm:$0xff]  }
  0xf6   :  { %v7832_v42 = vld [vmem:[#allocation15 + $0x37c] ss:$88 sps:$4 sm:$0xff]   ;;  %v7839_v49 = vld [vmem:[#allocation15 + $0xb48] ss:$88 sps:$4 sm:$0xff]  }
  0xf8   :  { %7588 = vmatpush3.bf16.msra.mxu0 %v7587_v30  ;;  %v7778_v30 = vld [vmem:[#allocation15 + $0x844] ss:$88 sps:$4 sm:$0xff]  }
  0xf9   :  { %7589 = vmatprep.subr.bf16.mxu0 %v9160_v1 }
  0xfc   :  { %7591 = vmatpush3.bf16.msra.mxu0 %v7590_v38 }
  0xfd   :  { %3147 = vmatprep.subr.bf16.mxu0 %v7742_v7 }
 0x1b1   :  { %v275_v32 = vpop.f32.mrb[0].mxu0 }
 0x1b2   :  { %v276_v33 = vadd.f32 %v6691_v31, %v275_v32  ;;  %v7496_v34 = vpop.f32.mrb[1].mxu0  ;;  %v7776_v31 = vld [vmem:[#allocation15 + $0x840] ss:$88 sps:$4 sm:$0xff]   ;;  %v7781_v32 = vld [vmem:[#allocation15 + $0x8f4] ss:$88 sps:$4 sm:$0xff]  }
 0x1b3   :  { %v6696_v34 = vld [vmem:[#allocation10] ss:$0 sm:$0xff] }
 0x1b4   :  { %v279_v35 = vmax.f32 %v276_v33, 0.0  ;;  %v7779_v33 = vld [vmem:[#allocation15 + $0x8f0] ss:$88 sps:$4 sm:$0xff]  }
 0x1b6   :  { %7506 = vmatmul.mubr.msk.f32.vlgmr.msra.gmra.mrb[0].mxu1 %vm291_vm3, %v279_v35  ;;  %v462_v35 = vld [vmem:[#allocation12 + $0x10] sm:$0xff] }
 0x1b7   :  { %569 = vmatprep.mubr.f32.mxu1 %v9158_v0  ;;  %7595 = vmatpush1.bf16.msra.mxu1 %v7594_v46  ;;  %v7609_v40 = vpack.c.bf16 %v465_v36, %v462_v35  ;;  %v477_v46 = vld [vmem:[#allocation12 + $0x88] sm:$0xff]  ;;  %v7823_v35 = vld [vmem:[#allocation15 + $0xbdc] ss:$88 sps:$4 sm:$0xff]   ;;  %v7818_v36 = vld [vmem:[#allocation15 + $0x218] ss:$88 sps:$4 sm:$0xff]  }
 0x1b8   :  { %7597 = vmatprep.subr.bf16.mxu1 %v7596_v47  ;;  %v7615_v47 = vpack.c.bf16 %v477_v46, %v474_v45  ;;  %v7833_v45 = vld [vmem:[#allocation15 + $0xbe8] ss:$88 sps:$4 sm:$0xff]   ;;  %v7838_v46 = vld [vmem:[#allocation15 + $0x42c] ss:$88 sps:$4 sm:$0xff]  }
 0x1bb   :  { %7599 = vmatpush1.bf16.msra.mxu1 %v7598_v52  ;;  %v7782_v52 = vld [vmem:[#allocation15 + $0x9a0] ss:$88 sps:$4 sm:$0xff]  }
 0x1bc   :  { %7601 = vmatprep.subr.bf16.mxu1 %v7600_v53  ;;  %v7785_v53 = vld [vmem:[#allocation15 + $0xa50] ss:$88 sps:$4 sm:$0xff]  }
 0x1bf   :  { %7603 = vmatpush1.bf16.msra.mxu1 %v7602_v56  ;;  %v7793_v56 = vld [vmem:[#allocation15 + $0xb0c] ss:$88 sps:$4 sm:$0xff]  }
 0x1c0   :  { %7605 = vmatprep.subr.bf16.mxu1 %v7604_v2 }
 0x1c3   :  { %7607 = vmatpush1.bf16.msra.mxu1 %v7606_v5 }
 0x1c4   :  { %7608 = vmatprep.subr.bf16.mxu1 %v9160_v1 }
 0x289   :  { %v361_v58 = vpop.f32.mrb[0].mxu1 }
 0x28a   :  { %v362_v59 = vadd.f32 %v6694_v57, %v361_v58  ;;  %v7507_v60 = vpop.f32.mrb[1].mxu1  ;;  %v7799_v57 = vld [vmem:[#allocation15 + $0xbbc] ss:$88 sps:$4 sm:$0xff]   ;;  %v7797_v58 = vld [vmem:[#allocation15 + $0xbb8] ss:$88 sps:$4 sm:$0xff]  }
 0x28b   :  { %v486_v60 = vlaneseq }
 0x28c   :  { %v365_v61 = vmax.f32 %v362_v59, 0.0  ;;  %v7805_v59 = vld [vmem:[#allocation15 + $0xb1c] ss:$88 sps:$4 sm:$0xff]  }
 0x28e   :  { %7541 = vmatmul.mubr.f32.vlgmr.msra.gmra.mrb[2].mxu0 %v365_v61  ;;  %v9465_v61 = vshrl.u32 %v486_v60, 7  ;;  %v7856_v60 = vld [vmem:[#allocation15 + $0x6ec] ss:$88 sps:$4 sm:$0xff]  }
 0x28f   :  { %3148 = vmatpush1.bf16.msra.mxu0 %v7740_v6 }
 0x290   :  { %3149 = vmatprep.subr.bf16.mxu0 %v7745_v8  ;;  %v9468_v62 = vsub.s32 0, %v9465_v61  ;;  %v9471_v2 = vsub.s32 1, %v9465_v61 }
 0x292   :  { %v489_v3 = vrot.slane %v484_v63, %v9468_v62  ;;  %v493_v4 = vrot.slane %v484_v63, %v9471_v2 }
 0x293   :  { %3150 = vmatpush1.bf16.msra.mxu0 %v7743_v9 }
 0x294   :  { %3151 = vmatprep.subr.bf16.mxu0 %v7748_v10 }
 0x297   :  { %3152 = vmatpush1.bf16.msra.mxu0 %v7746_v11 }
 0x298   :  { %3153 = vmatprep.subr.bf16.mxu0 %v7751_v12  ;;  %v7788_v12 = vld [vmem:[#allocation15 + $0xb00] ss:$88 sps:$4 sm:$0xff]  }
 0x29b   :  { %3154 = vmatpush1.bf16.msra.mxu0 %v7749_v13 }
 0x29c   :  { %3155 = vmatprep.subr.bf16.mxu0 %v7754_v14  ;;  %v7796_v14 = vld [vmem:[#allocation15 + $0xbb4] ss:$88 sps:$4 sm:$0xff]  }
 0x29f   :  { %3156 = vmatpush1.bf16.msra.mxu0 %v7752_v15  ;;  %v9482_v15 = vsub.s32 2, %v9465_v61 }
 0x2a0   :  { %3157 = vmatprep.subr.bf16.mxu0 %v7757_v16  ;;  %v7794_v16 = vld [vmem:[#allocation15 + $0xbb0] ss:$88 sps:$4 sm:$0xff]  }
 0x2a3   :  { %3158 = vmatpush1.bf16.msra.mxu0 %v7755_v17  ;;  %v7802_v17 = vld [vmem:[#allocation15 + $0xc] ss:$88 sps:$4 sm:$0xff]  }
 0x2a4   :  { %3159 = vmatprep.subr.bf16.mxu0 %v7760_v18  ;;  %v497_v18 = vrot.slane %v484_v63, %v9482_v15  ;;  %v7947_v63 = vld [vmem:[#allocation18 + $0x10] ss:$8 sps:$4 sm:$0xff]  }
 0x2a7   :  { %3160 = vmatpush1.bf16.msra.mxu0 %v7758_v19 }
 0x2a8   :  { %3161 = vmatprep.subr.bf16.mxu0 %v7763_v20 }
 0x2ab   :  { %3162 = vmatpush1.bf16.msra.mxu0 %v7761_v21 }
 0x2ac   :  { %3163 = vmatprep.subr.bf16.mxu0 %v7766_v22 }
 0x2af   :  { %3164 = vmatpush1.bf16.msra.mxu0 %v7764_v23  ;;  %v7800_v23 = vld [vmem:[#allocation15 + $0x8] ss:$88 sps:$4 sm:$0xff]  }
 0x2b0   :  { %3165 = vmatprep.subr.bf16.mxu0 %v7769_v24 }
 0x2b3   :  { %3166 = vmatpush1.bf16.msra.mxu0 %v7767_v25  ;;  %v7803_v25 = vld [vmem:[#allocation15 + $0xb18] ss:$88 sps:$4 sm:$0xff]  }
 0x2b4   :  { %3167 = vmatprep.subr.bf16.mxu0 %v7772_v26  ;;  %v7808_v26 = vld [vmem:[#allocation15 + $0xbc] ss:$88 sps:$4 sm:$0xff]  }
 0x2b7   :  { %3168 = vmatpush1.bf16.msra.mxu0 %v7770_v27  ;;  %v7811_v27 = vld [vmem:[#allocation15 + $0xbcc] ss:$88 sps:$4 sm:$0xff]  }
 0x2b8   :  { %3169 = vmatprep.subr.bf16.mxu0 %v7775_v28  ;;  %v7806_v28 = vld [vmem:[#allocation15 + $0xb8] ss:$88 sps:$4 sm:$0xff]  }
 0x2bb   :  { %3170 = vmatpush1.bf16.msra.mxu0 %v7773_v29  ;;  %v7809_v29 = vld [vmem:[#allocation15 + $0xbc8] ss:$88 sps:$4 sm:$0xff]  }
 0x2bc   :  { %3171 = vmatprep.subr.bf16.mxu0 %v7778_v30  ;;  %v7814_v30 = vld [vmem:[#allocation15 + $0x16c] ss:$88 sps:$4 sm:$0xff]  }
 0x2bf   :  { %3172 = vmatpush1.bf16.msra.mxu0 %v7776_v31  ;;  %v7817_v31 = vld [vmem:[#allocation15 + $0xb2c] ss:$88 sps:$4 sm:$0xff]  }
 0x2c0   :  { %3173 = vmatprep.subr.bf16.mxu0 %v7781_v32  ;;  %v7812_v32 = vld [vmem:[#allocation15 + $0x168] ss:$88 sps:$4 sm:$0xff]  }
 0x2c3   :  { %3174 = vmatpush1.bf16.msra.mxu0 %v7779_v33  ;;  %v7815_v33 = vld [vmem:[#allocation15 + $0xb28] ss:$88 sps:$4 sm:$0xff]  }
 0x2c4   :  { %3175 = vmatprep.subr.bf16.mxu0 %v7784_v51  ;;  %v7847_v51 = vld [vmem:[#allocation15 + $0xbfc] ss:$88 sps:$4 sm:$0xff]  }
 0x2c7   :  { %3176 = vmatpush1.bf16.msra.mxu0 %v7782_v52  ;;  %v7842_v52 = vld [vmem:[#allocation15 + $0x4d8] ss:$88 sps:$4 sm:$0xff]  }
 0x361   :  { %v455_v37 = vpop.f32.mrb[2].mxu0 }
 0x362   :  { %v456_v38 = vadd.f32 %v6696_v34, %v455_v37  ;;  %v7542_v39 = vpop.f32.mrb[3].mxu0  ;;  %v7820_v34 = vld [vmem:[#allocation15 + $0x21c] ss:$88 sps:$4 sm:$0xff]   ;;  %v7821_v37 = vld [vmem:[#allocation15 + $0xbd8] ss:$88 sps:$4 sm:$0xff]  }
 0x363   :  { %v7829_v39 = vld [vmem:[#allocation15 + $0xb3c] ss:$88 sps:$4 sm:$0xff]  }
 0x364   :  { %v459_v41 = vmax.f32 %v456_v38, 0.0  ;;  %v7826_v38 = vld [vmem:[#allocation15 + $0x2cc] ss:$88 sps:$4 sm:$0xff]  }
 0x366   :  { %6697 = vmatmul.mubr.msk.f32.vlgmr.msra.gmra.mrb[2].mxu1 %vm501_vm4, %v459_v41 }
 0x367   :  { %7610 = vmatpush3.bf16.msra.mxu1 %v7609_v40  ;;  %7559 = vmatprep.mubr.msk.f32.mxu1 %vm9159_vm0, %v9158_v0  ;;  %v7787_v0 = vld [vmem:[#allocation15 + $0xa54] ss:$88 sps:$4 sm:$0xff]   ;;  %v7824_v40 = vld [vmem:[#allocation15 + $0x2c8] ss:$88 sps:$4 sm:$0xff]  }
 0x368   :  { %7611 = vmatprep.subr.bf16.mxu1 %v9160_v1  ;;  %3177 = vmatprep.subr.bf16.mxu0 %v7787_v0  ;;  %v7845_v0 = vld [vmem:[#allocation15 + $0xbf8] ss:$88 sps:$4 sm:$0xff]  }
 0x369   :  { %3178 = vmatpush1.bf16.msra.mxu0 %v7785_v53  ;;  %v7850_v53 = vld [vmem:[#allocation15 + $0x58c] ss:$88 sps:$4 sm:$0xff]  }
 0x36a   :  { %3188 = vmatprep.subr.bf16.mxu0 %v7790_v54  ;;  %v7943_v54 = vld [vmem:[#allocation18 + $0x4] ss:$8 sps:$4 sm:$0xff]  }
 0x36b   :  { %7613 = vmatpush3.bf16.msra.mxu1 %v7612_v44  ;;  %v7830_v44 = vld [vmem:[#allocation15 + $0x378] ss:$88 sps:$4 sm:$0xff]  }
 0x36c   :  { %7614 = vmatprep.subr.bf16.mxu1 %v9160_v1 }
 0x36f   :  { %7616 = vmatpush3.bf16.msra.mxu1 %v7615_v47  ;;  %v7841_v47 = vld [vmem:[#allocation15 + $0xb4c] ss:$88 sps:$4 sm:$0xff]  }
 0x370   :  { %7617 = vmatprep.subr.bf16.mxu1 %v9160_v1  ;;  %v9161_v1 = vmov 0  }
 0x373   :  { %7619 = vmatpush3.bf16.msra.mxu1 %v7618_v50  ;;  %v7844_v50 = vld [vmem:[#allocation15 + $0x4dc] ss:$88 sps:$4 sm:$0xff]  }
 0x374   :  { %3270 = vmatprep.subr.bf16.mxu1 %v7793_v56  ;;  %v7853_v56 = vld [vmem:[#allocation15 + $0x63c] ss:$88 sps:$4 sm:$0xff]  }
 0x376   :  { %7560 = vmatmul.mubr.msk.f32.vlgmr.msra.gmra.mrb[4].mxu1 %vm501_vm4, %v459_v41  ;;  %v7827_v41 = vld [vmem:[#allocation15 + $0xb38] ss:$88 sps:$4 sm:$0xff]  }
 0x377   :  { %3271 = vmatpush1.bf16.msra.mxu1 %v7791_v55  ;;  %3302 = vmatprep.mubr.bf16.mxu1 %v9161_v1  ;;  %v7848_v55 = vld [vmem:[#allocation15 + $0x588] ss:$88 sps:$4 sm:$0xff]  }
 0x378   :  { %3272 = vmatprep.subr.bf16.mxu1 %v7799_v57  ;;  %v7941_v57 = vld [vmem:[#allocation18] ss:$8 sps:$4 sm:$0xff]  }
 0x37b   :  { %3273 = vmatpush1.bf16.msra.mxu1 %v7797_v58  ;;  %v7949_v58 = vld [vmem:[#allocation18 + $0x14] ss:$8 sps:$4 sm:$0xff]  }
 0x37c   :  { %3434 = vmatprep.subr.bf16.mxu1 %v7805_v59  ;;  %v7851_v59 = vld [vmem:[#allocation15 + $0x638] ss:$88 sps:$4 sm:$0xff]  }
 0x439   :  { %v571_v5 = vpop.f32.mrb[2].mxu1 }
 0x43a   :  { %v572_v6 = vadd.f32 %v571_v5, %v489_v3  ;;  %v573_v7 = vpop.f32.mrb[3].mxu1  ;;  %v7955_v3 = vld [vmem:[#allocation18 + $0x24] ss:$8 sps:$4 sm:$0xff]  }
 0x43b   :  { %v574_v8 = vadd.f32 %v573_v7, %v493_v4  ;;  %v7854_v4 = vld [vmem:[#allocation15 + $0x6e8] ss:$88 sps:$4 sm:$0xff]   ;;  %v7859_v5 = vld [vmem:[#allocation15 + $0x79c] ss:$88 sps:$4 sm:$0xff]  }
 0x43c   :  { %v646_v9 = vmax.f32 %v572_v6, 0.0  ;;  %v7953_v6 = vld [vmem:[#allocation18 + $0x20] ss:$8 sps:$4 sm:$0xff]   ;;  %v7961_v7 = vld [vmem:[#allocation18 + $0x34] ss:$8 sps:$4 sm:$0xff]  }
 0x43d   :  { %v647_v10 = vmax.f32 %v574_v8, 0.0  ;;  %v7857_v8 = vld [vmem:[#allocation15 + $0x798] ss:$88 sps:$4 sm:$0xff]  }
 0x43e   :  { %v9477_v13 = vpack.c.bf16 %v646_v9, %v646_v9  ;;  %v7862_v9 = vld [vmem:[#allocation15 + $0x84c] ss:$88 sps:$4 sm:$0xff]  }
 0x43f   :  { %v9475_v11 = vpack.c.bf16 %v647_v10, %v647_v10  ;;  %v7959_v10 = vld [vmem:[#allocation18 + $0x30] ss:$8 sps:$4 sm:$0xff]  }
 0x441   :  { %3179 = vmatprep.mubr.bf16.mxu0 %v9475_v11 }
 0x442   :  { %3180 = vmatmul.mubr.bf16.vlgmr.msra.gmra.mrb[4].mxu0 %v9477_v13 }
 0x443   :  { %3189 = vmatpush1.bf16.msra.mxu0 %v7788_v12  ;;  %3220 = vmatprep.mubr.bf16.mxu0 %v9161_v1  ;;  %v7967_v12 = vld [vmem:[#allocation18 + $0x44] ss:$8 sps:$4 sm:$0xff]  }
 0x444   :  { %3190 = vmatprep.subr.bf16.mxu0 %v7796_v14  ;;  %v7860_v14 = vld [vmem:[#allocation15 + $0x848] ss:$88 sps:$4 sm:$0xff]  }
 0x447   :  { %3191 = vmatpush1.bf16.msra.mxu0 %v7794_v16  ;;  %v7865_v16 = vld [vmem:[#allocation15 + $0x8fc] ss:$88 sps:$4 sm:$0xff]  }
 0x448   :  { %3229 = vmatprep.subr.bf16.mxu0 %v7802_v17  ;;  %v7965_v17 = vld [vmem:[#allocation18 + $0x40] ss:$8 sps:$4 sm:$0xff]  }
 0x449   :  { %v642_v19 = vpop.f32.mrb[4].mxu1 }
 0x44a   :  { %v643_v20 = vadd.f32 %v642_v19, %v497_v18  ;;  %v7561_v21 = vpop.f32.mrb[5].mxu1  ;;  %v7973_v18 = vld [vmem:[#allocation18 + $0x54] ss:$8 sps:$4 sm:$0xff]  }
 0x44b   :  { %v7863_v19 = vld [vmem:[#allocation15 + $0x8f8] ss:$88 sps:$4 sm:$0xff]  }
 0x44c   :  { %v648_v22 = vmax.f32 %v643_v20, 0.0  ;;  %v7868_v20 = vld [vmem:[#allocation15 + $0x9ac] ss:$88 sps:$4 sm:$0xff]  }
 0x44d   :  { %v7971_v21 = vld [vmem:[#allocation18 + $0x50] ss:$8 sps:$4 sm:$0xff]  }
 0x44e   :  { %v9486_v24 = vpack.c.bf16 %v648_v22, %v648_v22  ;;  %v7979_v22 = vld [vmem:[#allocation18 + $0x64] ss:$8 sps:$4 sm:$0xff]  }
 0x450   :  { %7095 = vmatmul.mubr.msk.bf16.vlgmr.msra.gmra.mrb[4].mxu0 %vm291_vm3, %v9486_v24  ;;  %7096 = vmatmul.mubr.msk.bf16.vlgmr.msra.gmra.mrb[8].mxu1 %vm291_vm3, %v9486_v24 }
 0x451   :  { %3230 = vmatpush1.bf16.msra.mxu0 %v7800_v23  ;;  %3261 = vmatprep.mubr.bf16.mxu0 %v9475_v11  ;;  %v7866_v23 = vld [vmem:[#allocation15 + $0x9a8] ss:$88 sps:$4 sm:$0xff]  }
 0x452   :  { %3435 = vmatpush1.bf16.msra.mxu1 %v7803_v25  ;;  %3231 = vmatprep.subr.bf16.mxu0 %v7808_v26  ;;  %v7871_v25 = vld [vmem:[#allocation15 + $0xa5c] ss:$88 sps:$4 sm:$0xff]  }
 0x453   :  { %3436 = vmatprep.subr.bf16.mxu1 %v7811_v27  ;;  %3466 = vmatprep.mubr.bf16.mxu1 %v9161_v1  ;;  %v7977_v26 = vld [vmem:[#allocation18 + $0x60] ss:$8 sps:$4 sm:$0xff]   ;;  %v7985_v27 = vld [vmem:[#allocation18 + $0x74] ss:$8 sps:$4 sm:$0xff]  }
 0x455   :  { %3232 = vmatpush1.bf16.msra.mxu0 %v7806_v28  ;;  %v7869_v28 = vld [vmem:[#allocation15 + $0xa58] ss:$88 sps:$4 sm:$0xff]  }
 0x456   :  { %3437 = vmatpush1.bf16.msra.mxu1 %v7809_v29  ;;  %3233 = vmatprep.subr.bf16.mxu0 %v7814_v30  ;;  %v7874_v29 = vld [vmem:[#allocation15 + $0x14] ss:$88 sps:$4 sm:$0xff]  }
 0x457   :  { %3598 = vmatprep.subr.bf16.mxu1 %v7817_v31  ;;  %v7983_v30 = vld [vmem:[#allocation18 + $0x70] ss:$8 sps:$4 sm:$0xff]   ;;  %v7991_v31 = vld [vmem:[#allocation18 + $0x84] ss:$8 sps:$4 sm:$0xff]  }
 0x459   :  { %3234 = vmatpush1.bf16.msra.mxu0 %v7812_v32  ;;  %7098 = vmatmul.mubr.msk.bf16.vlgmr.msra.gmra.mrb[12].mxu1 %vm291_vm3, %v9486_v24  ;;  %v7872_v32 = vld [vmem:[#allocation15 + $0x10] ss:$88 sps:$4 sm:$0xff]  }
 0x45a   :  { %3599 = vmatpush1.bf16.msra.mxu1 %v7815_v33  ;;  %3235 = vmatprep.subr.bf16.mxu0 %v7820_v34  ;;  %v7877_v33 = vld [vmem:[#allocation15 + $0xc4] ss:$88 sps:$4 sm:$0xff]  }
 0x45b   :  { %3600 = vmatprep.subr.bf16.mxu1 %v7823_v35  ;;  %3630 = vmatprep.mubr.bf16.mxu1 %v9161_v1  ;;  %v7989_v34 = vld [vmem:[#allocation18 + $0x80] ss:$8 sps:$4 sm:$0xff]   ;;  %v7997_v35 = vld [vmem:[#allocation18 + $0x94] ss:$8 sps:$4 sm:$0xff]  }
 0x45d   :  { %3236 = vmatpush1.bf16.msra.mxu0 %v7818_v36  ;;  %v7875_v36 = vld [vmem:[#allocation15 + $0xc0] ss:$88 sps:$4 sm:$0xff]  }
 0x45e   :  { %3601 = vmatpush1.bf16.msra.mxu1 %v7821_v37  ;;  %3237 = vmatprep.subr.bf16.mxu0 %v7826_v38  ;;  %v7880_v37 = vld [vmem:[#allocation15 + $0x174] ss:$88 sps:$4 sm:$0xff]  }
 0x45f   :  { %3762 = vmatprep.subr.bf16.mxu1 %v7829_v39  ;;  %v7995_v38 = vld [vmem:[#allocation18 + $0x90] ss:$8 sps:$4 sm:$0xff]   ;;  %v8003_v39 = vld [vmem:[#allocation18 + $0xa4] ss:$8 sps:$4 sm:$0xff]  }
 0x461   :  { %3238 = vmatpush1.bf16.msra.mxu0 %v7824_v40  ;;  %7100 = vmatmul.mubr.msk.bf16.vlgmr.msra.gmra.mrb[16].mxu1 %vm291_vm3, %v9486_v24  ;;  %v7878_v40 = vld [vmem:[#allocation15 + $0x170] ss:$88 sps:$4 sm:$0xff]  }
 0x462   :  { %3763 = vmatpush1.bf16.msra.mxu1 %v7827_v41  ;;  %3239 = vmatprep.subr.bf16.mxu0 %v7832_v42  ;;  %v7883_v41 = vld [vmem:[#allocation15 + $0x224] ss:$88 sps:$4 sm:$0xff]  }
 0x463   :  { %3764 = vmatprep.subr.bf16.mxu1 %v7835_v43  ;;  %3794 = vmatprep.mubr.bf16.mxu1 %v9161_v1  ;;  %v8001_v42 = vld [vmem:[#allocation18 + $0xa0] ss:$8 sps:$4 sm:$0xff]   ;;  %v8009_v43 = vld [vmem:[#allocation18 + $0xb4] ss:$8 sps:$4 sm:$0xff]  }
 0x465   :  { %3240 = vmatpush1.bf16.msra.mxu0 %v7830_v44  ;;  %v7881_v44 = vld [vmem:[#allocation15 + $0x220] ss:$88 sps:$4 sm:$0xff]  }
 0x466   :  { %3765 = vmatpush1.bf16.msra.mxu1 %v7833_v45  ;;  %3241 = vmatprep.subr.bf16.mxu0 %v7838_v46  ;;  %v7886_v45 = vld [vmem:[#allocation15 + $0x2d4] ss:$88 sps:$4 sm:$0xff]  }
 0x467   :  { %3926 = vmatprep.subr.bf16.mxu1 %v7841_v47  ;;  %v8007_v46 = vld [vmem:[#allocation18 + $0xb0] ss:$8 sps:$4 sm:$0xff]   ;;  %v8015_v47 = vld [vmem:[#allocation18 + $0xc4] ss:$8 sps:$4 sm:$0xff]  }
 0x469   :  { %3242 = vmatpush1.bf16.msra.mxu0 %v7836_v48  ;;  %7102 = vmatmul.mubr.msk.bf16.vlgmr.msra.gmra.mrb[20].mxu1 %vm291_vm3, %v9486_v24  ;;  %v7884_v48 = vld [vmem:[#allocation15 + $0x2d0] ss:$88 sps:$4 sm:$0xff]  }
 0x46a   :  { %3927 = vmatpush1.bf16.msra.mxu1 %v7839_v49  ;;  %3243 = vmatprep.subr.bf16.mxu0 %v7844_v50  ;;  %v7889_v49 = vld [vmem:[#allocation15 + $0x384] ss:$88 sps:$4 sm:$0xff]  }
 0x46b   :  { %3928 = vmatprep.subr.bf16.mxu1 %v7847_v51  ;;  %3958 = vmatprep.mubr.bf16.mxu1 %v9161_v1  ;;  %v8013_v50 = vld [vmem:[#allocation18 + $0xc0] ss:$8 sps:$4 sm:$0xff]   ;;  %v8021_v51 = vld [vmem:[#allocation18 + $0xd4] ss:$8 sps:$4 sm:$0xff]  }
 0x46d   :  { %3244 = vmatpush1.bf16.msra.mxu0 %v7842_v52  ;;  %v7887_v52 = vld [vmem:[#allocation15 + $0x380] ss:$88 sps:$4 sm:$0xff]  }
 0x46e   :  { %3929 = vmatpush1.bf16.msra.mxu1 %v7845_v0  ;;  %3245 = vmatprep.subr.bf16.mxu0 %v7850_v53  ;;  %v7892_v0 = vld [vmem:[#allocation15 + $0x434] ss:$88 sps:$4 sm:$0xff]  }
 0x46f   :  { %6217 = vmatprep.subr.bf16.mxu1 %v7943_v54  ;;  %v8019_v53 = vld [vmem:[#allocation18 + $0xd0] ss:$8 sps:$4 sm:$0xff]   ;;  %v8027_v54 = vld [vmem:[#allocation18 + $0xe4] ss:$8 sps:$4 sm:$0xff]  }
 0x471   :  { %3246 = vmatpush1.bf16.msra.mxu0 %v7848_v55  ;;  %7104 = vmatmul.mubr.msk.bf16.vlgmr.msra.gmra.mrb[24].mxu1 %vm291_vm3, %v9486_v24  ;;  %v7890_v55 = vld [vmem:[#allocation15 + $0x430] ss:$88 sps:$4 sm:$0xff]  }
 0x472   :  { %3247 = vmatprep.subr.bf16.mxu0 %v7853_v56  ;;  %6218 = vmatpush1.bf16.msra.mxu1 %v7941_v57  ;;  %v7895_v56 = vld [vmem:[#allocation15 + $0x4e4] ss:$88 sps:$4 sm:$0xff]  }
 0x473   :  { %6219 = vmatprep.subr.bf16.mxu1 %v7949_v58  ;;  %v8025_v57 = vld [vmem:[#allocation18 + $0xe0] ss:$8 sps:$4 sm:$0xff]   ;;  %v8033_v58 = vld [vmem:[#allocation18 + $0xf4] ss:$8 sps:$4 sm:$0xff]  }
 0x475   :  { %3248 = vmatpush1.bf16.msra.mxu0 %v7851_v59  ;;  %v7893_v59 = vld [vmem:[#allocation15 + $0x4e0] ss:$88 sps:$4 sm:$0xff]  }
 0x476   :  { %3249 = vmatprep.subr.bf16.mxu0 %v7856_v60  ;;  %6220 = vmatpush1.bf16.msra.mxu1 %v7947_v63  ;;  %v7898_v60 = vld [vmem:[#allocation15 + $0x594] ss:$88 sps:$4 sm:$0xff]  }
 0x477   :  { %6221 = vmatprep.subr.bf16.mxu1 %v7955_v3  ;;  %v8031_v63 = vld [vmem:[#allocation18 + $0xf0] ss:$8 sps:$4 sm:$0xff]  }
 0x478   :  { %v7896_v3 = vld [vmem:[#allocation15 + $0x590] ss:$88 sps:$4 sm:$0xff]  }
 0x479   :  { %3250 = vmatpush1.bf16.msra.mxu0 %v7854_v4  ;;  %v8039_v4 = vld [vmem:[#allocation18 + $0x104] ss:$8 sps:$4 sm:$0xff]  }
 0x47a   :  { %3251 = vmatprep.subr.bf16.mxu0 %v7859_v5  ;;  %6222 = vmatpush1.bf16.msra.mxu1 %v7953_v6  ;;  %v7901_v5 = vld [vmem:[#allocation15 + $0x644] ss:$88 sps:$4 sm:$0xff]   ;;  %v7899_v6 = vld [vmem:[#allocation15 + $0x640] ss:$88 sps:$4 sm:$0xff]  }
 0x47b   :  { %6223 = vmatprep.subr.bf16.mxu1 %v7961_v7  ;;  %v7904_v7 = vld [vmem:[#allocation15 + $0x6f4] ss:$88 sps:$4 sm:$0xff]  }
 0x47d   :  { %3252 = vmatpush1.bf16.msra.mxu0 %v7857_v8  ;;  %v7902_v8 = vld [vmem:[#allocation15 + $0x6f0] ss:$88 sps:$4 sm:$0xff]  }
 0x47e   :  { %3253 = vmatprep.subr.bf16.mxu0 %v7862_v9  ;;  %6224 = vmatpush1.bf16.msra.mxu1 %v7959_v10  ;;  %v7907_v9 = vld [vmem:[#allocation15 + $0x7a4] ss:$88 sps:$4 sm:$0xff]   ;;  %v7905_v10 = vld [vmem:[#allocation15 + $0x7a0] ss:$88 sps:$4 sm:$0xff]  }
 0x47f   :  { %6225 = vmatprep.subr.bf16.mxu1 %v7967_v12  ;;  %v7910_v12 = vld [vmem:[#allocation15 + $0x854] ss:$88 sps:$4 sm:$0xff]  }
 0x481   :  { %3254 = vmatpush1.bf16.msra.mxu0 %v7860_v14  ;;  %v7908_v14 = vld [vmem:[#allocation15 + $0x850] ss:$88 sps:$4 sm:$0xff]  }
 0x482   :  { %3255 = vmatprep.subr.bf16.mxu0 %v7865_v16  ;;  %6226 = vmatpush1.bf16.msra.mxu1 %v7965_v17  ;;  %v7913_v16 = vld [vmem:[#allocation15 + $0x904] ss:$88 sps:$4 sm:$0xff]   ;;  %v7911_v17 = vld [vmem:[#allocation15 + $0x900] ss:$88 sps:$4 sm:$0xff]  }
 0x483   :  { %6227 = vmatprep.subr.bf16.mxu1 %v7973_v18  ;;  %v7916_v18 = vld [vmem:[#allocation15 + $0x9b4] ss:$88 sps:$4 sm:$0xff]  }
 0x485   :  { %3256 = vmatpush1.bf16.msra.mxu0 %v7863_v19  ;;  %v7914_v19 = vld [vmem:[#allocation15 + $0x9b0] ss:$88 sps:$4 sm:$0xff]  }
 0x486   :  { %3257 = vmatprep.subr.bf16.mxu0 %v7868_v20  ;;  %6228 = vmatpush1.bf16.msra.mxu1 %v7971_v21  ;;  %v7919_v20 = vld [vmem:[#allocation15 + $0xa64] ss:$88 sps:$4 sm:$0xff]   ;;  %v7917_v21 = vld [vmem:[#allocation15 + $0xa60] ss:$88 sps:$4 sm:$0xff]  }
 0x487   :  { %6229 = vmatprep.subr.bf16.mxu1 %v7979_v22  ;;  %v7922_v22 = vld [vmem:[#allocation15 + $0xb14] ss:$88 sps:$4 sm:$0xff]  }
 0x489   :  { %3258 = vmatpush1.bf16.msra.mxu0 %v7866_v23  ;;  %v7920_v23 = vld [vmem:[#allocation15 + $0xb10] ss:$88 sps:$4 sm:$0xff]  }
 0x48a   :  { %3259 = vmatprep.subr.bf16.mxu0 %v7871_v25  ;;  %6230 = vmatpush1.bf16.msra.mxu1 %v7977_v26  ;;  %v7925_v25 = vld [vmem:[#allocation15 + $0xbc4] ss:$88 sps:$4 sm:$0xff]   ;;  %v7923_v26 = vld [vmem:[#allocation15 + $0xbc0] ss:$88 sps:$4 sm:$0xff]  }
 0x48b   :  { %6231 = vmatprep.subr.bf16.mxu1 %v7985_v27  ;;  %v7928_v27 = vld [vmem:[#allocation15 + $0x1c] ss:$88 sps:$4 sm:$0xff]  }
 0x48d   :  { %3260 = vmatpush1.bf16.msra.mxu0 %v7869_v28  ;;  %v7926_v28 = vld [vmem:[#allocation15 + $0x18] ss:$88 sps:$4 sm:$0xff]  }
 0x48e   :  { %3311 = vmatprep.subr.bf16.mxu0 %v7874_v29  ;;  %6232 = vmatpush1.bf16.msra.mxu1 %v7983_v30  ;;  %v7931_v29 = vld [vmem:[#allocation15 + $0xcc] ss:$88 sps:$4 sm:$0xff]   ;;  %v7929_v30 = vld [vmem:[#allocation15 + $0xc8] ss:$88 sps:$4 sm:$0xff]  }
 0x48f   :  { %6233 = vmatprep.subr.bf16.mxu1 %v7991_v31  ;;  %v7934_v31 = vld [vmem:[#allocation15 + $0x17c] ss:$88 sps:$4 sm:$0xff]  }
 0x490   :  { %3262 = vmatmul.mubr.bf16.vlgmr.msra.gmra.mrb[8].mxu0 %v9477_v13 }
 0x491   :  { %3312 = vmatpush1.bf16.msra.mxu0 %v7872_v32  ;;  %3343 = vmatprep.mubr.bf16.mxu0 %v9475_v11  ;;  %v7932_v32 = vld [vmem:[#allocation15 + $0x178] ss:$88 sps:$4 sm:$0xff]  }
 0x492   :  { %3313 = vmatprep.subr.bf16.mxu0 %v7877_v33  ;;  %6234 = vmatpush1.bf16.msra.mxu1 %v7989_v34  ;;  %v7937_v33 = vld [vmem:[#allocation15 + $0x22c] ss:$88 sps:$4 sm:$0xff]   ;;  %v7935_v34 = vld [vmem:[#allocation15 + $0x228] ss:$88 sps:$4 sm:$0xff]  }
 0x493   :  { %6235 = vmatprep.subr.bf16.mxu1 %v7997_v35  ;;  %v7940_v35 = vld [vmem:[#allocation15 + $0x2dc] ss:$88 sps:$4 sm:$0xff]  }
 0x495   :  { %3314 = vmatpush1.bf16.msra.mxu0 %v7875_v36  ;;  %v7938_v36 = vld [vmem:[#allocation15 + $0x2d8] ss:$88 sps:$4 sm:$0xff]  }
 0x496   :  { %3315 = vmatprep.subr.bf16.mxu0 %v7880_v37  ;;  %6236 = vmatpush1.bf16.msra.mxu1 %v7995_v38  ;;  %v7946_v37 = vld [vmem:[#allocation15 + $0x38c] ss:$88 sps:$4 sm:$0xff]   ;;  %v7944_v38 = vld [vmem:[#allocation15 + $0x388] ss:$88 sps:$4 sm:$0xff]  }
 0x497   :  { %6237 = vmatprep.subr.bf16.mxu1 %v8003_v39  ;;  %v7952_v39 = vld [vmem:[#allocation15 + $0x43c] ss:$88 sps:$4 sm:$0xff]  }
 0x499   :  { %3316 = vmatpush1.bf16.msra.mxu0 %v7878_v40  ;;  %v7950_v40 = vld [vmem:[#allocation15 + $0x438] ss:$88 sps:$4 sm:$0xff]  }
 0x49a   :  { %3317 = vmatprep.subr.bf16.mxu0 %v7883_v41  ;;  %6238 = vmatpush1.bf16.msra.mxu1 %v8001_v42  ;;  %v7958_v41 = vld [vmem:[#allocation15 + $0x4ec] ss:$88 sps:$4 sm:$0xff]   ;;  %v7956_v42 = vld [vmem:[#allocation15 + $0x4e8] ss:$88 sps:$4 sm:$0xff]  }
 0x49b   :  { %6239 = vmatprep.subr.bf16.mxu1 %v8009_v43  ;;  %v7964_v43 = vld [vmem:[#allocation15 + $0x59c] ss:$88 sps:$4 sm:$0xff]  }
 0x49d   :  { %3318 = vmatpush1.bf16.msra.mxu0 %v7881_v44  ;;  %v7962_v44 = vld [vmem:[#allocation15 + $0x598] ss:$88 sps:$4 sm:$0xff]  }
 0x49e   :  { %3319 = vmatprep.subr.bf16.mxu0 %v7886_v45  ;;  %6240 = vmatpush1.bf16.msra.mxu1 %v8007_v46  ;;  %v7970_v45 = vld [vmem:[#allocation15 + $0x64c] ss:$88 sps:$4 sm:$0xff]   ;;  %v7968_v46 = vld [vmem:[#allocation15 + $0x648] ss:$88 sps:$4 sm:$0xff]  }
 0x49f   :  { %6241 = vmatprep.subr.bf16.mxu1 %v8015_v47  ;;  %v7976_v47 = vld [vmem:[#allocation15 + $0x6fc] ss:$88 sps:$4 sm:$0xff]  }
 0x4a1   :  { %3320 = vmatpush1.bf16.msra.mxu0 %v7884_v48  ;;  %v7974_v48 = vld [vmem:[#allocation15 + $0x6f8] ss:$88 sps:$4 sm:$0xff]  }
 0x4a2   :  { %3321 = vmatprep.subr.bf16.mxu0 %v7889_v49  ;;  %6242 = vmatpush1.bf16.msra.mxu1 %v8013_v50  ;;  %v7982_v49 = vld [vmem:[#allocation15 + $0x7ac] ss:$88 sps:$4 sm:$0xff]   ;;  %v7980_v50 = vld [vmem:[#allocation15 + $0x7a8] ss:$88 sps:$4 sm:$0xff]  }
 0x4a3   :  { %6243 = vmatprep.subr.bf16.mxu1 %v8021_v51  ;;  %v7988_v51 = vld [vmem:[#allocation15 + $0x85c] ss:$88 sps:$4 sm:$0xff]  }
 0x4a5   :  { %3322 = vmatpush1.bf16.msra.mxu0 %v7887_v52  ;;  %v7986_v52 = vld [vmem:[#allocation15 + $0x858] ss:$88 sps:$4 sm:$0xff]  }
 0x4a6   :  { %3323 = vmatprep.subr.bf16.mxu0 %v7892_v0  ;;  %6244 = vmatpush1.bf16.msra.mxu1 %v8019_v53  ;;  %v7994_v0 = vld [vmem:[#allocation15 + $0x90c] ss:$88 sps:$4 sm:$0xff]   ;;  %v7992_v53 = vld [vmem:[#allocation15 + $0x908] ss:$88 sps:$4 sm:$0xff]  }
 0x4a7   :  { %6245 = vmatprep.subr.bf16.mxu1 %v8027_v54  ;;  %v8000_v54 = vld [vmem:[#allocation15 + $0x9bc] ss:$88 sps:$4 sm:$0xff]  }
 0x4a9   :  { %3324 = vmatpush1.bf16.msra.mxu0 %v7890_v55  ;;  %v7998_v55 = vld [vmem:[#allocation15 + $0x9b8] ss:$88 sps:$4 sm:$0xff]  }
 0x4aa   :  { %3325 = vmatprep.subr.bf16.mxu0 %v7895_v56  ;;  %6246 = vmatpush1.bf16.msra.mxu1 %v8025_v57  ;;  %v8006_v56 = vld [vmem:[#allocation15 + $0xa6c] ss:$88 sps:$4 sm:$0xff]   ;;  %v8004_v57 = vld [vmem:[#allocation15 + $0xa68] ss:$88 sps:$4 sm:$0xff]  }
 0x4ab   :  { %6247 = vmatprep.subr.bf16.mxu1 %v8033_v58  ;;  %v8012_v58 = vld [vmem:[#allocation15 + $0x24] ss:$88 sps:$4 sm:$0xff]  }
 0x4ad   :  { %3326 = vmatpush1.bf16.msra.mxu0 %v7893_v59  ;;  %v8010_v59 = vld [vmem:[#allocation15 + $0x20] ss:$88 sps:$4 sm:$0xff]  }
 0x4ae   :  { %3327 = vmatprep.subr.bf16.mxu0 %v7898_v60  ;;  %6248 = vmatpush1.bf16.msra.mxu1 %v8031_v63  ;;  %v8018_v60 = vld [vmem:[#allocation15 + $0xd4] ss:$88 sps:$4 sm:$0xff]   ;;  %v8016_v63 = vld [vmem:[#allocation15 + $0xd0] ss:$88 sps:$4 sm:$0xff]  }
 0x4af   :  { %6258 = vmatprep.subr.bf16.mxu1 %v8039_v4  ;;  %v8024_v4 = vld [vmem:[#allocation15 + $0x184] ss:$88 sps:$4 sm:$0xff]  }
 0x4b1   :  { %3328 = vmatpush1.bf16.msra.mxu0 %v7896_v3  ;;  %v9514_v3 = vld [vmem:[#allocation16] sm:$0xff] }
 0x4b2   :  { %3329 = vmatprep.subr.bf16.mxu0 %v7901_v5  ;;  %v1057_v5 = vrot.slane %v9514_v3, %v9468_v62 }
 0x4b5   :  { %3330 = vmatpush1.bf16.msra.mxu0 %v7899_v6  ;;  %v8022_v6 = vld [vmem:[#allocation15 + $0x180] ss:$88 sps:$4 sm:$0xff]  }
 0x4b6   :  { %3331 = vmatprep.subr.bf16.mxu0 %v7904_v7  ;;  %v1061_v7 = vrot.slane %v9514_v3, %v9471_v2 }
 0x4b9   :  { %3332 = vmatpush1.bf16.msra.mxu0 %v7902_v8  ;;  %v8030_v8 = vld [vmem:[#allocation15 + $0x234] ss:$88 sps:$4 sm:$0xff]  }
 0x4ba   :  { %3333 = vmatprep.subr.bf16.mxu0 %v7907_v9 }
 0x4bd   :  { %3334 = vmatpush1.bf16.msra.mxu0 %v7905_v10 }
 0x4be   :  { %3335 = vmatprep.subr.bf16.mxu0 %v7910_v12 }
 0x4c1   :  { %3336 = vmatpush1.bf16.msra.mxu0 %v7908_v14 }
 0x4c2   :  { %3337 = vmatprep.subr.bf16.mxu0 %v7913_v16 }
 0x4c5   :  { %3338 = vmatpush1.bf16.msra.mxu0 %v7911_v17 }
 0x4c6   :  { %3339 = vmatprep.subr.bf16.mxu0 %v7916_v18 }
 0x4c9   :  { %3340 = vmatpush1.bf16.msra.mxu0 %v7914_v19 }
 0x4ca   :  { %3341 = vmatprep.subr.bf16.mxu0 %v7919_v20  ;;  %v8028_v20 = vld [vmem:[#allocation15 + $0x230] ss:$88 sps:$4 sm:$0xff]  }
 0x4cd   :  { %3342 = vmatpush1.bf16.msra.mxu0 %v7917_v21 }
 0x4ce   :  { %3352 = vmatprep.subr.bf16.mxu0 %v7922_v22 }
 0x4d0   :  { %3344 = vmatmul.mubr.bf16.vlgmr.msra.gmra.mrb[12].mxu0 %v9477_v13 }
 0x4d1   :  { %3353 = vmatpush1.bf16.msra.mxu0 %v7920_v23  ;;  %3384 = vmatprep.mubr.bf16.mxu0 %v9161_v1 }
 0x4d2   :  { %3354 = vmatprep.subr.bf16.mxu0 %v7925_v25  ;;  %v8036_v25 = vld [vmem:[#allocation15 + $0x2e4] ss:$88 sps:$4 sm:$0xff]  }
 0x4d5   :  { %3355 = vmatpush1.bf16.msra.mxu0 %v7923_v26 }
 0x4d6   :  { %3393 = vmatprep.subr.bf16.mxu0 %v7928_v27 }
 0x4dc   :  { %7097 = vmatmul.mubr.msk.bf16.vlgmr.msra.gmra.mrb[12].mxu0 %vm291_vm3, %v9486_v24 }
 0x4dd   :  { %3394 = vmatpush1.bf16.msra.mxu0 %v7926_v28  ;;  %3425 = vmatprep.mubr.bf16.mxu0 %v9475_v11  ;;  %v8034_v28 = vld [vmem:[#allocation15 + $0x2e0] ss:$88 sps:$4 sm:$0xff]  }
 0x4de   :  { %3395 = vmatprep.subr.bf16.mxu0 %v7931_v29  ;;  %v8037_v29 = vld [vmem:[#allocation18 + $0x100] ss:$8 sps:$4 sm:$0xff]  }
 0x4e1   :  { %3396 = vmatpush1.bf16.msra.mxu0 %v7929_v30 }
 0x4e2   :  { %3397 = vmatprep.subr.bf16.mxu0 %v7934_v31  ;;  %v8042_v31 = vld [vmem:[#allocation15 + $0x394] ss:$88 sps:$4 sm:$0xff]  }
 0x4e5   :  { %3398 = vmatpush1.bf16.msra.mxu0 %v7932_v32  ;;  %v8045_v32 = vld [vmem:[#allocation18 + $0x114] ss:$8 sps:$4 sm:$0xff]  }
 0x4e6   :  { %3399 = vmatprep.subr.bf16.mxu0 %v7937_v33 }
 0x4e9   :  { %3400 = vmatpush1.bf16.msra.mxu0 %v7935_v34 }
 0x4ea   :  { %3401 = vmatprep.subr.bf16.mxu0 %v7940_v35  ;;  %v8040_v35 = vld [vmem:[#allocation15 + $0x390] ss:$88 sps:$4 sm:$0xff]  }
 0x4ed   :  { %3402 = vmatpush1.bf16.msra.mxu0 %v7938_v36  ;;  %v8043_v36 = vld [vmem:[#allocation18 + $0x110] ss:$8 sps:$4 sm:$0xff]  }
 0x4ee   :  { %3403 = vmatprep.subr.bf16.mxu0 %v7946_v37 }
 0x4f1   :  { %3404 = vmatpush1.bf16.msra.mxu0 %v7944_v38  ;;  %v8048_v38 = vld [vmem:[#allocation15 + $0x444] ss:$88 sps:$4 sm:$0xff]  }
 0x4f2   :  { %3405 = vmatprep.subr.bf16.mxu0 %v7952_v39  ;;  %v8051_v39 = vld [vmem:[#allocation18 + $0x124] ss:$8 sps:$4 sm:$0xff]  }
 0x4f5   :  { %3406 = vmatpush1.bf16.msra.mxu0 %v7950_v40 }
 0x4f6   :  { %3407 = vmatprep.subr.bf16.mxu0 %v7958_v41  ;;  %v8046_v41 = vld [vmem:[#allocation15 + $0x440] ss:$88 sps:$4 sm:$0xff]  }
 0x4f9   :  { %3408 = vmatpush1.bf16.msra.mxu0 %v7956_v42  ;;  %v8049_v42 = vld [vmem:[#allocation18 + $0x120] ss:$8 sps:$4 sm:$0xff]  }
 0x4fa   :  { %3409 = vmatprep.subr.bf16.mxu0 %v7964_v43  ;;  %v8054_v43 = vld [vmem:[#allocation15 + $0x4f4] ss:$88 sps:$4 sm:$0xff]  }
 0x4fd   :  { %3410 = vmatpush1.bf16.msra.mxu0 %v7962_v44  ;;  %v8057_v44 = vld [vmem:[#allocation18 + $0x134] ss:$8 sps:$4 sm:$0xff]  }
 0x4fe   :  { %3411 = vmatprep.subr.bf16.mxu0 %v7970_v45 }
 0x501   :  { %3412 = vmatpush1.bf16.msra.mxu0 %v7968_v46 }
 0x502   :  { %3413 = vmatprep.subr.bf16.mxu0 %v7976_v47  ;;  %v8052_v47 = vld [vmem:[#allocation15 + $0x4f0] ss:$88 sps:$4 sm:$0xff]  }
 0x505   :  { %3414 = vmatpush1.bf16.msra.mxu0 %v7974_v48  ;;  %v8055_v48 = vld [vmem:[#allocation18 + $0x130] ss:$8 sps:$4 sm:$0xff]  }
 0x506   :  { %3415 = vmatprep.subr.bf16.mxu0 %v7982_v49 }
 0x509   :  { %3416 = vmatpush1.bf16.msra.mxu0 %v7980_v50  ;;  %v8060_v50 = vld [vmem:[#allocation15 + $0x5a4] ss:$88 sps:$4 sm:$0xff]  }
 0x50a   :  { %3417 = vmatprep.subr.bf16.mxu0 %v7988_v51  ;;  %v8063_v51 = vld [vmem:[#allocation18 + $0x144] ss:$8 sps:$4 sm:$0xff]  }
 0x50d   :  { %3418 = vmatpush1.bf16.msra.mxu0 %v7986_v52 }
 0x50e   :  { %3419 = vmatprep.subr.bf16.mxu0 %v7994_v0  ;;  %v8058_v0 = vld [vmem:[#allocation15 + $0x5a0] ss:$88 sps:$4 sm:$0xff]  }
 0x511   :  { %3420 = vmatpush1.bf16.msra.mxu0 %v7992_v53  ;;  %v8061_v53 = vld [vmem:[#allocation18 + $0x140] ss:$8 sps:$4 sm:$0xff]  }
 0x512   :  { %3421 = vmatprep.subr.bf16.mxu0 %v8000_v54  ;;  %v8066_v54 = vld [vmem:[#allocation15 + $0x654] ss:$88 sps:$4 sm:$0xff]  }
 0x515   :  { %3422 = vmatpush1.bf16.msra.mxu0 %v7998_v55  ;;  %v8069_v55 = vld [vmem:[#allocation18 + $0x154] ss:$8 sps:$4 sm:$0xff]  }
 0x516   :  { %3423 = vmatprep.subr.bf16.mxu0 %v8006_v56 }
 0x519   :  { %3424 = vmatpush1.bf16.msra.mxu0 %v8004_v57 }
 0x51a   :  { %3475 = vmatprep.subr.bf16.mxu0 %v8012_v58  ;;  %v8064_v58 = vld [vmem:[#allocation15 + $0x650] ss:$88 sps:$4 sm:$0xff]  }
 0x51c   :  { %3426 = vmatmul.mubr.bf16.vlgmr.msra.gmra.mrb[16].mxu0 %v9477_v13 }
 0x51d   :  { %3476 = vmatpush1.bf16.msra.mxu0 %v8010_v59  ;;  %3507 = vmatprep.mubr.bf16.mxu0 %v9475_v11  ;;  %v8067_v59 = vld [vmem:[#allocation18 + $0x150] ss:$8 sps:$4 sm:$0xff]  }
 0x51e   :  { %3477 = vmatprep.subr.bf16.mxu0 %v8018_v60 }
 0x521   :  { %3478 = vmatpush1.bf16.msra.mxu0 %v8016_v63  ;;  %v8072_v63 = vld [vmem:[#allocation15 + $0x704] ss:$88 sps:$4 sm:$0xff]  }
 0x522   :  { %3479 = vmatprep.subr.bf16.mxu0 %v8024_v4  ;;  %v8075_v4 = vld [vmem:[#allocation18 + $0x164] ss:$8 sps:$4 sm:$0xff]  }
 0x523   :  { %v3222_v9 = vpop.f32.mrb[4].mxu0  ;;  %v9520_v10 = vpop.f32.mrb[8].mxu1 }
 0x524   :  { %v7620_v12 = vadd.f32 %v3222_v9, %v1057_v5  ;;  %v3224_v14 = vpop.f32.mrb[5].mxu0  ;;  %v9522_v16 = vpop.f32.mrb[9].mxu1  ;;  %v8081_v9 = vld [vmem:[#allocation18 + $0x174] ss:$8 sps:$4 sm:$0xff]  }
 0x525   :  { %3480 = vmatpush1.bf16.msra.mxu0 %v8022_v6  ;;  %v7621_v17 = vadd.f32 %v3224_v14, %v1061_v7  ;;  %v3226_v18 = vpop.f32.mrb[6].mxu0  ;;  %v3308_v19 = vpop.f32.mrb[10].mxu1  ;;  %v8070_v6 = vld [vmem:[#allocation15 + $0x700] ss:$88 sps:$4 sm:$0xff]  }
 0x526   :  { %v4049_v21 = vmax.f32 %v7620_v12, 0.0  ;;  %v3227_v22 = vpop.f32.mrb[7].mxu0  ;;  %v3309_v23 = vpop.f32.mrb[11].mxu1  ;;  %3481 = vmatprep.subr.bf16.mxu0 %v8030_v8  ;;  %v8073_v7 = vld [vmem:[#allocation18 + $0x160] ss:$8 sps:$4 sm:$0xff]  }
 0x527   :  { %v4050_v26 = vmax.f32 %v7621_v17, 0.0  ;;  %v8078_v8 = vld [vmem:[#allocation15 + $0x7b4] ss:$88 sps:$4 sm:$0xff]   ;;  %v8076_v17 = vld [vmem:[#allocation15 + $0x7b0] ss:$88 sps:$4 sm:$0xff]  }
 0x528   :  { %v4423_v30 = vpack.c.bf16 %v4049_v21, %v4049_v21  ;;  %v8079_v18 = vld [vmem:[#allocation18 + $0x170] ss:$8 sps:$4 sm:$0xff]   ;;  %v8087_v21 = vld [vmem:[#allocation18 + $0x184] ss:$8 sps:$4 sm:$0xff]  }
 0x529   :  { %v4424_v27 = vpack.c.bf16 %v4050_v26, %v4050_v26  ;;  %3482 = vmatpush1.bf16.msra.mxu0 %v8028_v20  ;;  %v8084_v20 = vld [vmem:[#allocation15 + $0x864] ss:$88 sps:$4 sm:$0xff]   ;;  %v8082_v23 = vld [vmem:[#allocation15 + $0x860] ss:$88 sps:$4 sm:$0xff]   ;;  %v8090_v26 = vld [vmem:[#allocation15 + $0x914] ss:$88 sps:$4 sm:$0xff]  }
 0x52a   :  { %3483 = vmatprep.subr.bf16.mxu0 %v8036_v25  ;;  %v8085_v25 = vld [vmem:[#allocation18 + $0x180] ss:$8 sps:$4 sm:$0xff]  }
 0x52b   :  { %6249 = vmatprep.mubr.bf16.mxu1 %v4424_v27  ;;  %v8093_v27 = vld [vmem:[#allocation18 + $0x194] ss:$8 sps:$4 sm:$0xff]  }
 0x52c   :  { %v9524_v33 = vpop.f32.mrb[12].mxu1  ;;  %6250 = vmatmul.mubr.bf16.vlgmr.msra.gmra.mrb[28].mxu1 %v4423_v30  ;;  %v8096_v30 = vld [vmem:[#allocation15 + $0x9c4] ss:$88 sps:$4 sm:$0xff]  }
 0x52d   :  { %3484 = vmatpush1.bf16.msra.mxu0 %v8034_v28  ;;  %v9526_v34 = vpop.f32.mrb[13].mxu1  ;;  %6259 = vmatpush1.bf16.msra.mxu1 %v8037_v29  ;;  %v8088_v28 = vld [vmem:[#allocation15 + $0x910] ss:$88 sps:$4 sm:$0xff]  }
 0x52e   :  { %v3472_v37 = vpop.f32.mrb[14].mxu1  ;;  %3485 = vmatprep.subr.bf16.mxu0 %v8042_v31  ;;  %6260 = vmatprep.subr.bf16.mxu1 %v8045_v32  ;;  %v8091_v29 = vld [vmem:[#allocation18 + $0x190] ss:$8 sps:$4 sm:$0xff]   ;;  %v8099_v31 = vld [vmem:[#allocation18 + $0x1a4] ss:$8 sps:$4 sm:$0xff]  }
 0x52f   :  { %v3473_v40 = vpop.f32.mrb[15].mxu1  ;;  %v8094_v32 = vld [vmem:[#allocation15 + $0x9c0] ss:$88 sps:$4 sm:$0xff]   ;;  %v8105_v37 = vld [vmem:[#allocation18 + $0x1b4] ss:$8 sps:$4 sm:$0xff]  }
 0x530   :  { %v8108_v40 = vld [vmem:[#allocation15 + $0xb24] ss:$88 sps:$4 sm:$0xff]  }
 0x531   :  { %3486 = vmatpush1.bf16.msra.mxu0 %v8040_v35  ;;  %6261 = vmatpush1.bf16.msra.mxu1 %v8043_v36  ;;  %v8097_v35 = vld [vmem:[#allocation18 + $0x1a0] ss:$8 sps:$4 sm:$0xff]  }
 0x532   :  { %3487 = vmatprep.subr.bf16.mxu0 %v8048_v38  ;;  %6262 = vmatprep.subr.bf16.mxu1 %v8051_v39  ;;  %v8102_v36 = vld [vmem:[#allocation15 + $0xa74] ss:$88 sps:$4 sm:$0xff]   ;;  %v8100_v38 = vld [vmem:[#allocation15 + $0xa70] ss:$88 sps:$4 sm:$0xff]  }
 0x533   :  { %v8103_v39 = vld [vmem:[#allocation18 + $0x1b0] ss:$8 sps:$4 sm:$0xff]  }
 0x534   :  { %v9528_v45 = vpop.f32.mrb[16].mxu1 }
 0x535   :  { %3488 = vmatpush1.bf16.msra.mxu0 %v8046_v41  ;;  %v9530_v46 = vpop.f32.mrb[17].mxu1  ;;  %6263 = vmatpush1.bf16.msra.mxu1 %v8049_v42  ;;  %v8111_v41 = vld [vmem:[#allocation18 + $0x1c4] ss:$8 sps:$4 sm:$0xff]  }
 0x536   :  { %v3636_v49 = vpop.f32.mrb[18].mxu1  ;;  %3489 = vmatprep.subr.bf16.mxu0 %v8054_v43  ;;  %6264 = vmatprep.subr.bf16.mxu1 %v8057_v44  ;;  %v8106_v42 = vld [vmem:[#allocation15 + $0xb20] ss:$88 sps:$4 sm:$0xff]   ;;  %v8114_v44 = vld [vmem:[#allocation15 + $0xbd4] ss:$88 sps:$4 sm:$0xff]  }
 0x537   :  { %v3637_v52 = vpop.f32.mrb[19].mxu1  ;;  %v8109_v43 = vld [vmem:[#allocation18 + $0x1c0] ss:$8 sps:$4 sm:$0xff]   ;;  %v8115_v49 = vld [vmem:[#allocation18 + $0x1d0] ss:$8 sps:$4 sm:$0xff]  }
 0x538   :  { %v8123_v52 = vld [vmem:[#allocation18 + $0x1e4] ss:$8 sps:$4 sm:$0xff]  }
 0x539   :  { %3490 = vmatpush1.bf16.msra.mxu0 %v8052_v47  ;;  %6265 = vmatpush1.bf16.msra.mxu1 %v8055_v48  ;;  %v8117_v47 = vld [vmem:[#allocation18 + $0x1d4] ss:$8 sps:$4 sm:$0xff]  }
 0x53a   :  { %3491 = vmatprep.subr.bf16.mxu0 %v8060_v50  ;;  %6266 = vmatprep.subr.bf16.mxu1 %v8063_v51  ;;  %v8112_v48 = vld [vmem:[#allocation15 + $0xbd0] ss:$88 sps:$4 sm:$0xff]   ;;  %v9542_v50 = vsub.s32 3, %v9465_v61  ;;  %v8120_v51 = vld [vmem:[#allocation15 + $0x2c] ss:$88 sps:$4 sm:$0xff]  }
 0x53c   :  { %v9532_v56 = vpop.f32.mrb[20].mxu1 }
 0x53d   :  { %3492 = vmatpush1.bf16.msra.mxu0 %v8058_v0  ;;  %v9534_v57 = vpop.f32.mrb[21].mxu1  ;;  %6267 = vmatpush1.bf16.msra.mxu1 %v8061_v53  ;;  %v1065_v0 = vrot.slane %v9514_v3, %v9482_v15  ;;  %v1069_v53 = vrot.slane %v9514_v3, %v9542_v50 }
 0x53e   :  { %v3800_v60 = vpop.f32.mrb[22].mxu1  ;;  %3493 = vmatprep.subr.bf16.mxu0 %v8066_v54  ;;  %6268 = vmatprep.subr.bf16.mxu1 %v8069_v55  ;;  %v8121_v54 = vld [vmem:[#allocation18 + $0x1e0] ss:$8 sps:$4 sm:$0xff]   ;;  %v8129_v55 = vld [vmem:[#allocation18 + $0x1f4] ss:$8 sps:$4 sm:$0xff]  }
 0x53f   :  { %v3801_v5 = vpop.f32.mrb[23].mxu1 }
 0x540   :  { %v8118_v5 = vld [vmem:[#allocation15 + $0x28] ss:$88 sps:$4 sm:$0xff]  }
 0x541   :  { %3494 = vmatpush1.bf16.msra.mxu0 %v8064_v58  ;;  %6269 = vmatpush1.bf16.msra.mxu1 %v8067_v59 }
 0x542   :  { %3495 = vmatprep.subr.bf16.mxu0 %v8072_v63  ;;  %6270 = vmatprep.subr.bf16.mxu1 %v8075_v4 }
 0x544   :  { %v9536_v12 = vpop.f32.mrb[24].mxu1 }
 0x545   :  { %3496 = vmatpush1.bf16.msra.mxu0 %v8070_v6  ;;  %v9538_v14 = vpop.f32.mrb[25].mxu1  ;;  %6271 = vmatpush1.bf16.msra.mxu1 %v8073_v7 }
 0x546   :  { %v3964_v19 = vpop.f32.mrb[26].mxu1  ;;  %3497 = vmatprep.subr.bf16.mxu0 %v8078_v8  ;;  %6272 = vmatprep.subr.bf16.mxu1 %v8081_v9  ;;  %v8126_v8 = vld [vmem:[#allocation15 + $0xdc] ss:$88 sps:$4 sm:$0xff]   ;;  %v8127_v9 = vld [vmem:[#allocation18 + $0x1f0] ss:$8 sps:$4 sm:$0xff]  }
 0x547   :  { %v3965_v22 = vpop.f32.mrb[27].mxu1 }
 0x548   :  { %v8132_v22 = vld [vmem:[#allocation15 + $0x18c] ss:$88 sps:$4 sm:$0xff]  }
 0x549   :  { %3498 = vmatpush1.bf16.msra.mxu0 %v8076_v17  ;;  %6273 = vmatpush1.bf16.msra.mxu1 %v8079_v18  ;;  %v8141_v18 = vld [vmem:[#allocation18 + $0x204] ss:$8 sps:$4 sm:$0xff]  }
 0x54a   :  { %3499 = vmatprep.subr.bf16.mxu0 %v8084_v20  ;;  %6274 = vmatprep.subr.bf16.mxu1 %v8087_v21  ;;  %v8124_v21 = vld [vmem:[#allocation15 + $0xd8] ss:$88 sps:$4 sm:$0xff]  }
 0x54d   :  { %3500 = vmatpush1.bf16.msra.mxu0 %v8082_v23  ;;  %6275 = vmatpush1.bf16.msra.mxu1 %v8085_v25  ;;  %v8139_v23 = vld [vmem:[#allocation18 + $0x200] ss:$8 sps:$4 sm:$0xff]  }
 0x54e   :  { %3501 = vmatprep.subr.bf16.mxu0 %v8090_v26  ;;  %6276 = vmatprep.subr.bf16.mxu1 %v8093_v27  ;;  %v8147_v26 = vld [vmem:[#allocation18 + $0x214] ss:$8 sps:$4 sm:$0xff]  }
 0x54f   :  { %v8135_v27 = vld [vmem:[#allocation15 + $0x23c] ss:$88 sps:$4 sm:$0xff]  }
 0x551   :  { %3502 = vmatpush1.bf16.msra.mxu0 %v8088_v28  ;;  %6277 = vmatpush1.bf16.msra.mxu1 %v8091_v29  ;;  %v8145_v28 = vld [vmem:[#allocation18 + $0x210] ss:$8 sps:$4 sm:$0xff]   ;;  %v8153_v29 = vld [vmem:[#allocation18 + $0x224] ss:$8 sps:$4 sm:$0xff]  }
 0x552   :  { %3503 = vmatprep.subr.bf16.mxu0 %v8096_v30  ;;  %6278 = vmatprep.subr.bf16.mxu1 %v8099_v31  ;;  %v8133_v30 = vld [vmem:[#allocation15 + $0x238] ss:$88 sps:$4 sm:$0xff]   ;;  %v8138_v31 = vld [vmem:[#allocation15 + $0x2ec] ss:$88 sps:$4 sm:$0xff]  }
 0x555   :  { %3504 = vmatpush1.bf16.msra.mxu0 %v8094_v32  ;;  %6279 = vmatpush1.bf16.msra.mxu1 %v8097_v35  ;;  %v8151_v32 = vld [vmem:[#allocation18 + $0x220] ss:$8 sps:$4 sm:$0xff]   ;;  %v8159_v35 = vld [vmem:[#allocation18 + $0x234] ss:$8 sps:$4 sm:$0xff]  }
 0x556   :  { %3505 = vmatprep.subr.bf16.mxu0 %v8102_v36  ;;  %6280 = vmatprep.subr.bf16.mxu1 %v8105_v37  ;;  %v8136_v36 = vld [vmem:[#allocation15 + $0x2e8] ss:$88 sps:$4 sm:$0xff]   ;;  %v8144_v37 = vld [vmem:[#allocation15 + $0x39c] ss:$88 sps:$4 sm:$0xff]  }
 0x559   :  { %3506 = vmatpush1.bf16.msra.mxu0 %v8100_v38  ;;  %6281 = vmatpush1.bf16.msra.mxu1 %v8103_v39  ;;  %v8157_v38 = vld [vmem:[#allocation18 + $0x230] ss:$8 sps:$4 sm:$0xff]   ;;  %v8165_v39 = vld [vmem:[#allocation18 + $0x244] ss:$8 sps:$4 sm:$0xff]  }
 0x55a   :  { %3516 = vmatprep.subr.bf16.mxu0 %v8108_v40  ;;  %6282 = vmatprep.subr.bf16.mxu1 %v8111_v41  ;;  %v8142_v40 = vld [vmem:[#allocation15 + $0x398] ss:$88 sps:$4 sm:$0xff]   ;;  %v8150_v41 = vld [vmem:[#allocation15 + $0x44c] ss:$88 sps:$4 sm:$0xff]  }
 0x55c   :  { %3508 = vmatmul.mubr.bf16.vlgmr.msra.gmra.mrb[20].mxu0 %v9477_v13 }
 0x55d   :  { %3517 = vmatpush1.bf16.msra.mxu0 %v8106_v42  ;;  %6283 = vmatpush1.bf16.msra.mxu1 %v8109_v43  ;;  %v8163_v42 = vld [vmem:[#allocation18 + $0x240] ss:$8 sps:$4 sm:$0xff]   ;;  %v8171_v43 = vld [vmem:[#allocation18 + $0x254] ss:$8 sps:$4 sm:$0xff]  }
 0x55e   :  { %3518 = vmatprep.subr.bf16.mxu0 %v8114_v44  ;;  %6284 = vmatprep.subr.bf16.mxu1 %v8117_v47  ;;  %v8148_v44 = vld [vmem:[#allocation15 + $0x448] ss:$88 sps:$4 sm:$0xff]   ;;  %v8156_v47 = vld [vmem:[#allocation15 + $0x4fc] ss:$88 sps:$4 sm:$0xff]  }
 0x55f   :  { %3548 = vmatprep.mubr.bf16.mxu0 %v9161_v1 }
 0x561   :  { %3519 = vmatpush1.bf16.msra.mxu0 %v8112_v48  ;;  %6285 = vmatpush1.bf16.msra.mxu1 %v8115_v49  ;;  %v8169_v48 = vld [vmem:[#allocation18 + $0x250] ss:$8 sps:$4 sm:$0xff]   ;;  %v8177_v49 = vld [vmem:[#allocation18 + $0x264] ss:$8 sps:$4 sm:$0xff]  }
 0x562   :  { %3557 = vmatprep.subr.bf16.mxu0 %v8120_v51  ;;  %6286 = vmatprep.subr.bf16.mxu1 %v8123_v52  ;;  %v8154_v51 = vld [vmem:[#allocation15 + $0x4f8] ss:$88 sps:$4 sm:$0xff]   ;;  %v8162_v52 = vld [vmem:[#allocation15 + $0x5ac] ss:$88 sps:$4 sm:$0xff]  }
 0x563   :  { %v3263_v58 = vpop.f32.mrb[8].mxu0 }
 0x564   :  { %v3264_v59 = vadd.f32 %v3263_v58, %v1065_v0  ;;  %v3265_v60 = vpop.f32.mrb[9].mxu0  ;;  %v8175_v0 = vld [vmem:[#allocation18 + $0x260] ss:$8 sps:$4 sm:$0xff]   ;;  %v8181_v58 = vld [vmem:[#allocation18 + $0x270] ss:$8 sps:$4 sm:$0xff]  }
 0x565   :  { %v3266_v63 = vadd.f32 %v3265_v60, %v1069_v53  ;;  %v3267_v4 = vpop.f32.mrb[10].mxu0  ;;  %6287 = vmatpush1.bf16.msra.mxu1 %v8121_v54  ;;  %v8183_v53 = vld [vmem:[#allocation18 + $0x274] ss:$8 sps:$4 sm:$0xff]  }
 0x566   :  { %v3305_v6 = vadd.f32 %v9520_v10, %v3264_v59  ;;  %v3268_v7 = vpop.f32.mrb[11].mxu0  ;;  %6288 = vmatprep.subr.bf16.mxu1 %v8129_v55  ;;  %v8160_v54 = vld [vmem:[#allocation15 + $0x5a8] ss:$88 sps:$4 sm:$0xff]   ;;  %v8168_v55 = vld [vmem:[#allocation15 + $0x65c] ss:$88 sps:$4 sm:$0xff]  }
 0x567   :  { %v3307_v17 = vadd.f32 %v9522_v16, %v3266_v63  ;;  %v8130_v16 = vld [vmem:[#allocation15 + $0x188] ss:$88 sps:$4 sm:$0xff]   ;;  %v8166_v60 = vld [vmem:[#allocation15 + $0x658] ss:$88 sps:$4 sm:$0xff]   ;;  %v8174_v63 = vld [vmem:[#allocation15 + $0x70c] ss:$88 sps:$4 sm:$0xff]  }
 0x568   :  { %v4051_v19 = vmax.f32 %v3305_v6, 0.0  ;;  %7099 = vmatmul.mubr.msk.bf16.vlgmr.msra.gmra.mrb[20].mxu0 %vm291_vm3, %v9486_v24  ;;  %v8189_v59 = vld [vmem:[#allocation18 + $0x284] ss:$8 sps:$4 sm:$0xff]   ;;  %v8187_v4 = vld [vmem:[#allocation18 + $0x280] ss:$8 sps:$4 sm:$0xff]  }
 0x569   :  { %v4052_v20 = vmax.f32 %v3307_v17, 0.0  ;;  %3558 = vmatpush1.bf16.msra.mxu0 %v8118_v5  ;;  %3589 = vmatprep.mubr.bf16.mxu0 %v9475_v11  ;;  %v8195_v5 = vld [vmem:[#allocation18 + $0x294] ss:$8 sps:$4 sm:$0xff]  }
 0x56a   :  { %3559 = vmatprep.subr.bf16.mxu0 %v8126_v8  ;;  %6289 = vmatpush1.bf16.msra.mxu1 %v8127_v9  ;;  %v4425_v25 = vpack.c.bf16 %v4051_v19, %v4051_v19  ;;  %v8172_v6 = vld [vmem:[#allocation15 + $0x708] ss:$88 sps:$4 sm:$0xff]   ;;  %v8180_v7 = vld [vmem:[#allocation15 + $0x7bc] ss:$88 sps:$4 sm:$0xff]   ;;  %v8178_v17 = vld [vmem:[#allocation15 + $0x7b8] ss:$88 sps:$4 sm:$0xff]  }
 0x56b   :  { %v4426_v10 = vpack.c.bf16 %v4052_v20, %v4052_v20  ;;  %6299 = vmatprep.subr.bf16.mxu1 %v8141_v18  ;;  %v8193_v8 = vld [vmem:[#allocation18 + $0x290] ss:$8 sps:$4 sm:$0xff]   ;;  %v8201_v9 = vld [vmem:[#allocation18 + $0x2a4] ss:$8 sps:$4 sm:$0xff]   ;;  %v8199_v19 = vld [vmem:[#allocation18 + $0x2a0] ss:$8 sps:$4 sm:$0xff]  }
 0x56c   :  { %v8186_v18 = vld [vmem:[#allocation15 + $0x86c] ss:$88 sps:$4 sm:$0xff]  }
 0x56d   :  { %3560 = vmatpush1.bf16.msra.mxu0 %v8124_v21  ;;  %6290 = vmatprep.mubr.bf16.mxu1 %v4426_v10  ;;  %v8207_v20 = vld [vmem:[#allocation18 + $0x2b4] ss:$8 sps:$4 sm:$0xff]   ;;  %v8205_v10 = vld [vmem:[#allocation18 + $0x2b0] ss:$8 sps:$4 sm:$0xff]  }
 0x56e   :  { %3561 = vmatprep.subr.bf16.mxu0 %v8132_v22  ;;  %6291 = vmatmul.mubr.bf16.vlgmr.msra.gmra.mrb[28].mxu1 %v4425_v25  ;;  %v8184_v21 = vld [vmem:[#allocation15 + $0x868] ss:$88 sps:$4 sm:$0xff]   ;;  %v8192_v22 = vld [vmem:[#allocation15 + $0x91c] ss:$88 sps:$4 sm:$0xff]   ;;  %v8190_v25 = vld [vmem:[#allocation15 + $0x918] ss:$88 sps:$4 sm:$0xff]  }
 0x56f   :  { %6300 = vmatpush1.bf16.msra.mxu1 %v8139_v23  ;;  %v8213_v23 = vld [vmem:[#allocation18 + $0x2c4] ss:$8 sps:$4 sm:$0xff]  }
 0x570   :  { %6301 = vmatprep.subr.bf16.mxu1 %v8147_v26  ;;  %v8198_v26 = vld [vmem:[#allocation15 + $0x9cc] ss:$88 sps:$4 sm:$0xff]  }
 0x571   :  { %3562 = vmatpush1.bf16.msra.mxu0 %v8130_v16  ;;  %v8211_v16 = vld [vmem:[#allocation18 + $0x2c0] ss:$8 sps:$4 sm:$0xff]  }
 0x572   :  { %3563 = vmatprep.subr.bf16.mxu0 %v8135_v27  ;;  %v8219_v27 = vld [vmem:[#allocation18 + $0x2d4] ss:$8 sps:$4 sm:$0xff]  }
 0x573   :  { %6302 = vmatpush1.bf16.msra.mxu1 %v8145_v28  ;;  %v8196_v28 = vld [vmem:[#allocation15 + $0x9c8] ss:$88 sps:$4 sm:$0xff]  }
 0x574   :  { %6303 = vmatprep.subr.bf16.mxu1 %v8153_v29  ;;  %v8204_v29 = vld [vmem:[#allocation15 + $0xa7c] ss:$88 sps:$4 sm:$0xff]  }
 0x575   :  { %3564 = vmatpush1.bf16.msra.mxu0 %v8133_v30  ;;  %v8217_v30 = vld [vmem:[#allocation18 + $0x2d0] ss:$8 sps:$4 sm:$0xff]  }
 0x576   :  { %3565 = vmatprep.subr.bf16.mxu0 %v8138_v31  ;;  %v8225_v31 = vld [vmem:[#allocation18 + $0x2e4] ss:$8 sps:$4 sm:$0xff]  }
 0x577   :  { %6304 = vmatpush1.bf16.msra.mxu1 %v8151_v32  ;;  %v8202_v32 = vld [vmem:[#allocation15 + $0xa78] ss:$88 sps:$4 sm:$0xff]  }
 0x578   :  { %6305 = vmatprep.subr.bf16.mxu1 %v8159_v35  ;;  %v8210_v35 = vld [vmem:[#allocation15 + $0x34] ss:$88 sps:$4 sm:$0xff]  }
 0x579   :  { %3566 = vmatpush1.bf16.msra.mxu0 %v8136_v36  ;;  %v8223_v36 = vld [vmem:[#allocation18 + $0x2e0] ss:$8 sps:$4 sm:$0xff]  }
 0x57a   :  { %3567 = vmatprep.subr.bf16.mxu0 %v8144_v37  ;;  %v8231_v37 = vld [vmem:[#allocation18 + $0x2f4] ss:$8 sps:$4 sm:$0xff]  }
 0x57b   :  { %6306 = vmatpush1.bf16.msra.mxu1 %v8157_v38  ;;  %v8208_v38 = vld [vmem:[#allocation15 + $0x30] ss:$88 sps:$4 sm:$0xff]  }
 0x57c   :  { %6307 = vmatprep.subr.bf16.mxu1 %v8165_v39  ;;  %v8216_v39 = vld [vmem:[#allocation15 + $0xe4] ss:$88 sps:$4 sm:$0xff]  }
 0x57d   :  { %3568 = vmatpush1.bf16.msra.mxu0 %v8142_v40  ;;  %v8229_v40 = vld [vmem:[#allocation18 + $0x2f0] ss:$8 sps:$4 sm:$0xff]  }
 0x57e   :  { %3569 = vmatprep.subr.bf16.mxu0 %v8150_v41  ;;  %v9556_v41 = vsub.s32 4, %v9465_v61 }
 0x57f   :  { %6308 = vmatpush1.bf16.msra.mxu1 %v8163_v42  ;;  %v8237_v42 = vld [vmem:[#allocation18 + $0x304] ss:$8 sps:$4 sm:$0xff]  }
 0x580   :  { %6309 = vmatprep.subr.bf16.mxu1 %v8171_v43  ;;  %v8214_v43 = vld [vmem:[#allocation15 + $0xe0] ss:$88 sps:$4 sm:$0xff]  }
 0x581   :  { %3570 = vmatpush1.bf16.msra.mxu0 %v8148_v44  ;;  %v9560_v44 = vsub.s32 5, %v9465_v61 }
 0x582   :  { %3571 = vmatprep.subr.bf16.mxu0 %v8156_v47  ;;  %v8222_v47 = vld [vmem:[#allocation15 + $0x194] ss:$88 sps:$4 sm:$0xff]  }
 0x583   :  { %6310 = vmatpush1.bf16.msra.mxu1 %v8169_v48  ;;  %v1073_v48 = vrot.slane %v9514_v3, %v9556_v41 }
 0x584   :  { %6311 = vmatprep.subr.bf16.mxu1 %v8177_v49  ;;  %v8220_v49 = vld [vmem:[#allocation15 + $0x190] ss:$88 sps:$4 sm:$0xff]  }
 0x585   :  { %3572 = vmatpush1.bf16.msra.mxu0 %v8154_v51  ;;  %v1077_v51 = vrot.slane %v9514_v3, %v9560_v44 }
 0x586   :  { %3573 = vmatprep.subr.bf16.mxu0 %v8162_v52  ;;  %v8228_v52 = vld [vmem:[#allocation15 + $0x244] ss:$88 sps:$4 sm:$0xff]  }
 0x587   :  { %6312 = vmatpush1.bf16.msra.mxu1 %v8175_v0 }
 0x588   :  { %6313 = vmatprep.subr.bf16.mxu1 %v8183_v53 }
 0x589   :  { %3574 = vmatpush1.bf16.msra.mxu0 %v8160_v54 }
 0x58a   :  { %3575 = vmatprep.subr.bf16.mxu0 %v8168_v55 }
 0x58b   :  { %6314 = vmatpush1.bf16.msra.mxu1 %v8181_v58 }
 0x58c   :  { %6315 = vmatprep.subr.bf16.mxu1 %v8189_v59  ;;  %v8226_v59 = vld [vmem:[#allocation15 + $0x240] ss:$88 sps:$4 sm:$0xff]  }
 0x58d   :  { %3576 = vmatpush1.bf16.msra.mxu0 %v8166_v60 }
 0x58e   :  { %3577 = vmatprep.subr.bf16.mxu0 %v8174_v63 }
 0x58f   :  { %6316 = vmatpush1.bf16.msra.mxu1 %v8187_v4  ;;  %v8234_v4 = vld [vmem:[#allocation15 + $0x2f4] ss:$88 sps:$4 sm:$0xff]  }
 0x590   :  { %6317 = vmatprep.subr.bf16.mxu1 %v8195_v5 }
 0x591   :  { %3578 = vmatpush1.bf16.msra.mxu0 %v8172_v6 }
 0x592   :  { %3579 = vmatprep.subr.bf16.mxu0 %v8180_v7  ;;  %v8232_v7 = vld [vmem:[#allocation15 + $0x2f0] ss:$88 sps:$4 sm:$0xff]  }
 0x593   :  { %6318 = vmatpush1.bf16.msra.mxu1 %v8193_v8  ;;  %v8235_v8 = vld [vmem:[#allocation18 + $0x300] ss:$8 sps:$4 sm:$0xff]  }
 0x594   :  { %6319 = vmatprep.subr.bf16.mxu1 %v8201_v9 }
 0x595   :  { %3580 = vmatpush1.bf16.msra.mxu0 %v8178_v17  ;;  %v8240_v17 = vld [vmem:[#allocation15 + $0x3a4] ss:$88 sps:$4 sm:$0xff]  }
 0x596   :  { %3581 = vmatprep.subr.bf16.mxu0 %v8186_v18  ;;  %v8243_v18 = vld [vmem:[#allocation18 + $0x314] ss:$8 sps:$4 sm:$0xff]  }
 0x597   :  { %6320 = vmatpush1.bf16.msra.mxu1 %v8199_v19  ;;  %v8238_v19 = vld [vmem:[#allocation15 + $0x3a0] ss:$88 sps:$4 sm:$0xff]  }
 0x598   :  { %6321 = vmatprep.subr.bf16.mxu1 %v8207_v20  ;;  %v8241_v20 = vld [vmem:[#allocation18 + $0x310] ss:$8 sps:$4 sm:$0xff]  }
 0x599   :  { %3582 = vmatpush1.bf16.msra.mxu0 %v8184_v21  ;;  %v8246_v21 = vld [vmem:[#allocation15 + $0x454] ss:$88 sps:$4 sm:$0xff]  }
 0x59a   :  { %3583 = vmatprep.subr.bf16.mxu0 %v8192_v22  ;;  %v8249_v22 = vld [vmem:[#allocation18 + $0x324] ss:$8 sps:$4 sm:$0xff]  }
 0x59b   :  { %6322 = vmatpush1.bf16.msra.mxu1 %v8205_v10  ;;  %v8244_v10 = vld [vmem:[#allocation15 + $0x450] ss:$88 sps:$4 sm:$0xff]  }
 0x59c   :  { %6323 = vmatprep.subr.bf16.mxu1 %v8213_v23  ;;  %v8247_v23 = vld [vmem:[#allocation18 + $0x320] ss:$8 sps:$4 sm:$0xff]  }
 0x59d   :  { %3584 = vmatpush1.bf16.msra.mxu0 %v8190_v25  ;;  %v8252_v25 = vld [vmem:[#allocation15 + $0x504] ss:$88 sps:$4 sm:$0xff]  }
 0x59e   :  { %3585 = vmatprep.subr.bf16.mxu0 %v8198_v26  ;;  %v8255_v26 = vld [vmem:[#allocation18 + $0x334] ss:$8 sps:$4 sm:$0xff]  }
 0x59f   :  { %6324 = vmatpush1.bf16.msra.mxu1 %v8211_v16  ;;  %v8250_v16 = vld [vmem:[#allocation15 + $0x500] ss:$88 sps:$4 sm:$0xff]  }
 0x5a0   :  { %6325 = vmatprep.subr.bf16.mxu1 %v8219_v27  ;;  %v8253_v27 = vld [vmem:[#allocation18 + $0x330] ss:$8 sps:$4 sm:$0xff]  }
 0x5a1   :  { %3586 = vmatpush1.bf16.msra.mxu0 %v8196_v28  ;;  %v8258_v28 = vld [vmem:[#allocation15 + $0x5b4] ss:$88 sps:$4 sm:$0xff]  }
 0x5a2   :  { %3587 = vmatprep.subr.bf16.mxu0 %v8204_v29  ;;  %v8261_v29 = vld [vmem:[#allocation18 + $0x344] ss:$8 sps:$4 sm:$0xff]  }
 0x5a3   :  { %6326 = vmatpush1.bf16.msra.mxu1 %v8217_v30  ;;  %v8256_v30 = vld [vmem:[#allocation15 + $0x5b0] ss:$88 sps:$4 sm:$0xff]  }
 0x5a4   :  { %6327 = vmatprep.subr.bf16.mxu1 %v8225_v31  ;;  %v8259_v31 = vld [vmem:[#allocation18 + $0x340] ss:$8 sps:$4 sm:$0xff]  }
 0x5a5   :  { %3588 = vmatpush1.bf16.msra.mxu0 %v8202_v32  ;;  %v8264_v32 = vld [vmem:[#allocation15 + $0x664] ss:$88 sps:$4 sm:$0xff]  }
 0x5a6   :  { %3639 = vmatprep.subr.bf16.mxu0 %v8210_v35  ;;  %v8267_v35 = vld [vmem:[#allocation18 + $0x354] ss:$8 sps:$4 sm:$0xff]  }
 0x5a7   :  { %6328 = vmatpush1.bf16.msra.mxu1 %v8223_v36  ;;  %v8262_v36 = vld [vmem:[#allocation15 + $0x660] ss:$88 sps:$4 sm:$0xff]  }
 0x5a8   :  { %3590 = vmatmul.mubr.bf16.vlgmr.msra.gmra.mrb[24].mxu0 %v9477_v13  ;;  %6329 = vmatprep.subr.bf16.mxu1 %v8231_v37  ;;  %v8265_v37 = vld [vmem:[#allocation18 + $0x350] ss:$8 sps:$4 sm:$0xff]  }
 0x5a9   :  { %3640 = vmatpush1.bf16.msra.mxu0 %v8208_v38  ;;  %3671 = vmatprep.mubr.bf16.mxu0 %v9475_v11  ;;  %v8270_v38 = vld [vmem:[#allocation15 + $0x714] ss:$88 sps:$4 sm:$0xff]  }
 0x5aa   :  { %3641 = vmatprep.subr.bf16.mxu0 %v8216_v39  ;;  %v8273_v39 = vld [vmem:[#allocation18 + $0x364] ss:$8 sps:$4 sm:$0xff]  }
 0x5ab   :  { %6330 = vmatpush1.bf16.msra.mxu1 %v8229_v40  ;;  %v8268_v40 = vld [vmem:[#allocation15 + $0x710] ss:$88 sps:$4 sm:$0xff]  }
 0x5ac   :  { %6340 = vmatprep.subr.bf16.mxu1 %v8237_v42  ;;  %v8271_v42 = vld [vmem:[#allocation18 + $0x360] ss:$8 sps:$4 sm:$0xff]  }
 0x5ad   :  { %3642 = vmatpush1.bf16.msra.mxu0 %v8214_v43  ;;  %v8276_v43 = vld [vmem:[#allocation15 + $0x7c4] ss:$88 sps:$4 sm:$0xff]  }
 0x5ae   :  { %3643 = vmatprep.subr.bf16.mxu0 %v8222_v47  ;;  %v8279_v47 = vld [vmem:[#allocation18 + $0x374] ss:$8 sps:$4 sm:$0xff]  }
 0x5af   :  { %v3386_v0 = vpop.f32.mrb[12].mxu0 }
 0x5b0   :  { %v7626_v53 = vadd.f32 %v3386_v0, %v1073_v48  ;;  %v3388_v54 = vpop.f32.mrb[13].mxu0  ;;  %v8274_v48 = vld [vmem:[#allocation15 + $0x7c0] ss:$88 sps:$4 sm:$0xff]   ;;  %v8280_v0 = vld [vmem:[#allocation15 + $0x870] ss:$88 sps:$4 sm:$0xff]  }
 0x5b1   :  { %3644 = vmatpush1.bf16.msra.mxu0 %v8220_v49  ;;  %v7627_v55 = vadd.f32 %v3388_v54, %v1077_v51  ;;  %v3390_v58 = vpop.f32.mrb[14].mxu0  ;;  %v8277_v49 = vld [vmem:[#allocation18 + $0x370] ss:$8 sps:$4 sm:$0xff]  }
 0x5b2   :  { %v4053_v60 = vmax.f32 %v7626_v53, 0.0  ;;  %v3391_v63 = vpop.f32.mrb[15].mxu0  ;;  %3645 = vmatprep.subr.bf16.mxu0 %v8228_v52  ;;  %v8282_v51 = vld [vmem:[#allocation15 + $0x874] ss:$88 sps:$4 sm:$0xff]   ;;  %v8285_v52 = vld [vmem:[#allocation18 + $0x384] ss:$8 sps:$4 sm:$0xff]  }
 0x5b3   :  { %v4054_v5 = vmax.f32 %v7627_v55, 0.0  ;;  %v8283_v53 = vld [vmem:[#allocation18 + $0x380] ss:$8 sps:$4 sm:$0xff]   ;;  %v8291_v55 = vld [vmem:[#allocation18 + $0x394] ss:$8 sps:$4 sm:$0xff]  }
 0x5b4   :  { %v4427_v9 = vpack.c.bf16 %v4053_v60, %v4053_v60  ;;  %v8288_v54 = vld [vmem:[#allocation15 + $0x924] ss:$88 sps:$4 sm:$0xff]   ;;  %v8286_v58 = vld [vmem:[#allocation15 + $0x920] ss:$88 sps:$4 sm:$0xff]   ;;  %v8294_v60 = vld [vmem:[#allocation15 + $0x9d4] ss:$88 sps:$4 sm:$0xff]  }
 0x5b5   :  { %v4428_v6 = vpack.c.bf16 %v4054_v5, %v4054_v5  ;;  %3646 = vmatpush1.bf16.msra.mxu0 %v8226_v59  ;;  %v8289_v59 = vld [vmem:[#allocation18 + $0x390] ss:$8 sps:$4 sm:$0xff]   ;;  %v8297_v63 = vld [vmem:[#allocation18 + $0x3a4] ss:$8 sps:$4 sm:$0xff]   ;;  %v8295_v5 = vld [vmem:[#allocation18 + $0x3a0] ss:$8 sps:$4 sm:$0xff]  }
 0x5b6   :  { %3647 = vmatprep.subr.bf16.mxu0 %v8234_v4  ;;  %v8292_v4 = vld [vmem:[#allocation15 + $0x9d0] ss:$88 sps:$4 sm:$0xff]  }
 0x5b7   :  { %6331 = vmatprep.mubr.bf16.mxu1 %v4428_v6  ;;  %v8300_v6 = vld [vmem:[#allocation15 + $0xa84] ss:$88 sps:$4 sm:$0xff]  }
 0x5b8   :  { %6332 = vmatmul.mubr.bf16.vlgmr.msra.gmra.mrb[28].mxu1 %v4427_v9  ;;  %v8301_v9 = vld [vmem:[#allocation18 + $0x3b0] ss:$8 sps:$4 sm:$0xff]  }
 0x5b9   :  { %3648 = vmatpush1.bf16.msra.mxu0 %v8232_v7  ;;  %6341 = vmatpush1.bf16.msra.mxu1 %v8235_v8  ;;  %v8303_v7 = vld [vmem:[#allocation18 + $0x3b4] ss:$8 sps:$4 sm:$0xff]   ;;  %v8298_v8 = vld [vmem:[#allocation15 + $0xa80] ss:$88 sps:$4 sm:$0xff]  }
 0x5ba   :  { %3649 = vmatprep.subr.bf16.mxu0 %v8240_v17  ;;  %6342 = vmatprep.subr.bf16.mxu1 %v8243_v18  ;;  %v8306_v17 = vld [vmem:[#allocation15 + $0xb34] ss:$88 sps:$4 sm:$0xff]   ;;  %v8309_v18 = vld [vmem:[#allocation18 + $0x3c4] ss:$8 sps:$4 sm:$0xff]  }
 0x5bd   :  { %3650 = vmatpush1.bf16.msra.mxu0 %v8238_v19  ;;  %6343 = vmatpush1.bf16.msra.mxu1 %v8241_v20  ;;  %v8304_v19 = vld [vmem:[#allocation15 + $0xb30] ss:$88 sps:$4 sm:$0xff]   ;;  %v8307_v20 = vld [vmem:[#allocation18 + $0x3c0] ss:$8 sps:$4 sm:$0xff]  }
 0x5be   :  { %3651 = vmatprep.subr.bf16.mxu0 %v8246_v21  ;;  %6344 = vmatprep.subr.bf16.mxu1 %v8249_v22  ;;  %v8312_v21 = vld [vmem:[#allocation15 + $0xbe4] ss:$88 sps:$4 sm:$0xff]   ;;  %v8315_v22 = vld [vmem:[#allocation18 + $0x3d4] ss:$8 sps:$4 sm:$0xff]  }
 0x5c1   :  { %3652 = vmatpush1.bf16.msra.mxu0 %v8244_v10  ;;  %6345 = vmatpush1.bf16.msra.mxu1 %v8247_v23  ;;  %v1080_v10 = vsub.s32 6, %v9465_v61  ;;  %v8310_v23 = vld [vmem:[#allocation15 + $0xbe0] ss:$88 sps:$4 sm:$0xff]  }
 0x5c2   :  { %3653 = vmatprep.subr.bf16.mxu0 %v8252_v25  ;;  %6346 = vmatprep.subr.bf16.mxu1 %v8255_v26  ;;  %v8313_v25 = vld [vmem:[#allocation18 + $0x3d0] ss:$8 sps:$4 sm:$0xff]   ;;  %v1084_v26 = vsub.s32 7, %v9465_v61 }
 0x5c5   :  { %3654 = vmatpush1.bf16.msra.mxu0 %v8250_v16  ;;  %6347 = vmatpush1.bf16.msra.mxu1 %v8253_v27  ;;  %v8318_v16 = vld [vmem:[#allocation15 + $0x3c] ss:$88 sps:$4 sm:$0xff]  }
 0x5c6   :  { %3655 = vmatprep.subr.bf16.mxu0 %v8258_v28  ;;  %6348 = vmatprep.subr.bf16.mxu1 %v8261_v29  ;;  %v8321_v27 = vld [vmem:[#allocation18 + $0x3e4] ss:$8 sps:$4 sm:$0xff]   ;;  %v1081_v28 = vrot.slane %v9514_v3, %v1080_v10  ;;  %v1085_v29 = vrot.slane %v9514_v3, %v1084_v26 }
 0x5c7   :  { %v8339_v3 = vld [vmem:[#allocation18 + $0x404] ss:$8 sps:$4 sm:$0xff]  }
 0x5c9   :  { %3656 = vmatpush1.bf16.msra.mxu0 %v8256_v30  ;;  %6349 = vmatpush1.bf16.msra.mxu1 %v8259_v31  ;;  %v8319_v30 = vld [vmem:[#allocation18 + $0x3e0] ss:$8 sps:$4 sm:$0xff]   ;;  %v8327_v31 = vld [vmem:[#allocation18 + $0x3f4] ss:$8 sps:$4 sm:$0xff]  }
 0x5ca   :  { %3657 = vmatprep.subr.bf16.mxu0 %v8264_v32  ;;  %6350 = vmatprep.subr.bf16.mxu1 %v8267_v35 }
 0x5cd   :  { %3658 = vmatpush1.bf16.msra.mxu0 %v8262_v36  ;;  %6351 = vmatpush1.bf16.msra.mxu1 %v8265_v37 }
 0x5ce   :  { %3659 = vmatprep.subr.bf16.mxu0 %v8270_v38  ;;  %6352 = vmatprep.subr.bf16.mxu1 %v8273_v39  ;;  %v8316_v39 = vld [vmem:[#allocation15 + $0x38] ss:$88 sps:$4 sm:$0xff]  }
 0x5d1   :  { %3660 = vmatpush1.bf16.msra.mxu0 %v8268_v40  ;;  %6353 = vmatpush1.bf16.msra.mxu1 %v8271_v42 }
 0x5d2   :  { %3661 = vmatprep.subr.bf16.mxu0 %v8276_v43  ;;  %6354 = vmatprep.subr.bf16.mxu1 %v8279_v47  ;;  %v8324_v43 = vld [vmem:[#allocation15 + $0xec] ss:$88 sps:$4 sm:$0xff]  }
 0x5d3   :  { %v8325_v47 = vld [vmem:[#allocation18 + $0x3f0] ss:$8 sps:$4 sm:$0xff]  }
 0x5d5   :  { %3662 = vmatpush1.bf16.msra.mxu0 %v8274_v48  ;;  %6355 = vmatpush1.bf16.msra.mxu1 %v8277_v49 }
 0x5d6   :  { %3663 = vmatprep.subr.bf16.mxu0 %v8282_v51  ;;  %6356 = vmatprep.subr.bf16.mxu1 %v8285_v52  ;;  %v8322_v52 = vld [vmem:[#allocation15 + $0xe8] ss:$88 sps:$4 sm:$0xff]  }
 0x5d9   :  { %3664 = vmatpush1.bf16.msra.mxu0 %v8280_v0  ;;  %6357 = vmatpush1.bf16.msra.mxu1 %v8283_v53  ;;  %v8330_v0 = vld [vmem:[#allocation15 + $0x19c] ss:$88 sps:$4 sm:$0xff]  }
 0x5da   :  { %3665 = vmatprep.subr.bf16.mxu0 %v8288_v54  ;;  %6358 = vmatprep.subr.bf16.mxu1 %v8291_v55  ;;  %v8337_v53 = vld [vmem:[#allocation18 + $0x400] ss:$8 sps:$4 sm:$0xff]   ;;  %v8345_v55 = vld [vmem:[#allocation18 + $0x414] ss:$8 sps:$4 sm:$0xff]  }
 0x5dd   :  { %3666 = vmatpush1.bf16.msra.mxu0 %v8286_v58  ;;  %6359 = vmatpush1.bf16.msra.mxu1 %v8289_v59  ;;  %v8333_v58 = vld [vmem:[#allocation15 + $0x24c] ss:$88 sps:$4 sm:$0xff]  }
 0x5de   :  { %3667 = vmatprep.subr.bf16.mxu0 %v8294_v60  ;;  %6360 = vmatprep.subr.bf16.mxu1 %v8297_v63  ;;  %v8343_v59 = vld [vmem:[#allocation18 + $0x410] ss:$8 sps:$4 sm:$0xff]   ;;  %v8351_v60 = vld [vmem:[#allocation18 + $0x424] ss:$8 sps:$4 sm:$0xff]  }
 0x5df   :  { %v8331_v63 = vld [vmem:[#allocation15 + $0x248] ss:$88 sps:$4 sm:$0xff]  }
 0x5e1   :  { %3668 = vmatpush1.bf16.msra.mxu0 %v8292_v4  ;;  %6361 = vmatpush1.bf16.msra.mxu1 %v8295_v5  ;;  %v8336_v4 = vld [vmem:[#allocation15 + $0x2fc] ss:$88 sps:$4 sm:$0xff]  }
 0x5e2   :  { %3669 = vmatprep.subr.bf16.mxu0 %v8300_v6  ;;  %6362 = vmatprep.subr.bf16.mxu1 %v8303_v7  ;;  %v8349_v5 = vld [vmem:[#allocation18 + $0x420] ss:$8 sps:$4 sm:$0xff]   ;;  %v8357_v6 = vld [vmem:[#allocation18 + $0x434] ss:$8 sps:$4 sm:$0xff]  }
 0x5e3   :  { %v8334_v7 = vld [vmem:[#allocation15 + $0x2f8] ss:$88 sps:$4 sm:$0xff]  }
 0x5e5   :  { %3670 = vmatpush1.bf16.msra.mxu0 %v8298_v8  ;;  %6363 = vmatpush1.bf16.msra.mxu1 %v8301_v9  ;;  %v8342_v8 = vld [vmem:[#allocation15 + $0x3ac] ss:$88 sps:$4 sm:$0xff]  }
 0x5e6   :  { %3680 = vmatprep.subr.bf16.mxu0 %v8306_v17  ;;  %6364 = vmatprep.subr.bf16.mxu1 %v8309_v18  ;;  %v8355_v9 = vld [vmem:[#allocation18 + $0x430] ss:$8 sps:$4 sm:$0xff]   ;;  %v8363_v17 = vld [vmem:[#allocation18 + $0x444] ss:$8 sps:$4 sm:$0xff]  }
 0x5e7   :  { %v8340_v18 = vld [vmem:[#allocation15 + $0x3a8] ss:$88 sps:$4 sm:$0xff]  }
 0x5e8   :  { %3672 = vmatmul.mubr.bf16.vlgmr.msra.gmra.mrb[28].mxu0 %v9477_v13 }
 0x5e9   :  { %3681 = vmatpush1.bf16.msra.mxu0 %v8304_v19  ;;  %6365 = vmatpush1.bf16.msra.mxu1 %v8307_v20  ;;  %v8348_v19 = vld [vmem:[#allocation15 + $0x45c] ss:$88 sps:$4 sm:$0xff]  }
 0x5ea   :  { %3682 = vmatprep.subr.bf16.mxu0 %v8312_v21  ;;  %6366 = vmatprep.subr.bf16.mxu1 %v8315_v22  ;;  %v8361_v20 = vld [vmem:[#allocation18 + $0x440] ss:$8 sps:$4 sm:$0xff]   ;;  %v8369_v21 = vld [vmem:[#allocation18 + $0x454] ss:$8 sps:$4 sm:$0xff]  }
 0x5eb   :  { %3712 = vmatprep.mubr.bf16.mxu0 %v9161_v1  ;;  %v8346_v22 = vld [vmem:[#allocation15 + $0x458] ss:$88 sps:$4 sm:$0xff]  }
 0x5ed   :  { %3683 = vmatpush1.bf16.msra.mxu0 %v8310_v23  ;;  %6367 = vmatpush1.bf16.msra.mxu1 %v8313_v25  ;;  %v8354_v23 = vld [vmem:[#allocation15 + $0x50c] ss:$88 sps:$4 sm:$0xff]  }
 0x5ee   :  { %3721 = vmatprep.subr.bf16.mxu0 %v8318_v16  ;;  %6368 = vmatprep.subr.bf16.mxu1 %v8321_v27  ;;  %v8367_v25 = vld [vmem:[#allocation18 + $0x450] ss:$8 sps:$4 sm:$0xff]   ;;  %v8375_v16 = vld [vmem:[#allocation18 + $0x464] ss:$8 sps:$4 sm:$0xff]  }
 0x5ef   :  { %v3427_v32 = vpop.f32.mrb[16].mxu0  ;;  %v8352_v27 = vld [vmem:[#allocation15 + $0x508] ss:$88 sps:$4 sm:$0xff]  }
 0x5f0   :  { %v3428_v35 = vadd.f32 %v3427_v32, %v1081_v28  ;;  %v3429_v36 = vpop.f32.mrb[17].mxu0  ;;  %v8360_v28 = vld [vmem:[#allocation15 + $0x5bc] ss:$88 sps:$4 sm:$0xff]   ;;  %v8366_v32 = vld [vmem:[#allocation15 + $0x66c] ss:$88 sps:$4 sm:$0xff]  }
 0x5f1   :  { %v3430_v37 = vadd.f32 %v3429_v36, %v1085_v29  ;;  %v3431_v38 = vpop.f32.mrb[18].mxu0  ;;  %6369 = vmatpush1.bf16.msra.mxu1 %v8319_v30  ;;  %v8373_v29 = vld [vmem:[#allocation18 + $0x460] ss:$8 sps:$4 sm:$0xff]   ;;  %v8381_v30 = vld [vmem:[#allocation18 + $0x474] ss:$8 sps:$4 sm:$0xff]  }
 0x5f2   :  { %v3469_v40 = vadd.f32 %v9524_v33, %v3428_v35  ;;  %v3432_v42 = vpop.f32.mrb[19].mxu0  ;;  %6370 = vmatprep.subr.bf16.mxu1 %v8327_v31  ;;  %v8358_v31 = vld [vmem:[#allocation15 + $0x5b8] ss:$88 sps:$4 sm:$0xff]   ;;  %v8372_v38 = vld [vmem:[#allocation15 + $0x71c] ss:$88 sps:$4 sm:$0xff]  }
 0x5f3   :  { %v3471_v48 = vadd.f32 %v9526_v34, %v3430_v37  ;;  %v8328_v34 = vld [vmem:[#allocation15 + $0x198] ss:$88 sps:$4 sm:$0xff]   ;;  %v8364_v37 = vld [vmem:[#allocation15 + $0x668] ss:$88 sps:$4 sm:$0xff]  }
 0x5f4   :  { %v4055_v49 = vmax.f32 %v3469_v40, 0.0  ;;  %7101 = vmatmul.mubr.msk.bf16.vlgmr.msra.gmra.mrb[28].mxu0 %vm291_vm3, %v9486_v24  ;;  %v8379_v35 = vld [vmem:[#allocation18 + $0x470] ss:$8 sps:$4 sm:$0xff]   ;;  %v8387_v36 = vld [vmem:[#allocation18 + $0x484] ss:$8 sps:$4 sm:$0xff]  }
 0x5f5   :  { %v4056_v51 = vmax.f32 %v3471_v48, 0.0  ;;  %3722 = vmatpush1.bf16.msra.mxu0 %v8316_v39  ;;  %3753 = vmatprep.mubr.bf16.mxu0 %v9475_v11  ;;  %v8385_v39 = vld [vmem:[#allocation18 + $0x480] ss:$8 sps:$4 sm:$0xff]   ;;  %v8393_v40 = vld [vmem:[#allocation18 + $0x494] ss:$8 sps:$4 sm:$0xff]  }
 0x5f6   :  { %3723 = vmatprep.subr.bf16.mxu0 %v8324_v43  ;;  %6371 = vmatpush1.bf16.msra.mxu1 %v8325_v47  ;;  %v4429_v54 = vpack.c.bf16 %v4055_v49, %v4055_v49  ;;  %v8370_v42 = vld [vmem:[#allocation15 + $0x718] ss:$88 sps:$4 sm:$0xff]   ;;  %v8378_v43 = vld [vmem:[#allocation15 + $0x7cc] ss:$88 sps:$4 sm:$0xff]   ;;  %v8384_v49 = vld [vmem:[#allocation15 + $0x87c] ss:$88 sps:$4 sm:$0xff]  }
 0x5f7   :  { %v4430_v33 = vpack.c.bf16 %v4056_v51, %v4056_v51  ;;  %6381 = vmatprep.subr.bf16.mxu1 %v8339_v3  ;;  %v8391_v47 = vld [vmem:[#allocation18 + $0x490] ss:$8 sps:$4 sm:$0xff]   ;;  %v8399_v48 = vld [vmem:[#allocation18 + $0x4a4] ss:$8 sps:$4 sm:$0xff]   ;;  %v8397_v51 = vld [vmem:[#allocation18 + $0x4a0] ss:$8 sps:$4 sm:$0xff]  }
 0x5f8   :  { %v8376_v3 = vld [vmem:[#allocation15 + $0x7c8] ss:$88 sps:$4 sm:$0xff]  }
 0x5f9   :  { %3724 = vmatpush1.bf16.msra.mxu0 %v8322_v52  ;;  %6372 = vmatprep.mubr.bf16.mxu1 %v4430_v33  ;;  %v8405_v52 = vld [vmem:[#allocation18 + $0x4b4] ss:$8 sps:$4 sm:$0xff]  }
 0x5fa   :  { %3725 = vmatprep.subr.bf16.mxu0 %v8330_v0  ;;  %6373 = vmatmul.mubr.bf16.vlgmr.msra.gmra.mrb[28].mxu1 %v4429_v54  ;;  %v8382_v0 = vld [vmem:[#allocation15 + $0x878] ss:$88 sps:$4 sm:$0xff]   ;;  %v8390_v33 = vld [vmem:[#allocation15 + $0x92c] ss:$88 sps:$4 sm:$0xff]  }
 0x5fb   :  { %6382 = vmatpush1.bf16.msra.mxu1 %v8337_v53  ;;  %v8403_v53 = vld [vmem:[#allocation18 + $0x4b0] ss:$8 sps:$4 sm:$0xff]   ;;  %v8411_v54 = vld [vmem:[#allocation18 + $0x4c4] ss:$8 sps:$4 sm:$0xff]  }
 0x5fc   :  { %6383 = vmatprep.subr.bf16.mxu1 %v8345_v55  ;;  %v8388_v55 = vld [vmem:[#allocation15 + $0x928] ss:$88 sps:$4 sm:$0xff]  }
 0x5fd   :  { %3726 = vmatpush1.bf16.msra.mxu0 %v8328_v34  ;;  %v8396_v34 = vld [vmem:[#allocation15 + $0x9dc] ss:$88 sps:$4 sm:$0xff]  }
 0x5fe   :  { %3727 = vmatprep.subr.bf16.mxu0 %v8333_v58  ;;  %v8409_v58 = vld [vmem:[#allocation18 + $0x4c0] ss:$8 sps:$4 sm:$0xff]  }
 0x5ff   :  { %6384 = vmatpush1.bf16.msra.mxu1 %v8343_v59  ;;  %v8417_v59 = vld [vmem:[#allocation18 + $0x4d4] ss:$8 sps:$4 sm:$0xff]  }
 0x600   :  { %6385 = vmatprep.subr.bf16.mxu1 %v8351_v60  ;;  %v8394_v60 = vld [vmem:[#allocation15 + $0x9d8] ss:$88 sps:$4 sm:$0xff]  }
 0x601   :  { %3728 = vmatpush1.bf16.msra.mxu0 %v8331_v63  ;;  %v8402_v63 = vld [vmem:[#allocation15 + $0xa8c] ss:$88 sps:$4 sm:$0xff]  }
 0x602   :  { %3729 = vmatprep.subr.bf16.mxu0 %v8336_v4  ;;  %v8415_v4 = vld [vmem:[#allocation18 + $0x4d0] ss:$8 sps:$4 sm:$0xff]  }
 0x603   :  { %6386 = vmatpush1.bf16.msra.mxu1 %v8349_v5  ;;  %v8423_v5 = vld [vmem:[#allocation18 + $0x4e4] ss:$8 sps:$4 sm:$0xff]  }
 0x604   :  { %6387 = vmatprep.subr.bf16.mxu1 %v8357_v6  ;;  %v8400_v6 = vld [vmem:[#allocation15 + $0xa88] ss:$88 sps:$4 sm:$0xff]  }
 0x605   :  { %3730 = vmatpush1.bf16.msra.mxu0 %v8334_v7  ;;  %v8408_v7 = vld [vmem:[#allocation15 + $0x44] ss:$88 sps:$4 sm:$0xff]  }
 0x606   :  { %3731 = vmatprep.subr.bf16.mxu0 %v8342_v8  ;;  %v8421_v8 = vld [vmem:[#allocation18 + $0x4e0] ss:$8 sps:$4 sm:$0xff]  }
 0x607   :  { %6388 = vmatpush1.bf16.msra.mxu1 %v8355_v9  ;;  %v8429_v9 = vld [vmem:[#allocation18 + $0x4f4] ss:$8 sps:$4 sm:$0xff]  }
 0x608   :  { %6389 = vmatprep.subr.bf16.mxu1 %v8363_v17  ;;  %v8406_v17 = vld [vmem:[#allocation15 + $0x40] ss:$88 sps:$4 sm:$0xff]  }
 0x609   :  { %3732 = vmatpush1.bf16.msra.mxu0 %v8340_v18  ;;  %v8414_v18 = vld [vmem:[#allocation15 + $0xf4] ss:$88 sps:$4 sm:$0xff]  }
 0x60a   :  { %3733 = vmatprep.subr.bf16.mxu0 %v8348_v19  ;;  %v8427_v19 = vld [vmem:[#allocation18 + $0x4f0] ss:$8 sps:$4 sm:$0xff]  }
 0x60b   :  { %6390 = vmatpush1.bf16.msra.mxu1 %v8361_v20  ;;  %v8435_v20 = vld [vmem:[#allocation18 + $0x504] ss:$8 sps:$4 sm:$0xff]  }
 0x60c   :  { %6391 = vmatprep.subr.bf16.mxu1 %v8369_v21  ;;  %v8412_v21 = vld [vmem:[#allocation15 + $0xf0] ss:$88 sps:$4 sm:$0xff]  }
 0x60d   :  { %3734 = vmatpush1.bf16.msra.mxu0 %v8346_v22  ;;  %v9583_v22 = vld [vmem:[#allocation16 + $0x8] sm:$0xff] }
 0x60e   :  { %3735 = vmatprep.subr.bf16.mxu0 %v8354_v23  ;;  %v8420_v23 = vld [vmem:[#allocation15 + $0x1a4] ss:$88 sps:$4 sm:$0xff]  }
 0x60f   :  { %6392 = vmatpush1.bf16.msra.mxu1 %v8367_v25  ;;  %v1089_v25 = vrot.slane %v9583_v22, %v9468_v62 }
 0x610   :  { %6393 = vmatprep.subr.bf16.mxu1 %v8375_v16  ;;  %v8418_v16 = vld [vmem:[#allocation15 + $0x1a0] ss:$88 sps:$4 sm:$0xff]  }
 0x611   :  { %3736 = vmatpush1.bf16.msra.mxu0 %v8352_v27  ;;  %v1093_v27 = vrot.slane %v9583_v22, %v9471_v2 }
 0x612   :  { %3737 = vmatprep.subr.bf16.mxu0 %v8360_v28  ;;  %v8426_v28 = vld [vmem:[#allocation15 + $0x254] ss:$88 sps:$4 sm:$0xff]  }
 0x613   :  { %6394 = vmatpush1.bf16.msra.mxu1 %v8373_v29 }
 0x614   :  { %6395 = vmatprep.subr.bf16.mxu1 %v8381_v30 }
 0x615   :  { %3738 = vmatpush1.bf16.msra.mxu0 %v8358_v31 }
 0x616   :  { %3739 = vmatprep.subr.bf16.mxu0 %v8366_v32 }
 0x617   :  { %6396 = vmatpush1.bf16.msra.mxu1 %v8379_v35 }
 0x618   :  { %6397 = vmatprep.subr.bf16.mxu1 %v8387_v36  ;;  %v8424_v36 = vld [vmem:[#allocation15 + $0x250] ss:$88 sps:$4 sm:$0xff]  }
 0x619   :  { %3740 = vmatpush1.bf16.msra.mxu0 %v8364_v37 }
 0x61a   :  { %3741 = vmatprep.subr.bf16.mxu0 %v8372_v38 }
 0x61b   :  { %6398 = vmatpush1.bf16.msra.mxu1 %v8385_v39  ;;  %v8432_v39 = vld [vmem:[#allocation15 + $0x304] ss:$88 sps:$4 sm:$0xff]  }
 0x61c   :  { %6399 = vmatprep.subr.bf16.mxu1 %v8393_v40 }
 0x61d   :  { %3742 = vmatpush1.bf16.msra.mxu0 %v8370_v42 }
 0x61e   :  { %3743 = vmatprep.subr.bf16.mxu0 %v8378_v43  ;;  %v8430_v43 = vld [vmem:[#allocation15 + $0x300] ss:$88 sps:$4 sm:$0xff]  }
 0x61f   :  { %6400 = vmatpush1.bf16.msra.mxu1 %v8391_v47  ;;  %v8433_v47 = vld [vmem:[#allocation18 + $0x500] ss:$8 sps:$4 sm:$0xff]  }
 0x620   :  { %6401 = vmatprep.subr.bf16.mxu1 %v8399_v48 }
 0x621   :  { %3744 = vmatpush1.bf16.msra.mxu0 %v8376_v3  ;;  %v8438_v3 = vld [vmem:[#allocation15 + $0x3b4] ss:$88 sps:$4 sm:$0xff]  }
 0x622   :  { %3745 = vmatprep.subr.bf16.mxu0 %v8384_v49  ;;  %v8441_v49 = vld [vmem:[#allocation18 + $0x514] ss:$8 sps:$4 sm:$0xff]  }
 0x623   :  { %6402 = vmatpush1.bf16.msra.mxu1 %v8397_v51  ;;  %v8436_v51 = vld [vmem:[#allocation15 + $0x3b0] ss:$88 sps:$4 sm:$0xff]  }
 0x624   :  { %6403 = vmatprep.subr.bf16.mxu1 %v8405_v52  ;;  %v8439_v52 = vld [vmem:[#allocation18 + $0x510] ss:$8 sps:$4 sm:$0xff]  }
 0x625   :  { %3746 = vmatpush1.bf16.msra.mxu0 %v8382_v0  ;;  %v8444_v0 = vld [vmem:[#allocation15 + $0x464] ss:$88 sps:$4 sm:$0xff]  }
 0x626   :  { %3747 = vmatprep.subr.bf16.mxu0 %v8390_v33  ;;  %v8447_v33 = vld [vmem:[#allocation18 + $0x524] ss:$8 sps:$4 sm:$0xff]  }
 0x627   :  { %6404 = vmatpush1.bf16.msra.mxu1 %v8403_v53  ;;  %v8442_v53 = vld [vmem:[#allocation15 + $0x460] ss:$88 sps:$4 sm:$0xff]  }
 0x628   :  { %6405 = vmatprep.subr.bf16.mxu1 %v8411_v54  ;;  %v8445_v54 = vld [vmem:[#allocation18 + $0x520] ss:$8 sps:$4 sm:$0xff]  }
 0x629   :  { %3748 = vmatpush1.bf16.msra.mxu0 %v8388_v55  ;;  %v8450_v55 = vld [vmem:[#allocation15 + $0x514] ss:$88 sps:$4 sm:$0xff]  }
 0x62a   :  { %3749 = vmatprep.subr.bf16.mxu0 %v8396_v34  ;;  %v8453_v34 = vld [vmem:[#allocation18 + $0x534] ss:$8 sps:$4 sm:$0xff]  }
 0x62b   :  { %6406 = vmatpush1.bf16.msra.mxu1 %v8409_v58  ;;  %v8448_v58 = vld [vmem:[#allocation15 + $0x510] ss:$88 sps:$4 sm:$0xff]  }
 0x62c   :  { %6407 = vmatprep.subr.bf16.mxu1 %v8417_v59  ;;  %v8451_v59 = vld [vmem:[#allocation18 + $0x530] ss:$8 sps:$4 sm:$0xff]  }
 0x62d   :  { %3750 = vmatpush1.bf16.msra.mxu0 %v8394_v60  ;;  %v8456_v60 = vld [vmem:[#allocation15 + $0x5c4] ss:$88 sps:$4 sm:$0xff]  }
 0x62e   :  { %3751 = vmatprep.subr.bf16.mxu0 %v8402_v63  ;;  %v8459_v63 = vld [vmem:[#allocation18 + $0x544] ss:$8 sps:$4 sm:$0xff]  }
 0x62f   :  { %6408 = vmatpush1.bf16.msra.mxu1 %v8415_v4  ;;  %v8454_v4 = vld [vmem:[#allocation15 + $0x5c0] ss:$88 sps:$4 sm:$0xff]  }
 0x630   :  { %6409 = vmatprep.subr.bf16.mxu1 %v8423_v5  ;;  %v8457_v5 = vld [vmem:[#allocation18 + $0x540] ss:$8 sps:$4 sm:$0xff]  }
 0x631   :  { %3752 = vmatpush1.bf16.msra.mxu0 %v8400_v6  ;;  %v8462_v6 = vld [vmem:[#allocation15 + $0x674] ss:$88 sps:$4 sm:$0xff]  }
 0x632   :  { %3803 = vmatprep.subr.bf16.mxu0 %v8408_v7  ;;  %v8465_v7 = vld [vmem:[#allocation18 + $0x554] ss:$8 sps:$4 sm:$0xff]  }
 0x633   :  { %6410 = vmatpush1.bf16.msra.mxu1 %v8421_v8  ;;  %v8460_v8 = vld [vmem:[#allocation15 + $0x670] ss:$88 sps:$4 sm:$0xff]  }
 0x634   :  { %3754 = vmatmul.mubr.bf16.vlgmr.msra.gmra.mrb[32].mxu0 %v9477_v13  ;;  %6411 = vmatprep.subr.bf16.mxu1 %v8429_v9  ;;  %v8463_v9 = vld [vmem:[#allocation18 + $0x550] ss:$8 sps:$4 sm:$0xff]  }
 0x635   :  { %3804 = vmatpush1.bf16.msra.mxu0 %v8406_v17  ;;  %3835 = vmatprep.mubr.bf16.mxu0 %v9475_v11  ;;  %v8468_v17 = vld [vmem:[#allocation15 + $0x724] ss:$88 sps:$4 sm:$0xff]  }
 0x636   :  { %3805 = vmatprep.subr.bf16.mxu0 %v8414_v18  ;;  %v8471_v18 = vld [vmem:[#allocation18 + $0x564] ss:$8 sps:$4 sm:$0xff]  }
 0x637   :  { %6412 = vmatpush1.bf16.msra.mxu1 %v8427_v19  ;;  %v8466_v19 = vld [vmem:[#allocation15 + $0x720] ss:$88 sps:$4 sm:$0xff]  }
 0x638   :  { %6422 = vmatprep.subr.bf16.mxu1 %v8435_v20  ;;  %v8469_v20 = vld [vmem:[#allocation18 + $0x560] ss:$8 sps:$4 sm:$0xff]  }
 0x639   :  { %3806 = vmatpush1.bf16.msra.mxu0 %v8412_v21  ;;  %v8474_v21 = vld [vmem:[#allocation15 + $0x7d4] ss:$88 sps:$4 sm:$0xff]  }
 0x63a   :  { %3807 = vmatprep.subr.bf16.mxu0 %v8420_v23  ;;  %v8477_v23 = vld [vmem:[#allocation18 + $0x574] ss:$8 sps:$4 sm:$0xff]  }
 0x63b   :  { %v3550_v29 = vpop.f32.mrb[20].mxu0 }
 0x63c   :  { %v7632_v30 = vadd.f32 %v3550_v29, %v1089_v25  ;;  %v3552_v31 = vpop.f32.mrb[21].mxu0  ;;  %v8472_v25 = vld [vmem:[#allocation15 + $0x7d0] ss:$88 sps:$4 sm:$0xff]   ;;  %v8478_v29 = vld [vmem:[#allocation15 + $0x880] ss:$88 sps:$4 sm:$0xff]  }
 0x63d   :  { %3808 = vmatpush1.bf16.msra.mxu0 %v8418_v16  ;;  %v7633_v32 = vadd.f32 %v3552_v31, %v1093_v27  ;;  %v3554_v35 = vpop.f32.mrb[22].mxu0  ;;  %v8475_v16 = vld [vmem:[#allocation18 + $0x570] ss:$8 sps:$4 sm:$0xff]  }
 0x63e   :  { %v4057_v37 = vmax.f32 %v7632_v30, 0.0  ;;  %v3555_v38 = vpop.f32.mrb[23].mxu0  ;;  %3809 = vmatprep.subr.bf16.mxu0 %v8426_v28  ;;  %v8480_v27 = vld [vmem:[#allocation15 + $0x884] ss:$88 sps:$4 sm:$0xff]   ;;  %v8486_v31 = vld [vmem:[#allocation15 + $0x934] ss:$88 sps:$4 sm:$0xff]  }
 0x63f   :  { %v4058_v40 = vmax.f32 %v7633_v32, 0.0  ;;  %v8483_v28 = vld [vmem:[#allocation18 + $0x584] ss:$8 sps:$4 sm:$0xff]   ;;  %v8481_v30 = vld [vmem:[#allocation18 + $0x580] ss:$8 sps:$4 sm:$0xff]  }
 0x640   :  { %v4431_v48 = vpack.c.bf16 %v4057_v37, %v4057_v37  ;;  %v8489_v32 = vld [vmem:[#allocation18 + $0x594] ss:$8 sps:$4 sm:$0xff]   ;;  %v8492_v37 = vld [vmem:[#allocation15 + $0x9e4] ss:$88 sps:$4 sm:$0xff]  }
 0x641   :  { %v4432_v42 = vpack.c.bf16 %v4058_v40, %v4058_v40  ;;  %3810 = vmatpush1.bf16.msra.mxu0 %v8424_v36  ;;  %v8484_v35 = vld [vmem:[#allocation15 + $0x930] ss:$88 sps:$4 sm:$0xff]   ;;  %v8495_v38 = vld [vmem:[#allocation18 + $0x5a4] ss:$8 sps:$4 sm:$0xff]   ;;  %v8493_v40 = vld [vmem:[#allocation18 + $0x5a0] ss:$8 sps:$4 sm:$0xff]  }
 0x642   :  { %3811 = vmatprep.subr.bf16.mxu0 %v8432_v39  ;;  %v8487_v36 = vld [vmem:[#allocation18 + $0x590] ss:$8 sps:$4 sm:$0xff]   ;;  %v8490_v39 = vld [vmem:[#allocation15 + $0x9e0] ss:$88 sps:$4 sm:$0xff]  }
 0x643   :  { %6413 = vmatprep.mubr.bf16.mxu1 %v4432_v42  ;;  %v8498_v42 = vld [vmem:[#allocation15 + $0xa94] ss:$88 sps:$4 sm:$0xff]  }
 0x644   :  { %6414 = vmatmul.mubr.bf16.vlgmr.msra.gmra.mrb[28].mxu1 %v4431_v48  ;;  %v8499_v48 = vld [vmem:[#allocation18 + $0x5b0] ss:$8 sps:$4 sm:$0xff]  }
 0x645   :  { %3812 = vmatpush1.bf16.msra.mxu0 %v8430_v43  ;;  %6423 = vmatpush1.bf16.msra.mxu1 %v8433_v47  ;;  %v8501_v43 = vld [vmem:[#allocation18 + $0x5b4] ss:$8 sps:$4 sm:$0xff]  }
 0x646   :  { %3813 = vmatprep.subr.bf16.mxu0 %v8438_v3  ;;  %6424 = vmatprep.subr.bf16.mxu1 %v8441_v49  ;;  %v8496_v47 = vld [vmem:[#allocation15 + $0xa90] ss:$88 sps:$4 sm:$0xff]   ;;  %v8504_v3 = vld [vmem:[#allocation15 + $0xb44] ss:$88 sps:$4 sm:$0xff]  }
 0x647   :  { %v8507_v49 = vld [vmem:[#allocation18 + $0x5c4] ss:$8 sps:$4 sm:$0xff]  }
 0x649   :  { %3814 = vmatpush1.bf16.msra.mxu0 %v8436_v51  ;;  %6425 = vmatpush1.bf16.msra.mxu1 %v8439_v52  ;;  %v8502_v51 = vld [vmem:[#allocation15 + $0xb40] ss:$88 sps:$4 sm:$0xff]  }
 0x64a   :  { %3815 = vmatprep.subr.bf16.mxu0 %v8444_v0  ;;  %6426 = vmatprep.subr.bf16.mxu1 %v8447_v33  ;;  %v8505_v52 = vld [vmem:[#allocation18 + $0x5c0] ss:$8 sps:$4 sm:$0xff]   ;;  %v8513_v33 = vld [vmem:[#allocation18 + $0x5d4] ss:$8 sps:$4 sm:$0xff]  }
 0x64b   :  { %v8510_v0 = vld [vmem:[#allocation15 + $0xbf4] ss:$88 sps:$4 sm:$0xff]  }
 0x64d   :  { %3816 = vmatpush1.bf16.msra.mxu0 %v8442_v53  ;;  %6427 = vmatpush1.bf16.msra.mxu1 %v8445_v54  ;;  %v8508_v53 = vld [vmem:[#allocation15 + $0xbf0] ss:$88 sps:$4 sm:$0xff]  }
 0x64e   :  { %3817 = vmatprep.subr.bf16.mxu0 %v8450_v55  ;;  %6428 = vmatprep.subr.bf16.mxu1 %v8453_v34  ;;  %v8511_v54 = vld [vmem:[#allocation18 + $0x5d0] ss:$8 sps:$4 sm:$0xff]   ;;  %v8519_v34 = vld [vmem:[#allocation18 + $0x5e4] ss:$8 sps:$4 sm:$0xff]  }
 0x64f   :  { %v8516_v55 = vld [vmem:[#allocation15 + $0x4c] ss:$88 sps:$4 sm:$0xff]  }
 0x651   :  { %3818 = vmatpush1.bf16.msra.mxu0 %v8448_v58  ;;  %6429 = vmatpush1.bf16.msra.mxu1 %v8451_v59  ;;  %v1097_v58 = vrot.slane %v9583_v22, %v9482_v15  ;;  %v1101_v59 = vrot.slane %v9583_v22, %v9542_v50 }
 0x652   :  { %3819 = vmatprep.subr.bf16.mxu0 %v8456_v60  ;;  %6430 = vmatprep.subr.bf16.mxu1 %v8459_v63  ;;  %v8517_v60 = vld [vmem:[#allocation18 + $0x5e0] ss:$8 sps:$4 sm:$0xff]   ;;  %v8525_v63 = vld [vmem:[#allocation18 + $0x5f4] ss:$8 sps:$4 sm:$0xff]  }
 0x655   :  { %3820 = vmatpush1.bf16.msra.mxu0 %v8454_v4  ;;  %6431 = vmatpush1.bf16.msra.mxu1 %v8457_v5 }
 0x656   :  { %3821 = vmatprep.subr.bf16.mxu0 %v8462_v6  ;;  %6432 = vmatprep.subr.bf16.mxu1 %v8465_v7 }
 0x659   :  { %3822 = vmatpush1.bf16.msra.mxu0 %v8460_v8  ;;  %6433 = vmatpush1.bf16.msra.mxu1 %v8463_v9  ;;  %v8514_v9 = vld [vmem:[#allocation15 + $0x48] ss:$88 sps:$4 sm:$0xff]  }
 0x65a   :  { %3823 = vmatprep.subr.bf16.mxu0 %v8468_v17  ;;  %6434 = vmatprep.subr.bf16.mxu1 %v8471_v18 }
 0x65d   :  { %3824 = vmatpush1.bf16.msra.mxu0 %v8466_v19  ;;  %6435 = vmatpush1.bf16.msra.mxu1 %v8469_v20  ;;  %v8522_v19 = vld [vmem:[#allocation15 + $0xfc] ss:$88 sps:$4 sm:$0xff]   ;;  %v8523_v20 = vld [vmem:[#allocation18 + $0x5f0] ss:$8 sps:$4 sm:$0xff]  }
 0x65e   :  { %3825 = vmatprep.subr.bf16.mxu0 %v8474_v21  ;;  %6436 = vmatprep.subr.bf16.mxu1 %v8477_v23  ;;  %v8537_v23 = vld [vmem:[#allocation18 + $0x604] ss:$8 sps:$4 sm:$0xff]  }
 0x661   :  { %3826 = vmatpush1.bf16.msra.mxu0 %v8472_v25  ;;  %6437 = vmatpush1.bf16.msra.mxu1 %v8475_v16 }
 0x662   :  { %3827 = vmatprep.subr.bf16.mxu0 %v8480_v27  ;;  %6438 = vmatprep.subr.bf16.mxu1 %v8483_v28  ;;  %v8520_v27 = vld [vmem:[#allocation15 + $0xf8] ss:$88 sps:$4 sm:$0xff]   ;;  %v8528_v28 = vld [vmem:[#allocation15 + $0x1ac] ss:$88 sps:$4 sm:$0xff]  }
 0x665   :  { %3828 = vmatpush1.bf16.msra.mxu0 %v8478_v29  ;;  %6439 = vmatpush1.bf16.msra.mxu1 %v8481_v30  ;;  %v8535_v29 = vld [vmem:[#allocation18 + $0x600] ss:$8 sps:$4 sm:$0xff]  }
 0x666   :  { %3829 = vmatprep.subr.bf16.mxu0 %v8486_v31  ;;  %6440 = vmatprep.subr.bf16.mxu1 %v8489_v32  ;;  %v8543_v31 = vld [vmem:[#allocation18 + $0x614] ss:$8 sps:$4 sm:$0xff]  }
 0x667   :  { %v8531_v32 = vld [vmem:[#allocation15 + $0x25c] ss:$88 sps:$4 sm:$0xff]  }
 0x669   :  { %3830 = vmatpush1.bf16.msra.mxu0 %v8484_v35  ;;  %6441 = vmatpush1.bf16.msra.mxu1 %v8487_v36  ;;  %v8541_v35 = vld [vmem:[#allocation18 + $0x610] ss:$8 sps:$4 sm:$0xff]   ;;  %v8549_v36 = vld [vmem:[#allocation18 + $0x624] ss:$8 sps:$4 sm:$0xff]  }
 0x66a   :  { %3831 = vmatprep.subr.bf16.mxu0 %v8492_v37  ;;  %6442 = vmatprep.subr.bf16.mxu1 %v8495_v38  ;;  %v8529_v37 = vld [vmem:[#allocation15 + $0x258] ss:$88 sps:$4 sm:$0xff]   ;;  %v8534_v38 = vld [vmem:[#allocation15 + $0x30c] ss:$88 sps:$4 sm:$0xff]  }
 0x66d   :  { %3832 = vmatpush1.bf16.msra.mxu0 %v8490_v39  ;;  %6443 = vmatpush1.bf16.msra.mxu1 %v8493_v40  ;;  %v8547_v39 = vld [vmem:[#allocation18 + $0x620] ss:$8 sps:$4 sm:$0xff]   ;;  %v8555_v40 = vld [vmem:[#allocation18 + $0x634] ss:$8 sps:$4 sm:$0xff]  }
 0x66e   :  { %3833 = vmatprep.subr.bf16.mxu0 %v8498_v42  ;;  %6444 = vmatprep.subr.bf16.mxu1 %v8501_v43  ;;  %v8532_v42 = vld [vmem:[#allocation15 + $0x308] ss:$88 sps:$4 sm:$0xff]   ;;  %v8540_v43 = vld [vmem:[#allocation15 + $0x3bc] ss:$88 sps:$4 sm:$0xff]  }
 0x671   :  { %3834 = vmatpush1.bf16.msra.mxu0 %v8496_v47  ;;  %6445 = vmatpush1.bf16.msra.mxu1 %v8499_v48  ;;  %v8553_v47 = vld [vmem:[#allocation18 + $0x630] ss:$8 sps:$4 sm:$0xff]   ;;  %v8561_v48 = vld [vmem:[#allocation18 + $0x644] ss:$8 sps:$4 sm:$0xff]  }
 0x672   :  { %3844 = vmatprep.subr.bf16.mxu0 %v8504_v3  ;;  %6446 = vmatprep.subr.bf16.mxu1 %v8507_v49  ;;  %v8538_v3 = vld [vmem:[#allocation15 + $0x3b8] ss:$88 sps:$4 sm:$0xff]   ;;  %v8546_v49 = vld [vmem:[#allocation15 + $0x46c] ss:$88 sps:$4 sm:$0xff]  }
 0x674   :  { %3836 = vmatmul.mubr.bf16.vlgmr.msra.gmra.mrb[36].mxu0 %v9477_v13 }
 0x675   :  { %3845 = vmatpush1.bf16.msra.mxu0 %v8502_v51  ;;  %6447 = vmatpush1.bf16.msra.mxu1 %v8505_v52  ;;  %v8559_v51 = vld [vmem:[#allocation18 + $0x640] ss:$8 sps:$4 sm:$0xff]   ;;  %v8567_v52 = vld [vmem:[#allocation18 + $0x654] ss:$8 sps:$4 sm:$0xff]  }
 0x676   :  { %3846 = vmatprep.subr.bf16.mxu0 %v8510_v0  ;;  %6448 = vmatprep.subr.bf16.mxu1 %v8513_v33  ;;  %v8544_v0 = vld [vmem:[#allocation15 + $0x468] ss:$88 sps:$4 sm:$0xff]   ;;  %v8552_v33 = vld [vmem:[#allocation15 + $0x51c] ss:$88 sps:$4 sm:$0xff]  }
 0x677   :  { %3876 = vmatprep.mubr.bf16.mxu0 %v9161_v1 }
 0x679   :  { %3847 = vmatpush1.bf16.msra.mxu0 %v8508_v53  ;;  %6449 = vmatpush1.bf16.msra.mxu1 %v8511_v54  ;;  %v8565_v53 = vld [vmem:[#allocation18 + $0x650] ss:$8 sps:$4 sm:$0xff]   ;;  %v8573_v54 = vld [vmem:[#allocation18 + $0x664] ss:$8 sps:$4 sm:$0xff]  }
 0x67a   :  { %3885 = vmatprep.subr.bf16.mxu0 %v8516_v55  ;;  %6450 = vmatprep.subr.bf16.mxu1 %v8519_v34  ;;  %v8550_v55 = vld [vmem:[#allocation15 + $0x518] ss:$88 sps:$4 sm:$0xff]   ;;  %v8558_v34 = vld [vmem:[#allocation15 + $0x5cc] ss:$88 sps:$4 sm:$0xff]  }
 0x67b   :  { %v3591_v4 = vpop.f32.mrb[24].mxu0 }
 0x67c   :  { %v3592_v5 = vadd.f32 %v3591_v4, %v1097_v58  ;;  %v3593_v6 = vpop.f32.mrb[25].mxu0  ;;  %v8571_v58 = vld [vmem:[#allocation18 + $0x660] ss:$8 sps:$4 sm:$0xff]   ;;  %v8577_v4 = vld [vmem:[#allocation18 + $0x670] ss:$8 sps:$4 sm:$0xff]  }
 0x67d   :  { %v3594_v7 = vadd.f32 %v3593_v6, %v1101_v59  ;;  %v3595_v8 = vpop.f32.mrb[26].mxu0  ;;  %6451 = vmatpush1.bf16.msra.mxu1 %v8517_v60  ;;  %v8579_v59 = vld [vmem:[#allocation18 + $0x674] ss:$8 sps:$4 sm:$0xff]  }
 0x67e   :  { %v3633_v17 = vadd.f32 %v9528_v45, %v3592_v5  ;;  %v3596_v18 = vpop.f32.mrb[27].mxu0  ;;  %6452 = vmatprep.subr.bf16.mxu1 %v8525_v63  ;;  %v8556_v60 = vld [vmem:[#allocation15 + $0x5c8] ss:$88 sps:$4 sm:$0xff]   ;;  %v8564_v63 = vld [vmem:[#allocation15 + $0x67c] ss:$88 sps:$4 sm:$0xff]  }
 0x67f   :  { %v3635_v21 = vadd.f32 %v9530_v46, %v3594_v7  ;;  %v8526_v46 = vld [vmem:[#allocation15 + $0x1a8] ss:$88 sps:$4 sm:$0xff]   ;;  %v8562_v6 = vld [vmem:[#allocation15 + $0x678] ss:$88 sps:$4 sm:$0xff]   ;;  %v8570_v7 = vld [vmem:[#allocation15 + $0x72c] ss:$88 sps:$4 sm:$0xff]  }
 0x680   :  { %v4059_v25 = vmax.f32 %v3633_v17, 0.0  ;;  %7103 = vmatmul.mubr.msk.bf16.vlgmr.msra.gmra.mrb[36].mxu0 %vm291_vm3, %v9486_v24  ;;  %v8585_v5 = vld [vmem:[#allocation18 + $0x684] ss:$8 sps:$4 sm:$0xff]   ;;  %v8583_v8 = vld [vmem:[#allocation18 + $0x680] ss:$8 sps:$4 sm:$0xff]  }
 0x681   :  { %v4060_v16 = vmax.f32 %v3635_v21, 0.0  ;;  %3886 = vmatpush1.bf16.msra.mxu0 %v8514_v9  ;;  %3917 = vmatprep.mubr.bf16.mxu0 %v9475_v11  ;;  %v8591_v9 = vld [vmem:[#allocation18 + $0x694] ss:$8 sps:$4 sm:$0xff]  }
 0x682   :  { %3887 = vmatprep.subr.bf16.mxu0 %v8522_v19  ;;  %6453 = vmatpush1.bf16.msra.mxu1 %v8523_v20  ;;  %v4433_v30 = vpack.c.bf16 %v4059_v25, %v4059_v25  ;;  %v8568_v17 = vld [vmem:[#allocation15 + $0x728] ss:$88 sps:$4 sm:$0xff]   ;;  %v8576_v18 = vld [vmem:[#allocation15 + $0x7dc] ss:$88 sps:$4 sm:$0xff]   ;;  %v8574_v21 = vld [vmem:[#allocation15 + $0x7d8] ss:$88 sps:$4 sm:$0xff]  }
 0x683   :  { %v4434_v45 = vpack.c.bf16 %v4060_v16, %v4060_v16  ;;  %6463 = vmatprep.subr.bf16.mxu1 %v8537_v23  ;;  %v8589_v19 = vld [vmem:[#allocation18 + $0x690] ss:$8 sps:$4 sm:$0xff]   ;;  %v8597_v20 = vld [vmem:[#allocation18 + $0x6a4] ss:$8 sps:$4 sm:$0xff]   ;;  %v8595_v25 = vld [vmem:[#allocation18 + $0x6a0] ss:$8 sps:$4 sm:$0xff]  }
 0x684   :  { %v8582_v23 = vld [vmem:[#allocation15 + $0x88c] ss:$88 sps:$4 sm:$0xff]  }
 0x685   :  { %3888 = vmatpush1.bf16.msra.mxu0 %v8520_v27  ;;  %6454 = vmatprep.mubr.bf16.mxu1 %v4434_v45  ;;  %v8603_v16 = vld [vmem:[#allocation18 + $0x6b4] ss:$8 sps:$4 sm:$0xff]   ;;  %v8601_v45 = vld [vmem:[#allocation18 + $0x6b0] ss:$8 sps:$4 sm:$0xff]  }
 0x686   :  { %3889 = vmatprep.subr.bf16.mxu0 %v8528_v28  ;;  %6455 = vmatmul.mubr.bf16.vlgmr.msra.gmra.mrb[28].mxu1 %v4433_v30  ;;  %v8580_v27 = vld [vmem:[#allocation15 + $0x888] ss:$88 sps:$4 sm:$0xff]   ;;  %v8588_v28 = vld [vmem:[#allocation15 + $0x93c] ss:$88 sps:$4 sm:$0xff]   ;;  %v8586_v30 = vld [vmem:[#allocation15 + $0x938] ss:$88 sps:$4 sm:$0xff]  }
 0x687   :  { %6464 = vmatpush1.bf16.msra.mxu1 %v8535_v29  ;;  %v8609_v29 = vld [vmem:[#allocation18 + $0x6c4] ss:$8 sps:$4 sm:$0xff]  }
 0x688   :  { %6465 = vmatprep.subr.bf16.mxu1 %v8543_v31  ;;  %v8594_v31 = vld [vmem:[#allocation15 + $0x9ec] ss:$88 sps:$4 sm:$0xff]  }
 0x689   :  { %3890 = vmatpush1.bf16.msra.mxu0 %v8526_v46  ;;  %v8607_v46 = vld [vmem:[#allocation18 + $0x6c0] ss:$8 sps:$4 sm:$0xff]  }
 0x68a   :  { %3891 = vmatprep.subr.bf16.mxu0 %v8531_v32  ;;  %v8615_v32 = vld [vmem:[#allocation18 + $0x6d4] ss:$8 sps:$4 sm:$0xff]  }
 0x68b   :  { %6466 = vmatpush1.bf16.msra.mxu1 %v8541_v35  ;;  %v8592_v35 = vld [vmem:[#allocation15 + $0x9e8] ss:$88 sps:$4 sm:$0xff]  }
 0x68c   :  { %6467 = vmatprep.subr.bf16.mxu1 %v8549_v36  ;;  %v8600_v36 = vld [vmem:[#allocation15 + $0xa9c] ss:$88 sps:$4 sm:$0xff]  }
 0x68d   :  { %3892 = vmatpush1.bf16.msra.mxu0 %v8529_v37  ;;  %v8613_v37 = vld [vmem:[#allocation18 + $0x6d0] ss:$8 sps:$4 sm:$0xff]  }
 0x68e   :  { %3893 = vmatprep.subr.bf16.mxu0 %v8534_v38  ;;  %v8621_v38 = vld [vmem:[#allocation18 + $0x6e4] ss:$8 sps:$4 sm:$0xff]  }
 0x68f   :  { %6468 = vmatpush1.bf16.msra.mxu1 %v8547_v39  ;;  %v8598_v39 = vld [vmem:[#allocation15 + $0xa98] ss:$88 sps:$4 sm:$0xff]  }
 0x690   :  { %6469 = vmatprep.subr.bf16.mxu1 %v8555_v40  ;;  %v8606_v40 = vld [vmem:[#allocation15 + $0x54] ss:$88 sps:$4 sm:$0xff]  }
 0x691   :  { %3894 = vmatpush1.bf16.msra.mxu0 %v8532_v42  ;;  %v8619_v42 = vld [vmem:[#allocation18 + $0x6e0] ss:$8 sps:$4 sm:$0xff]  }
 0x692   :  { %3895 = vmatprep.subr.bf16.mxu0 %v8540_v43  ;;  %v8627_v43 = vld [vmem:[#allocation18 + $0x6f4] ss:$8 sps:$4 sm:$0xff]  }
 0x693   :  { %6470 = vmatpush1.bf16.msra.mxu1 %v8553_v47  ;;  %v8604_v47 = vld [vmem:[#allocation15 + $0x50] ss:$88 sps:$4 sm:$0xff]  }
 0x694   :  { %6471 = vmatprep.subr.bf16.mxu1 %v8561_v48  ;;  %v8612_v48 = vld [vmem:[#allocation15 + $0x104] ss:$88 sps:$4 sm:$0xff]  }
 0x695   :  { %3896 = vmatpush1.bf16.msra.mxu0 %v8538_v3  ;;  %v8625_v3 = vld [vmem:[#allocation18 + $0x6f0] ss:$8 sps:$4 sm:$0xff]  }
 0x696   :  { %3897 = vmatprep.subr.bf16.mxu0 %v8546_v49  ;;  %v8633_v49 = vld [vmem:[#allocation18 + $0x704] ss:$8 sps:$4 sm:$0xff]  }
 0x697   :  { %6472 = vmatpush1.bf16.msra.mxu1 %v8559_v51  ;;  %v8610_v51 = vld [vmem:[#allocation15 + $0x100] ss:$88 sps:$4 sm:$0xff]  }
 0x698   :  { %6473 = vmatprep.subr.bf16.mxu1 %v8567_v52  ;;  %v8618_v52 = vld [vmem:[#allocation15 + $0x1b4] ss:$88 sps:$4 sm:$0xff]  }
 0x699   :  { %3898 = vmatpush1.bf16.msra.mxu0 %v8544_v0  ;;  %v1105_v0 = vrot.slane %v9583_v22, %v9556_v41 }
 0x69a   :  { %3899 = vmatprep.subr.bf16.mxu0 %v8552_v33  ;;  %v8616_v33 = vld [vmem:[#allocation15 + $0x1b0] ss:$88 sps:$4 sm:$0xff]  }
 0x69b   :  { %6474 = vmatpush1.bf16.msra.mxu1 %v8565_v53  ;;  %v1109_v53 = vrot.slane %v9583_v22, %v9560_v44 }
 0x69c   :  { %6475 = vmatprep.subr.bf16.mxu1 %v8573_v54  ;;  %v8624_v54 = vld [vmem:[#allocation15 + $0x264] ss:$88 sps:$4 sm:$0xff]  }
 0x69d   :  { %3900 = vmatpush1.bf16.msra.mxu0 %v8550_v55 }
 0x69e   :  { %3901 = vmatprep.subr.bf16.mxu0 %v8558_v34 }
 0x69f   :  { %6476 = vmatpush1.bf16.msra.mxu1 %v8571_v58 }
 0x6a0   :  { %6477 = vmatprep.subr.bf16.mxu1 %v8579_v59 }
 0x6a1   :  { %3902 = vmatpush1.bf16.msra.mxu0 %v8556_v60  ;;  %v8622_v60 = vld [vmem:[#allocation15 + $0x260] ss:$88 sps:$4 sm:$0xff]  }
 0x6a2   :  { %3903 = vmatprep.subr.bf16.mxu0 %v8564_v63 }
 0x6a3   :  { %6478 = vmatpush1.bf16.msra.mxu1 %v8577_v4 }
 0x6a4   :  { %6479 = vmatprep.subr.bf16.mxu1 %v8585_v5  ;;  %v8630_v5 = vld [vmem:[#allocation15 + $0x314] ss:$88 sps:$4 sm:$0xff]  }
 0x6a5   :  { %3904 = vmatpush1.bf16.msra.mxu0 %v8562_v6 }
 0x6a6   :  { %3905 = vmatprep.subr.bf16.mxu0 %v8570_v7 }
 0x6a7   :  { %6480 = vmatpush1.bf16.msra.mxu1 %v8583_v8  ;;  %v8628_v8 = vld [vmem:[#allocation15 + $0x310] ss:$88 sps:$4 sm:$0xff]  }
 0x6a8   :  { %6481 = vmatprep.subr.bf16.mxu1 %v8591_v9  ;;  %v8631_v9 = vld [vmem:[#allocation18 + $0x700] ss:$8 sps:$4 sm:$0xff]  }
 0x6a9   :  { %3906 = vmatpush1.bf16.msra.mxu0 %v8568_v17 }
 0x6aa   :  { %3907 = vmatprep.subr.bf16.mxu0 %v8576_v18  ;;  %v8636_v18 = vld [vmem:[#allocation15 + $0x3c4] ss:$88 sps:$4 sm:$0xff]  }
 0x6ab   :  { %6482 = vmatpush1.bf16.msra.mxu1 %v8589_v19  ;;  %v8639_v19 = vld [vmem:[#allocation18 + $0x714] ss:$8 sps:$4 sm:$0xff]  }
 0x6ac   :  { %6483 = vmatprep.subr.bf16.mxu1 %v8597_v20  ;;  %v8634_v20 = vld [vmem:[#allocation15 + $0x3c0] ss:$88 sps:$4 sm:$0xff]  }
 0x6ad   :  { %3908 = vmatpush1.bf16.msra.mxu0 %v8574_v21  ;;  %v8637_v21 = vld [vmem:[#allocation18 + $0x710] ss:$8 sps:$4 sm:$0xff]  }
 0x6ae   :  { %3909 = vmatprep.subr.bf16.mxu0 %v8582_v23  ;;  %v8642_v23 = vld [vmem:[#allocation15 + $0x474] ss:$88 sps:$4 sm:$0xff]  }
 0x6af   :  { %6484 = vmatpush1.bf16.msra.mxu1 %v8595_v25  ;;  %v8645_v25 = vld [vmem:[#allocation18 + $0x724] ss:$8 sps:$4 sm:$0xff]  }
 0x6b0   :  { %6485 = vmatprep.subr.bf16.mxu1 %v8603_v16  ;;  %v8640_v16 = vld [vmem:[#allocation15 + $0x470] ss:$88 sps:$4 sm:$0xff]  }
 0x6b1   :  { %3910 = vmatpush1.bf16.msra.mxu0 %v8580_v27  ;;  %v8643_v27 = vld [vmem:[#allocation18 + $0x720] ss:$8 sps:$4 sm:$0xff]  }
 0x6b2   :  { %3911 = vmatprep.subr.bf16.mxu0 %v8588_v28  ;;  %v8648_v28 = vld [vmem:[#allocation15 + $0x524] ss:$88 sps:$4 sm:$0xff]  }
 0x6b3   :  { %6486 = vmatpush1.bf16.msra.mxu1 %v8601_v45  ;;  %v8651_v45 = vld [vmem:[#allocation18 + $0x734] ss:$8 sps:$4 sm:$0xff]  }
 0x6b4   :  { %6487 = vmatprep.subr.bf16.mxu1 %v8609_v29  ;;  %v8646_v29 = vld [vmem:[#allocation15 + $0x520] ss:$88 sps:$4 sm:$0xff]  }
 0x6b5   :  { %3912 = vmatpush1.bf16.msra.mxu0 %v8586_v30  ;;  %v8649_v30 = vld [vmem:[#allocation18 + $0x730] ss:$8 sps:$4 sm:$0xff]  }
 0x6b6   :  { %3913 = vmatprep.subr.bf16.mxu0 %v8594_v31  ;;  %v8654_v31 = vld [vmem:[#allocation15 + $0x5d4] ss:$88 sps:$4 sm:$0xff]  }
 0x6b7   :  { %6488 = vmatpush1.bf16.msra.mxu1 %v8607_v46  ;;  %v8657_v46 = vld [vmem:[#allocation18 + $0x744] ss:$8 sps:$4 sm:$0xff]  }
 0x6b8   :  { %6489 = vmatprep.subr.bf16.mxu1 %v8615_v32  ;;  %v8652_v32 = vld [vmem:[#allocation15 + $0x5d0] ss:$88 sps:$4 sm:$0xff]  }
 0x6b9   :  { %3914 = vmatpush1.bf16.msra.mxu0 %v8592_v35  ;;  %v8655_v35 = vld [vmem:[#allocation18 + $0x740] ss:$8 sps:$4 sm:$0xff]  }
 0x6ba   :  { %3915 = vmatprep.subr.bf16.mxu0 %v8600_v36  ;;  %v8660_v36 = vld [vmem:[#allocation15 + $0x684] ss:$88 sps:$4 sm:$0xff]  }
 0x6bb   :  { %6490 = vmatpush1.bf16.msra.mxu1 %v8613_v37  ;;  %v8663_v37 = vld [vmem:[#allocation18 + $0x754] ss:$8 sps:$4 sm:$0xff]  }
 0x6bc   :  { %6491 = vmatprep.subr.bf16.mxu1 %v8621_v38  ;;  %v8658_v38 = vld [vmem:[#allocation15 + $0x680] ss:$88 sps:$4 sm:$0xff]  }
 0x6bd   :  { %3916 = vmatpush1.bf16.msra.mxu0 %v8598_v39  ;;  %v8661_v39 = vld [vmem:[#allocation18 + $0x750] ss:$8 sps:$4 sm:$0xff]  }
 0x6be   :  { %3967 = vmatprep.subr.bf16.mxu0 %v8606_v40  ;;  %v8666_v40 = vld [vmem:[#allocation15 + $0x734] ss:$88 sps:$4 sm:$0xff]  }
 0x6bf   :  { %6492 = vmatpush1.bf16.msra.mxu1 %v8619_v42  ;;  %v8669_v42 = vld [vmem:[#allocation18 + $0x764] ss:$8 sps:$4 sm:$0xff]  }
 0x6c0   :  { %3918 = vmatmul.mubr.bf16.vlgmr.msra.gmra.mrb[40].mxu0 %v9477_v13  ;;  %6493 = vmatprep.subr.bf16.mxu1 %v8627_v43  ;;  %v8664_v43 = vld [vmem:[#allocation15 + $0x730] ss:$88 sps:$4 sm:$0xff]  }
 0x6c1   :  { %3968 = vmatpush1.bf16.msra.mxu0 %v8604_v47  ;;  %3999 = vmatprep.mubr.bf16.mxu0 %v9475_v11  ;;  %v8667_v47 = vld [vmem:[#allocation18 + $0x760] ss:$8 sps:$4 sm:$0xff]  }
 0x6c2   :  { %3969 = vmatprep.subr.bf16.mxu0 %v8612_v48  ;;  %v8672_v48 = vld [vmem:[#allocation15 + $0x7e4] ss:$88 sps:$4 sm:$0xff]  }
 0x6c3   :  { %6494 = vmatpush1.bf16.msra.mxu1 %v8625_v3  ;;  %v8675_v3 = vld [vmem:[#allocation18 + $0x774] ss:$8 sps:$4 sm:$0xff]  }
 0x6c4   :  { %6504 = vmatprep.subr.bf16.mxu1 %v8633_v49  ;;  %v8670_v49 = vld [vmem:[#allocation15 + $0x7e0] ss:$88 sps:$4 sm:$0xff]  }
 0x6c5   :  { %3970 = vmatpush1.bf16.msra.mxu0 %v8610_v51  ;;  %v8673_v51 = vld [vmem:[#allocation18 + $0x770] ss:$8 sps:$4 sm:$0xff]  }
 0x6c6   :  { %3971 = vmatprep.subr.bf16.mxu0 %v8618_v52  ;;  %v8678_v52 = vld [vmem:[#allocation15 + $0x894] ss:$88 sps:$4 sm:$0xff]  }
 0x6c7   :  { %v3714_v55 = vpop.f32.mrb[28].mxu0 }
 0x6c8   :  { %v7638_v34 = vadd.f32 %v3714_v55, %v1105_v0  ;;  %v3716_v58 = vpop.f32.mrb[29].mxu0  ;;  %v8681_v0 = vld [vmem:[#allocation18 + $0x784] ss:$8 sps:$4 sm:$0xff]   ;;  %v8687_v55 = vld [vmem:[#allocation18 + $0x794] ss:$8 sps:$4 sm:$0xff]  }
 0x6c9   :  { %3972 = vmatpush1.bf16.msra.mxu0 %v8616_v33  ;;  %v7639_v11 = vadd.f32 %v3716_v58, %v1109_v53  ;;  %v3718_v59 = vpop.f32.mrb[30].mxu0  ;;  %v8676_v33 = vld [vmem:[#allocation15 + $0x890] ss:$88 sps:$4 sm:$0xff]   ;;  %v8679_v53 = vld [vmem:[#allocation18 + $0x780] ss:$8 sps:$4 sm:$0xff]  }
 0x6ca   :  { %v4061_v63 = vmax.f32 %v7638_v34, 0.0  ;;  %v3719_v4 = vpop.f32.mrb[31].mxu0  ;;  %3973 = vmatprep.subr.bf16.mxu0 %v8624_v54  ;;  %v8684_v54 = vld [vmem:[#allocation15 + $0x944] ss:$88 sps:$4 sm:$0xff]   ;;  %v8682_v34 = vld [vmem:[#allocation15 + $0x940] ss:$88 sps:$4 sm:$0xff]  }
 0x6cb   :  { %v4062_v6 = vmax.f32 %v7639_v11, 0.0  ;;  %v8685_v58 = vld [vmem:[#allocation18 + $0x790] ss:$8 sps:$4 sm:$0xff]   ;;  %v8693_v59 = vld [vmem:[#allocation18 + $0x7a4] ss:$8 sps:$4 sm:$0xff]  }
 0x6cc   :  { %v4435_v17 = vpack.c.bf16 %v4061_v63, %v4061_v63  ;;  %v8690_v11 = vld [vmem:[#allocation15 + $0x9f4] ss:$88 sps:$4 sm:$0xff]   ;;  %v8696_v4 = vld [vmem:[#allocation15 + $0xaa4] ss:$88 sps:$4 sm:$0xff]  }
 0x6cd   :  { %v4436_v7 = vpack.c.bf16 %v4062_v6, %v4062_v6  ;;  %3974 = vmatpush1.bf16.msra.mxu0 %v8622_v60  ;;  %v8688_v60 = vld [vmem:[#allocation15 + $0x9f0] ss:$88 sps:$4 sm:$0xff]   ;;  %v8691_v63 = vld [vmem:[#allocation18 + $0x7a0] ss:$8 sps:$4 sm:$0xff]  }
 0x6ce   :  { %3975 = vmatprep.subr.bf16.mxu0 %v8630_v5  ;;  %v8699_v5 = vld [vmem:[#allocation18 + $0x7b4] ss:$8 sps:$4 sm:$0xff]   ;;  %v8694_v6 = vld [vmem:[#allocation15 + $0xaa0] ss:$88 sps:$4 sm:$0xff]  }
 0x6cf   :  { %6495 = vmatprep.mubr.bf16.mxu1 %v4436_v7  ;;  %v8697_v7 = vld [vmem:[#allocation18 + $0x7b0] ss:$8 sps:$4 sm:$0xff]  }
 0x6d0   :  { %6496 = vmatmul.mubr.bf16.vlgmr.msra.gmra.mrb[28].mxu1 %v4435_v17  ;;  %v8700_v17 = vld [vmem:[#allocation15 + $0xb50] ss:$88 sps:$4 sm:$0xff]  }
 0x6d1   :  { %3976 = vmatpush1.bf16.msra.mxu0 %v8628_v8  ;;  %6505 = vmatpush1.bf16.msra.mxu1 %v8631_v9  ;;  %v8702_v8 = vld [vmem:[#allocation15 + $0xb54] ss:$88 sps:$4 sm:$0xff]   ;;  %v8705_v9 = vld [vmem:[#allocation18 + $0x7c4] ss:$8 sps:$4 sm:$0xff]  }
 0x6d2   :  { %3977 = vmatprep.subr.bf16.mxu0 %v8636_v18  ;;  %6506 = vmatprep.subr.bf16.mxu1 %v8639_v19  ;;  %v8703_v18 = vld [vmem:[#allocation18 + $0x7c0] ss:$8 sps:$4 sm:$0xff]  }
 0x6d3   :  { %v8708_v19 = vld [vmem:[#allocation15 + $0xc04] ss:$88 sps:$4 sm:$0xff]  }
 0x6d5   :  { %3978 = vmatpush1.bf16.msra.mxu0 %v8634_v20  ;;  %6507 = vmatpush1.bf16.msra.mxu1 %v8637_v21  ;;  %v8711_v20 = vld [vmem:[#allocation18 + $0x7d4] ss:$8 sps:$4 sm:$0xff]   ;;  %v8706_v21 = vld [vmem:[#allocation15 + $0xc00] ss:$88 sps:$4 sm:$0xff]  }
 0x6d6   :  { %3979 = vmatprep.subr.bf16.mxu0 %v8642_v23  ;;  %6508 = vmatprep.subr.bf16.mxu1 %v8645_v25  ;;  %v8709_v23 = vld [vmem:[#allocation18 + $0x7d0] ss:$8 sps:$4 sm:$0xff]   ;;  %v8714_v25 = vld [vmem:[#allocation18 + $0x7e4] ss:$8 sps:$4 sm:$0xff]  }
 0x6d9   :  { %3980 = vmatpush1.bf16.msra.mxu0 %v8640_v16  ;;  %6509 = vmatpush1.bf16.msra.mxu1 %v8643_v27  ;;  %v1113_v16 = vrot.slane %v9583_v22, %v1080_v10  ;;  %v1117_v27 = vrot.slane %v9583_v22, %v1084_v26  ;;  %v8720_v10 = vld [vmem:[#allocation18 + $0x804] ss:$8 sps:$4 sm:$0xff]  }
 0x6da   :  { %3981 = vmatprep.subr.bf16.mxu0 %v8648_v28  ;;  %6510 = vmatprep.subr.bf16.mxu1 %v8651_v45  ;;  %v8717_v28 = vld [vmem:[#allocation18 + $0x7f4] ss:$8 sps:$4 sm:$0xff]  }
 0x6dd   :  { %3982 = vmatpush1.bf16.msra.mxu0 %v8646_v29  ;;  %6511 = vmatpush1.bf16.msra.mxu1 %v8649_v30 }
 0x6de   :  { %3983 = vmatprep.subr.bf16.mxu0 %v8654_v31  ;;  %6512 = vmatprep.subr.bf16.mxu1 %v8657_v46 }
 0x6e1   :  { %3984 = vmatpush1.bf16.msra.mxu0 %v8652_v32  ;;  %6513 = vmatpush1.bf16.msra.mxu1 %v8655_v35 }
 0x6e2   :  { %3985 = vmatprep.subr.bf16.mxu0 %v8660_v36  ;;  %6514 = vmatprep.subr.bf16.mxu1 %v8663_v37  ;;  %v8718_v37 = vld [vmem:[#allocation18 + $0x800] ss:$8 sps:$4 sm:$0xff]  }
 0x6e5   :  { %3986 = vmatpush1.bf16.msra.mxu0 %v8658_v38  ;;  %6515 = vmatpush1.bf16.msra.mxu1 %v8661_v39  ;;  %v8723_v39 = vld [vmem:[#allocation18 + $0x814] ss:$8 sps:$4 sm:$0xff]  }
 0x6e6   :  { %3987 = vmatprep.subr.bf16.mxu0 %v8666_v40  ;;  %6516 = vmatprep.subr.bf16.mxu1 %v8669_v42  ;;  %v8726_v40 = vld [vmem:[#allocation18 + $0x824] ss:$8 sps:$4 sm:$0xff]   ;;  %v8724_v42 = vld [vmem:[#allocation18 + $0x820] ss:$8 sps:$4 sm:$0xff]  }
 0x6e9   :  { %3988 = vmatpush1.bf16.msra.mxu0 %v8664_v43  ;;  %6517 = vmatpush1.bf16.msra.mxu1 %v8667_v47  ;;  %v8727_v43 = vld [vmem:[#allocation18 + $0x830] ss:$8 sps:$4 sm:$0xff]   ;;  %v8730_v47 = vld [vmem:[#allocation18 + $0x840] ss:$8 sps:$4 sm:$0xff]  }
 0x6ea   :  { %3989 = vmatprep.subr.bf16.mxu0 %v8672_v48  ;;  %6518 = vmatprep.subr.bf16.mxu1 %v8675_v3  ;;  %v8735_v48 = vld [vmem:[#allocation18 + $0x854] ss:$8 sps:$4 sm:$0xff]   ;;  %v8733_v3 = vld [vmem:[#allocation18 + $0x850] ss:$8 sps:$4 sm:$0xff]  }
 0x6ed   :  { %3990 = vmatpush1.bf16.msra.mxu0 %v8670_v49  ;;  %6519 = vmatpush1.bf16.msra.mxu1 %v8673_v51  ;;  %v8738_v49 = vld [vmem:[#allocation18 + $0x864] ss:$8 sps:$4 sm:$0xff]   ;;  %v8736_v51 = vld [vmem:[#allocation18 + $0x860] ss:$8 sps:$4 sm:$0xff]  }
 0x6ee   :  { %3991 = vmatprep.subr.bf16.mxu0 %v8678_v52  ;;  %6520 = vmatprep.subr.bf16.mxu1 %v8681_v0  ;;  %v8741_v52 = vld [vmem:[#allocation18 + $0x874] ss:$8 sps:$4 sm:$0xff]   ;;  %v8739_v0 = vld [vmem:[#allocation18 + $0x870] ss:$8 sps:$4 sm:$0xff]  }
 0x6f1   :  { %3992 = vmatpush1.bf16.msra.mxu0 %v8676_v33  ;;  %6521 = vmatpush1.bf16.msra.mxu1 %v8679_v53  ;;  %v8744_v33 = vld [vmem:[#allocation18 + $0x884] ss:$8 sps:$4 sm:$0xff]   ;;  %v8742_v53 = vld [vmem:[#allocation18 + $0x880] ss:$8 sps:$4 sm:$0xff]  }
 0x6f2   :  { %3993 = vmatprep.subr.bf16.mxu0 %v8684_v54  ;;  %6522 = vmatprep.subr.bf16.mxu1 %v8687_v55  ;;  %v8747_v54 = vld [vmem:[#allocation18 + $0x894] ss:$8 sps:$4 sm:$0xff]   ;;  %v8745_v55 = vld [vmem:[#allocation18 + $0x890] ss:$8 sps:$4 sm:$0xff]  }
 0x6f5   :  { %3994 = vmatpush1.bf16.msra.mxu0 %v8682_v34  ;;  %6523 = vmatpush1.bf16.msra.mxu1 %v8685_v58  ;;  %v8750_v34 = vld [vmem:[#allocation18 + $0x8a4] ss:$8 sps:$4 sm:$0xff]   ;;  %v8748_v58 = vld [vmem:[#allocation18 + $0x8a0] ss:$8 sps:$4 sm:$0xff]  }
 0x6f6   :  { %3995 = vmatprep.subr.bf16.mxu0 %v8690_v11  ;;  %6524 = vmatprep.subr.bf16.mxu1 %v8693_v59  ;;  %v8753_v11 = vld [vmem:[#allocation18 + $0x8b4] ss:$8 sps:$4 sm:$0xff]   ;;  %v8751_v59 = vld [vmem:[#allocation18 + $0x8b0] ss:$8 sps:$4 sm:$0xff]  }
 0x6f9   :  { %3996 = vmatpush1.bf16.msra.mxu0 %v8688_v60  ;;  %6525 = vmatpush1.bf16.msra.mxu1 %v8691_v63  ;;  %v8756_v60 = vld [vmem:[#allocation18 + $0x8c4] ss:$8 sps:$4 sm:$0xff]   ;;  %v8754_v63 = vld [vmem:[#allocation18 + $0x8c0] ss:$8 sps:$4 sm:$0xff]  }
 0x6fa   :  { %3997 = vmatprep.subr.bf16.mxu0 %v8696_v4  ;;  %6526 = vmatprep.subr.bf16.mxu1 %v8699_v5  ;;  %v8759_v4 = vld [vmem:[#allocation18 + $0x8d4] ss:$8 sps:$4 sm:$0xff]   ;;  %v8757_v5 = vld [vmem:[#allocation18 + $0x8d0] ss:$8 sps:$4 sm:$0xff]  }
 0x6fd   :  { %3998 = vmatpush1.bf16.msra.mxu0 %v8694_v6  ;;  %6527 = vmatpush1.bf16.msra.mxu1 %v8697_v7  ;;  %v8762_v6 = vld [vmem:[#allocation18 + $0x8e4] ss:$8 sps:$4 sm:$0xff]   ;;  %v8760_v7 = vld [vmem:[#allocation18 + $0x8e0] ss:$8 sps:$4 sm:$0xff]  }
 0x6fe   :  { %4008 = vmatprep.subr.bf16.mxu0 %v8702_v8  ;;  %6528 = vmatprep.subr.bf16.mxu1 %v8705_v9  ;;  %v8765_v8 = vld [vmem:[#allocation18 + $0x8f4] ss:$8 sps:$4 sm:$0xff]   ;;  %v8763_v9 = vld [vmem:[#allocation18 + $0x8f0] ss:$8 sps:$4 sm:$0xff]  }
 0x700   :  { %4000 = vmatmul.mubr.bf16.vlgmr.msra.gmra.mrb[44].mxu0 %v9477_v13  ;;  %v8712_v13 = vld [vmem:[#allocation18 + $0x7e0] ss:$8 sps:$4 sm:$0xff]  }
 0x701   :  { %4009 = vmatpush1.bf16.msra.mxu0 %v8700_v17  ;;  %6529 = vmatpush1.bf16.msra.mxu1 %v8703_v18  ;;  %v8768_v17 = vld [vmem:[#allocation18 + $0x904] ss:$8 sps:$4 sm:$0xff]   ;;  %v9618_v18 = vld [vmem:[#allocation16 + $0x10] sm:$0x3f] }
 0x702   :  { %4010 = vmatprep.subr.bf16.mxu0 %v8708_v19  ;;  %6530 = vmatprep.subr.bf16.mxu1 %v8711_v20  ;;  %v1121_v19 = vrot.slane %v9618_v18, %v9468_v62  ;;  %v1125_v20 = vrot.slane %v9618_v18, %v9471_v2 }
 0x703   :  { %4040 = vmatprep.mubr.bf16.mxu0 %v9161_v1  ;;  %v8715_v1 = vld [vmem:[#allocation18 + $0x7f0] ss:$8 sps:$4 sm:$0xff]  }
 0x705   :  { %4011 = vmatpush1.bf16.msra.mxu0 %v8706_v21  ;;  %6531 = vmatpush1.bf16.msra.mxu1 %v8709_v23 }
 0x706   :  { %6532 = vmatprep.subr.bf16.mxu1 %v8714_v25 }
 0x707   :  { %v3755_v45 = vpop.f32.mrb[32].mxu0 }
 0x708   :  { %v3756_v29 = vadd.f32 %v3755_v45, %v1113_v16  ;;  %v3757_v30 = vpop.f32.mrb[33].mxu0 }
 0x709   :  { %v3758_v31 = vadd.f32 %v3757_v30, %v1117_v27  ;;  %v3759_v46 = vpop.f32.mrb[34].mxu0  ;;  %6533 = vmatpush1.bf16.msra.mxu1 %v8712_v13  ;;  %v8766_v30 = vld [vmem:[#allocation18 + $0x900] ss:$8 sps:$4 sm:$0xff]  }
 0x70a   :  { %v3797_v32 = vadd.f32 %v9532_v56, %v3756_v29  ;;  %v3760_v35 = vpop.f32.mrb[35].mxu0  ;;  %6534 = vmatprep.subr.bf16.mxu1 %v8717_v28  ;;  %v8721_v56 = vld [vmem:[#allocation18 + $0x810] ss:$8 sps:$4 sm:$0xff]   ;;  %v8771_v46 = vld [vmem:[#allocation18 + $0x914] ss:$8 sps:$4 sm:$0xff]  }
 0x70b   :  { %v3799_v36 = vadd.f32 %v9534_v57, %v3758_v31  ;;  %v8729_v57 = vld [vmem:[#allocation18 + $0x834] ss:$8 sps:$4 sm:$0xff]   ;;  %v8772_v35 = vld [vmem:[#allocation18 + $0x920] ss:$8 sps:$4 sm:$0xff]  }
 0x70c   :  { %v4063_v61 = vmax.f32 %v3797_v32, 0.0  ;;  %7105 = vmatmul.mubr.msk.bf16.vlgmr.msra.gmra.mrb[44].mxu0 %vm291_vm3, %v9486_v24  ;;  %v8732_v24 = vld [vmem:[#allocation18 + $0x844] ss:$8 sps:$4 sm:$0xff]  }
 0x70d   :  { %v4064_v26 = vmax.f32 %v3799_v36, 0.0  ;;  %6535 = vmatpush1.bf16.msra.mxu1 %v8715_v1  ;;  %v8769_v1 = vld [vmem:[#allocation18 + $0x910] ss:$8 sps:$4 sm:$0xff]   ;;  %v8774_v32 = vld [vmem:[#allocation18 + $0x924] ss:$8 sps:$4 sm:$0xff]  }
 0x70e   :  { %6545 = vmatprep.subr.bf16.mxu1 %v8720_v10  ;;  %v4437_v38 = vpack.c.bf16 %v4063_v61, %v4063_v61  ;;  %v8777_v10 = vld [vmem:[#allocation18 + $0x934] ss:$8 sps:$4 sm:$0xff]   ;;  %v8775_v36 = vld [vmem:[#allocation18 + $0x930] ss:$8 sps:$4 sm:$0xff]   ;;  %v8780_v61 = vld [vmem:[#allocation18 + $0x944] ss:$8 sps:$4 sm:$0xff]  }
 0x70f   :  { %v4438_v22 = vpack.c.bf16 %v4064_v26, %v4064_v26  ;;  %v8778_v26 = vld [vmem:[#allocation18 + $0x940] ss:$8 sps:$4 sm:$0xff]  }
 0x711   :  { %6536 = vmatprep.mubr.bf16.mxu1 %v4438_v22  ;;  %v8783_v22 = vld [vmem:[#allocation18 + $0x954] ss:$8 sps:$4 sm:$0xff]  }
 0x712   :  { %6537 = vmatmul.mubr.bf16.vlgmr.msra.gmra.mrb[28].mxu1 %v4437_v38  ;;  %v8786_v38 = vld [vmem:[#allocation18 + $0x964] ss:$8 sps:$4 sm:$0xff]  }
 0x713   :  { %6546 = vmatpush1.bf16.msra.mxu1 %v8718_v37  ;;  %v8781_v37 = vld [vmem:[#allocation18 + $0x950] ss:$8 sps:$4 sm:$0xff]  }
 0x714   :  { %6547 = vmatprep.subr.bf16.mxu1 %v8723_v39  ;;  %v8784_v39 = vld [vmem:[#allocation18 + $0x960] ss:$8 sps:$4 sm:$0xff]  }
 0x717   :  { %6548 = vmatpush1.bf16.msra.mxu1 %v8721_v56  ;;  %v8789_v56 = vld [vmem:[#allocation18 + $0x974] ss:$8 sps:$4 sm:$0xff]  }
 0x718   :  { %6549 = vmatprep.subr.bf16.mxu1 %v8726_v40  ;;  %v8787_v40 = vld [vmem:[#allocation18 + $0x970] ss:$8 sps:$4 sm:$0xff]  }
 0x71b   :  { %6550 = vmatpush1.bf16.msra.mxu1 %v8724_v42  ;;  %v8792_v42 = vld [vmem:[#allocation18 + $0x984] ss:$8 sps:$4 sm:$0xff]  }
 0x71c   :  { %6551 = vmatprep.subr.bf16.mxu1 %v8729_v57  ;;  %v8790_v57 = vld [vmem:[#allocation18 + $0x980] ss:$8 sps:$4 sm:$0xff]  }
 0x71f   :  { %6552 = vmatpush1.bf16.msra.mxu1 %v8727_v43  ;;  %v8795_v43 = vld [vmem:[#allocation18 + $0x994] ss:$8 sps:$4 sm:$0xff]  }
 0x720   :  { %6553 = vmatprep.subr.bf16.mxu1 %v8732_v24  ;;  %v8793_v24 = vld [vmem:[#allocation18 + $0x990] ss:$8 sps:$4 sm:$0xff]  }
 0x723   :  { %6554 = vmatpush1.bf16.msra.mxu1 %v8730_v47  ;;  %v8798_v47 = vld [vmem:[#allocation18 + $0x9a4] ss:$8 sps:$4 sm:$0xff]  }
 0x724   :  { %6555 = vmatprep.subr.bf16.mxu1 %v8735_v48  ;;  %v8796_v48 = vld [vmem:[#allocation18 + $0x9a0] ss:$8 sps:$4 sm:$0xff]  }
 0x727   :  { %6556 = vmatpush1.bf16.msra.mxu1 %v8733_v3  ;;  %v8801_v3 = vld [vmem:[#allocation18 + $0x9b4] ss:$8 sps:$4 sm:$0xff]  }
 0x728   :  { %6557 = vmatprep.subr.bf16.mxu1 %v8738_v49  ;;  %v8799_v49 = vld [vmem:[#allocation18 + $0x9b0] ss:$8 sps:$4 sm:$0xff]  }
 0x72b   :  { %6558 = vmatpush1.bf16.msra.mxu1 %v8736_v51  ;;  %v8804_v51 = vld [vmem:[#allocation18 + $0x9c4] ss:$8 sps:$4 sm:$0xff]  }
 0x72c   :  { %6559 = vmatprep.subr.bf16.mxu1 %v8741_v52  ;;  %v8802_v52 = vld [vmem:[#allocation18 + $0x9c0] ss:$8 sps:$4 sm:$0xff]  }
 0x72f   :  { %6560 = vmatpush1.bf16.msra.mxu1 %v8739_v0  ;;  %v8807_v0 = vld [vmem:[#allocation18 + $0x9d4] ss:$8 sps:$4 sm:$0xff]  }
 0x730   :  { %6561 = vmatprep.subr.bf16.mxu1 %v8744_v33  ;;  %v8805_v33 = vld [vmem:[#allocation18 + $0x9d0] ss:$8 sps:$4 sm:$0xff]  }
 0x733   :  { %6562 = vmatpush1.bf16.msra.mxu1 %v8742_v53  ;;  %v8810_v53 = vld [vmem:[#allocation18 + $0x9e4] ss:$8 sps:$4 sm:$0xff]  }
 0x734   :  { %6563 = vmatprep.subr.bf16.mxu1 %v8747_v54  ;;  %v1129_v54 = vrot.slane %v9618_v18, %v9482_v15 }
 0x737   :  { %6564 = vmatpush1.bf16.msra.mxu1 %v8745_v55  ;;  %v1133_v55 = vrot.slane %v9618_v18, %v9542_v50 }
 0x738   :  { %6565 = vmatprep.subr.bf16.mxu1 %v8750_v34  ;;  %v8808_v34 = vld [vmem:[#allocation18 + $0x9e0] ss:$8 sps:$4 sm:$0xff]  }
 0x73b   :  { %6566 = vmatpush1.bf16.msra.mxu1 %v8748_v58  ;;  %v8813_v58 = vld [vmem:[#allocation18 + $0x9f4] ss:$8 sps:$4 sm:$0xff]  }
 0x73c   :  { %6567 = vmatprep.subr.bf16.mxu1 %v8753_v11 }
 0x73f   :  { %6568 = vmatpush1.bf16.msra.mxu1 %v8751_v59 }
 0x740   :  { %6569 = vmatprep.subr.bf16.mxu1 %v8756_v60 }
 0x743   :  { %6570 = vmatpush1.bf16.msra.mxu1 %v8754_v63 }
 0x744   :  { %6571 = vmatprep.subr.bf16.mxu1 %v8759_v4 }
 0x747   :  { %6572 = vmatpush1.bf16.msra.mxu1 %v8757_v5  ;;  %v8811_v5 = vld [vmem:[#allocation18 + $0x9f0] ss:$8 sps:$4 sm:$0xff]  }
 0x748   :  { %6573 = vmatprep.subr.bf16.mxu1 %v8762_v6 }
 0x74b   :  { %6574 = vmatpush1.bf16.msra.mxu1 %v8760_v7 }
 0x74c   :  { %6575 = vmatprep.subr.bf16.mxu1 %v8765_v8  ;;  %v8816_v8 = vld [vmem:[#allocation18 + $0xa04] ss:$8 sps:$4 sm:$0xff]  }
 0x74f   :  { %6576 = vmatpush1.bf16.msra.mxu1 %v8763_v9 }
 0x750   :  { %6586 = vmatprep.subr.bf16.mxu1 %v8768_v17 }
 0x753   :  { %v3878_v21 = vpop.f32.mrb[36].mxu0 }
 0x754   :  { %v7644_v23 = vadd.f32 %v3878_v21, %v1121_v19  ;;  %v3880_v25 = vpop.f32.mrb[37].mxu0  ;;  %v8814_v19 = vld [vmem:[#allocation18 + $0xa00] ss:$8 sps:$4 sm:$0xff]   ;;  %v8819_v21 = vld [vmem:[#allocation18 + $0xa14] ss:$8 sps:$4 sm:$0xff]  }
 0x755   :  { %v7645_v16 = vadd.f32 %v3880_v25, %v1125_v20  ;;  %v3882_v27 = vpop.f32.mrb[38].mxu0  ;;  %v8822_v25 = vld [vmem:[#allocation18 + $0xa24] ss:$8 sps:$4 sm:$0xff]  }
 0x756   :  { %v4065_v13 = vmax.f32 %v7644_v23, 0.0  ;;  %v3883_v28 = vpop.f32.mrb[39].mxu0  ;;  %v8817_v23 = vld [vmem:[#allocation18 + $0xa10] ss:$8 sps:$4 sm:$0xff]   ;;  %v8828_v27 = vld [vmem:[#allocation18 + $0xa44] ss:$8 sps:$4 sm:$0xff]  }
 0x757   :  { %v4066_v45 = vmax.f32 %v7645_v16, 0.0  ;;  %v8825_v16 = vld [vmem:[#allocation18 + $0xa34] ss:$8 sps:$4 sm:$0xff]  }
 0x758   :  { %v4439_v31 = vpack.c.bf16 %v4065_v13, %v4065_v13  ;;  %v8826_v13 = vld [vmem:[#allocation18 + $0xa40] ss:$8 sps:$4 sm:$0xff]   ;;  %v8831_v28 = vld [vmem:[#allocation18 + $0xa54] ss:$8 sps:$4 sm:$0xff]  }
 0x759   :  { %v4440_v29 = vpack.c.bf16 %v4066_v45, %v4066_v45  ;;  %v8829_v45 = vld [vmem:[#allocation18 + $0xa50] ss:$8 sps:$4 sm:$0xff]  }
 0x75b   :  { %6577 = vmatprep.mubr.bf16.mxu1 %v4440_v29  ;;  %v8834_v29 = vld [vmem:[#allocation18 + $0xa64] ss:$8 sps:$4 sm:$0xff]  }
 0x75c   :  { %6578 = vmatmul.mubr.bf16.vlgmr.msra.gmra.mrb[28].mxu1 %v4439_v31  ;;  %v8837_v31 = vld [vmem:[#allocation18 + $0xa74] ss:$8 sps:$4 sm:$0xff]  }
 0x75d   :  { %6587 = vmatpush1.bf16.msra.mxu1 %v8766_v30  ;;  %v8832_v30 = vld [vmem:[#allocation18 + $0xa60] ss:$8 sps:$4 sm:$0xff]  }
 0x75e   :  { %6588 = vmatprep.subr.bf16.mxu1 %v8771_v46  ;;  %v8835_v46 = vld [vmem:[#allocation18 + $0xa70] ss:$8 sps:$4 sm:$0xff]  }
 0x761   :  { %6589 = vmatpush1.bf16.msra.mxu1 %v8769_v1  ;;  %v8840_v1 = vld [vmem:[#allocation18 + $0xa84] ss:$8 sps:$4 sm:$0xff]  }
 0x762   :  { %6590 = vmatprep.subr.bf16.mxu1 %v8774_v32  ;;  %v8838_v32 = vld [vmem:[#allocation18 + $0xa80] ss:$8 sps:$4 sm:$0xff]  }
 0x765   :  { %6591 = vmatpush1.bf16.msra.mxu1 %v8772_v35  ;;  %v8843_v35 = vld [vmem:[#allocation18 + $0xa94] ss:$8 sps:$4 sm:$0xff]  }
 0x766   :  { %6592 = vmatprep.subr.bf16.mxu1 %v8777_v10  ;;  %v8841_v10 = vld [vmem:[#allocation18 + $0xa90] ss:$8 sps:$4 sm:$0xff]  }
 0x769   :  { %6593 = vmatpush1.bf16.msra.mxu1 %v8775_v36  ;;  %v8846_v36 = vld [vmem:[#allocation18 + $0xaa4] ss:$8 sps:$4 sm:$0xff]  }
 0x76a   :  { %6594 = vmatprep.subr.bf16.mxu1 %v8780_v61  ;;  %v8844_v61 = vld [vmem:[#allocation18 + $0xaa0] ss:$8 sps:$4 sm:$0xff]  }
 0x76d   :  { %6595 = vmatpush1.bf16.msra.mxu1 %v8778_v26  ;;  %v8849_v26 = vld [vmem:[#allocation18 + $0xab4] ss:$8 sps:$4 sm:$0xff]  }
 0x76e   :  { %6596 = vmatprep.subr.bf16.mxu1 %v8783_v22  ;;  %v8847_v22 = vld [vmem:[#allocation18 + $0xab0] ss:$8 sps:$4 sm:$0xff]  }
 0x771   :  { %6597 = vmatpush1.bf16.msra.mxu1 %v8781_v37  ;;  %v8852_v37 = vld [vmem:[#allocation18 + $0xac4] ss:$8 sps:$4 sm:$0xff]  }
 0x772   :  { %6598 = vmatprep.subr.bf16.mxu1 %v8786_v38  ;;  %v8850_v38 = vld [vmem:[#allocation18 + $0xac0] ss:$8 sps:$4 sm:$0xff]  }
 0x775   :  { %6599 = vmatpush1.bf16.msra.mxu1 %v8784_v39  ;;  %v8855_v39 = vld [vmem:[#allocation18 + $0xad4] ss:$8 sps:$4 sm:$0xff]  }
 0x776   :  { %6600 = vmatprep.subr.bf16.mxu1 %v8789_v56  ;;  %v8853_v56 = vld [vmem:[#allocation18 + $0xad0] ss:$8 sps:$4 sm:$0xff]  }
 0x779   :  { %6601 = vmatpush1.bf16.msra.mxu1 %v8787_v40  ;;  %v8858_v40 = vld [vmem:[#allocation18 + $0xae4] ss:$8 sps:$4 sm:$0xff]  }
 0x77a   :  { %6602 = vmatprep.subr.bf16.mxu1 %v8792_v42  ;;  %v8856_v42 = vld [vmem:[#allocation18 + $0xae0] ss:$8 sps:$4 sm:$0xff]  }
 0x77d   :  { %6603 = vmatpush1.bf16.msra.mxu1 %v8790_v57  ;;  %v8861_v57 = vld [vmem:[#allocation18 + $0xaf4] ss:$8 sps:$4 sm:$0xff]  }
 0x77e   :  { %6604 = vmatprep.subr.bf16.mxu1 %v8795_v43  ;;  %v8859_v43 = vld [vmem:[#allocation18 + $0xaf0] ss:$8 sps:$4 sm:$0xff]  }
 0x781   :  { %6605 = vmatpush1.bf16.msra.mxu1 %v8793_v24  ;;  %v1137_v24 = vrot.slane %v9618_v18, %v9556_v41 }
 0x782   :  { %6606 = vmatprep.subr.bf16.mxu1 %v8798_v47  ;;  %v1141_v47 = vrot.slane %v9618_v18, %v9560_v44 }
 0x785   :  { %6607 = vmatpush1.bf16.msra.mxu1 %v8796_v48 }
 0x786   :  { %6608 = vmatprep.subr.bf16.mxu1 %v8801_v3 }
 0x789   :  { %6609 = vmatpush1.bf16.msra.mxu1 %v8799_v49 }
 0x78a   :  { %6610 = vmatprep.subr.bf16.mxu1 %v8804_v51 }
 0x78d   :  { %6611 = vmatpush1.bf16.msra.mxu1 %v8802_v52 }
 0x78e   :  { %6612 = vmatprep.subr.bf16.mxu1 %v8807_v0 }
 0x791   :  { %6613 = vmatpush1.bf16.msra.mxu1 %v8805_v33 }
 0x792   :  { %6614 = vmatprep.subr.bf16.mxu1 %v8810_v53 }
 0x793   :  { %v3919_v11 = vpop.f32.mrb[40].mxu0 }
 0x794   :  { %v3920_v59 = vadd.f32 %v3919_v11, %v1129_v54  ;;  %v3921_v60 = vpop.f32.mrb[41].mxu0 }
 0x795   :  { %v3922_v63 = vadd.f32 %v3921_v60, %v1133_v55  ;;  %v3923_v4 = vpop.f32.mrb[42].mxu0  ;;  %6615 = vmatpush1.bf16.msra.mxu1 %v8808_v34  ;;  %v4445_v34 = vld [vmem:[#allocation19] sm:$0x3] }
 0x796   :  { %v3961_v6 = vadd.f32 %v9536_v12, %v3920_v59  ;;  %v3924_v7 = vpop.f32.mrb[43].mxu0  ;;  %6616 = vmatprep.subr.bf16.mxu1 %v8813_v58  ;;  %v8820_v12 = vld [vmem:[#allocation18 + $0xa20] ss:$8 sps:$4 sm:$0xff]   ;;  %v4450_v58 = vrot.slane %v4445_v34, %v9468_v62  ;;  %v4454_v41 = vrot.slane %v4445_v34, %v9471_v2 }
 0x797   :  { %v3963_v15 = vadd.f32 %v9538_v14, %v3922_v63  ;;  %v8823_v14 = vld [vmem:[#allocation18 + $0xa30] ss:$8 sps:$4 sm:$0xff]  }
 0x798   :  { %v4067_v9 = vmax.f32 %v3961_v6, 0.0 }
 0x799   :  { %v4068_v17 = vmax.f32 %v3963_v15, 0.0  ;;  %6617 = vmatpush1.bf16.msra.mxu1 %v8811_v5 }
 0x79a   :  { %6627 = vmatprep.subr.bf16.mxu1 %v8816_v8  ;;  %v4441_v20 = vpack.c.bf16 %v4067_v9, %v4067_v9 }
 0x79b   :  { %v4442_v50 = vpack.c.bf16 %v4068_v17, %v4068_v17 }
 0x79d   :  { %6618 = vmatprep.mubr.bf16.mxu1 %v4442_v50 }
 0x79e   :  { %6619 = vmatmul.mubr.bf16.vlgmr.msra.gmra.mrb[28].mxu1 %v4441_v20 }
 0x79f   :  { %6628 = vmatpush1.bf16.msra.mxu1 %v8814_v19 }
 0x7a0   :  { %6629 = vmatprep.subr.bf16.mxu1 %v8819_v21 }
 0x7a3   :  { %6630 = vmatpush1.bf16.msra.mxu1 %v8817_v23 }
 0x7a4   :  { %6631 = vmatprep.subr.bf16.mxu1 %v8822_v25 }
 0x7a7   :  { %6632 = vmatpush1.bf16.msra.mxu1 %v8820_v12 }
 0x7a8   :  { %6633 = vmatprep.subr.bf16.mxu1 %v8825_v16 }
 0x7ab   :  { %6634 = vmatpush1.bf16.msra.mxu1 %v8823_v14 }
 0x7ac   :  { %6635 = vmatprep.subr.bf16.mxu1 %v8828_v27 }
 0x7af   :  { %6636 = vmatpush1.bf16.msra.mxu1 %v8826_v13 }
 0x7b0   :  { %6637 = vmatprep.subr.bf16.mxu1 %v8831_v28 }
 0x7b3   :  { %6638 = vmatpush1.bf16.msra.mxu1 %v8829_v45 }
 0x7b4   :  { %6639 = vmatprep.subr.bf16.mxu1 %v8834_v29 }
 0x7b7   :  { %6640 = vmatpush1.bf16.msra.mxu1 %v8832_v30 }
 0x7b8   :  { %6641 = vmatprep.subr.bf16.mxu1 %v8837_v31 }
 0x7bb   :  { %6642 = vmatpush1.bf16.msra.mxu1 %v8835_v46 }
 0x7bc   :  { %6643 = vmatprep.subr.bf16.mxu1 %v8840_v1 }
 0x7bf   :  { %6644 = vmatpush1.bf16.msra.mxu1 %v8838_v32 }
 0x7c0   :  { %6645 = vmatprep.subr.bf16.mxu1 %v8843_v35 }
 0x7c3   :  { %6646 = vmatpush1.bf16.msra.mxu1 %v8841_v10 }
 0x7c4   :  { %6647 = vmatprep.subr.bf16.mxu1 %v8846_v36 }
 0x7c7   :  { %6648 = vmatpush1.bf16.msra.mxu1 %v8844_v61 }
 0x7c8   :  { %6649 = vmatprep.subr.bf16.mxu1 %v8849_v26 }
 0x7cb   :  { %6650 = vmatpush1.bf16.msra.mxu1 %v8847_v22 }
 0x7cc   :  { %6651 = vmatprep.subr.bf16.mxu1 %v8852_v37 }
 0x7cf   :  { %6652 = vmatpush1.bf16.msra.mxu1 %v8850_v38 }
 0x7d0   :  { %6653 = vmatprep.subr.bf16.mxu1 %v8855_v39 }
 0x7d3   :  { %6654 = vmatpush1.bf16.msra.mxu1 %v8853_v56 }
 0x7d4   :  { %6655 = vmatprep.subr.bf16.mxu1 %v8858_v40 }
 0x7d7   :  { %6656 = vmatpush1.bf16.msra.mxu1 %v8856_v42 }
 0x7d8   :  { %6657 = vmatprep.subr.bf16.mxu1 %v8861_v57 }
 0x7db   :  { %6658 = vmatpush1.bf16.msra.mxu1 %v8859_v43 }
 0x7df   :  { %v4042_v48 = vpop.f32.mrb[44].mxu0 }
 0x7e0   :  { %v7650_v3 = vadd.f32 %v4042_v48, %v1137_v24  ;;  %v4044_v49 = vpop.f32.mrb[45].mxu0 }
 0x7e1   :  { %v7651_v51 = vadd.f32 %v4044_v49, %v1141_v47  ;;  %v4046_v52 = vpop.f32.mrb[46].mxu0 }
 0x7e2   :  { %v4069_v0 = vmax.f32 %v7650_v3, 0.0  ;;  %v4047_v33 = vpop.f32.mrb[47].mxu0 }
 0x7e3   :  { %v4070_v53 = vmax.f32 %v7651_v51, 0.0 }
 0x7e4   :  { %v4443_v55 = vpack.c.bf16 %v4069_v0, %v4069_v0 }
 0x7e5   :  { %v4444_v54 = vpack.c.bf16 %v4070_v53, %v4070_v53 }
 0x7e7   :  { %6659 = vmatprep.mubr.bf16.mxu1 %v4444_v54 }
 0x7e8   :  { %6660 = vmatmul.mubr.bf16.vlgmr.msra.gmra.mrb[28].mxu1 %v4443_v55 }
 0x8bb   :  { %v6661_v11 = vpop.f32.mrb[28].mxu1 }
 0x8bc   :  { %v7652_v59 = vadd.f32 %v6661_v11, %v4450_v58  ;;  %v6663_v44 = vpop.f32.mrb[29].mxu1 }
 0x8bd   :  { %v7653_v18 = vadd.f32 %v6663_v44, %v4454_v41  ;;  %v6665_v60 = vpop.f32.mrb[30].mxu1 }
 0x8be   :  { %v6666_v63 = vpop.f32.mrb[31].mxu1 }
 0x8bf   :  { %v6670_v4 = vcombine.low %v7652_v59, %v7653_v18 }
 0x8c1   :  { %7458 = vst.sshfl [vmem:[%s9652_s13] sm:$0x33 pattern:$0x76325410] %v6670_v4 }
 0x8c2   :  { %6684 = vsyncpa [#allocation3], 1 }
 0x8c3   :  { %6685 = vsyncpa [#allocation5], 1 }
 0x8c4   :  { %6686 = vsyncpa [#allocation8], 1 }
 0x8c5   :  { %6687 = vsyncpa [#allocation11], 1 }
 0x8c6   :  { %6688 = vsyncpa [#allocation14], 1 }
 0x8c7   :  { %6689 = vsyncpa [#allocation17], 1 }
 0x8c8   :  { %6690 = vsyncpa [#allocation20], 1 }

</bundles_post_ra>
